<compile_context>
chip_gen: v7x
topology: tpu7x:2x2x1
jax: 0.10.0
libtpu: 0.0.40
codegen_flags: <defaults>
</compile_context>

<pallas_src>
import functools
import math

import jax
import jax.numpy as jnp
from jax.experimental import pallas as pl
from jax.experimental.pallas import tpu as pltpu


def _round_up(x, m):
    return (x + m - 1) // m * m


# ----------------------- Pallas: tiled matmul + epilogue ---------------------

def _mm_kernel_single(a_ref, w_ref, b_ref, o_ref, *, act):
    y = jnp.dot(a_ref[...], w_ref[...], preferred_element_type=jnp.float32)
    y = y + b_ref[...]
    if act == "relu":
        y = jnp.maximum(y, 0.0)
    o_ref[...] = y


def _mm_kernel_ktiled(a_ref, w_ref, b_ref, o_ref, acc_ref, *, act, k_steps):
    @pl.when(pl.program_id(1) == 0)
    def _init():
        acc_ref[...] = jnp.zeros_like(acc_ref)

    acc_ref[...] += jnp.dot(a_ref[...], w_ref[...],
                            preferred_element_type=jnp.float32)

    @pl.when(pl.program_id(1) == k_steps - 1)
    def _finish():
        y = acc_ref[...] + b_ref[...]
        if act == "relu":
            y = jnp.maximum(y, 0.0)
        o_ref[...] = y


def matmul_bias_act(a, w, b, act=None, tile_m_max=512, tile_k_max=1024):
    """a:[M,K] @ w:[K,N] + b:[N] (+ ReLU).  bf16 MXU operands, f32 accumulate.

    Tiled over M (parallel) and, when K is large, over K (arbitrary, last)
    with a VMEM f32 accumulator.  K and N use full-extent blocks so no HBM
    zero-padding of the contraction/output dims is needed.
    """
    M, K = a.shape
    K2, N = w.shape
    assert K == K2 and b.shape == (N,)

    if M <= tile_m_max:
        tile_m = _round_up(M, 16)
        Mp = tile_m
    else:
        tile_m = tile_m_max
        Mp = _round_up(M, tile_m)

    if K <= tile_k_max:
        tile_k, Kp = K, K
    else:
        tile_k = tile_k_max
        Kp = _round_up(K, tile_k)

    a_p = a.astype(jnp.bfloat16)
    w_p = w.astype(jnp.bfloat16)
    if Mp != M or Kp != K:
        a_p = jnp.pad(a_p, ((0, Mp - M), (0, Kp - K)))
    if Kp != K:
        w_p = jnp.pad(w_p, ((0, Kp - K), (0, 0)))
    b_p = b.astype(jnp.float32).reshape(1, N)

    m_tiles = Mp // tile_m
    k_steps = Kp // tile_k

    if k_steps == 1:
        out = pl.pallas_call(
            functools.partial(_mm_kernel_single, act=act),
            out_shape=jax.ShapeDtypeStruct((Mp, N), jnp.float32),
            grid=(m_tiles,),
            in_specs=[
                pl.BlockSpec((tile_m, tile_k), lambda i: (i, 0)),
                pl.BlockSpec((tile_k, N), lambda i: (0, 0)),
                pl.BlockSpec((1, N), lambda i: (0, 0)),
            ],
            out_specs=pl.BlockSpec((tile_m, N), lambda i: (i, 0)),
            compiler_params=pltpu.CompilerParams(
                dimension_semantics=("parallel",)),
        )(a_p, w_p, b_p)
    else:
        out = pl.pallas_call(
            functools.partial(_mm_kernel_ktiled, act=act, k_steps=k_steps),
            out_shape=jax.ShapeDtypeStruct((Mp, N), jnp.float32),
            grid=(m_tiles, k_steps),
            in_specs=[
                pl.BlockSpec((tile_m, tile_k), lambda i, k: (i, k)),
                pl.BlockSpec((tile_k, N), lambda i, k: (k, 0)),
                pl.BlockSpec((1, N), lambda i, k: (0, 0)),
            ],
            out_specs=pl.BlockSpec((tile_m, N), lambda i, k: (i, 0)),
            scratch_shapes=[pltpu.VMEM((tile_m, N), jnp.float32)],
            compiler_params=pltpu.CompilerParams(
                dimension_semantics=("parallel", "arbitrary")),
        )(a_p, w_p, b_p)

    if Mp != M:
        out = out[:M]
    return out


# --------------------------- Pallas: GroupNorm + act -------------------------

def _groupnorm_act_kernel(x_ref, g_ref, b_ref, o_ref, *, eps, act, inv_n):
    x = x_ref[0]                                     # (Cg, HW) f32
    mean = jnp.sum(x, keepdims=True) * inv_n         # (1, 1)
    xc = x - mean
    var = jnp.sum(xc * xc, keepdims=True) * inv_n
    y = xc * jax.lax.rsqrt(var + eps)
    y = y * g_ref[0] + b_ref[0]                      # (Cg, 1) broadcast over HW
    if act == "relu":
        y = jnp.maximum(y, 0.0)
    elif act == "tanh":
        y = jnp.tanh(y)
    o_ref[0] = y


def group_norm_act(x_nchw, gamma, beta, num_groups, act, eps=1e-5):
    """PyTorch GroupNorm (biased var) + activation, one (batch, group) block
    per grid step; gamma/beta shipped as tiny [G, Cg, 1] params."""
    B, C, H, W = x_nchw.shape
    G = num_groups
    Cg = C // G
    HW = H * W
    xr = x_nchw.reshape(B * G, Cg, HW).astype(jnp.float32)
    g_p = gamma.reshape(G, Cg, 1).astype(jnp.float32)
    b_p = beta.reshape(G, Cg, 1).astype(jnp.float32)

    out = pl.pallas_call(
        functools.partial(_groupnorm_act_kernel, eps=eps, act=act,
                          inv_n=1.0 / float(Cg * HW)),
        out_shape=jax.ShapeDtypeStruct((B * G, Cg, HW), jnp.float32),
        grid=(B, G),
        in_specs=[
            pl.BlockSpec((1, Cg, HW), lambda bi, gi: (bi * G + gi, 0, 0)),
            pl.BlockSpec((1, Cg, 1), lambda bi, gi: (gi, 0, 0)),
            pl.BlockSpec((1, Cg, 1), lambda bi, gi: (gi, 0, 0)),
        ],
        out_specs=pl.BlockSpec((1, Cg, HW), lambda bi, gi: (bi * G + gi, 0, 0)),
        compiler_params=pltpu.CompilerParams(
            dimension_semantics=("parallel", "parallel")),
    )(xr, g_p, b_p)
    return out.reshape(B, C, H, W)


# --------------------------- conv via im2col + MXU ---------------------------

def conv2d(x_nchw, w, b, stride=1, padding=1, act=None):
    """PyTorch-semantics Conv2d (cross-correlation) with optional fused ReLU.
    w: [Cout, Cin, Kh, Kw]."""
    B, Cin, H, W = x_nchw.shape
    Cout, _, Kh, Kw = w.shape
    x = jnp.transpose(x_nchw, (0, 2, 3, 1))          # NHWC
    xp = jnp.pad(x, ((0, 0), (padding, padding), (padding, padding), (0, 0)))
    Ho = (H + 2 * padding - Kh) // stride + 1
    Wo = (W + 2 * padding - Kw) // stride + 1
    # TODO(synk): build the [tile_m, Cin*Kh*Kw] patch tile in-kernel from a
    # halo'd NHWC DMA (memory_space=pl.ANY) instead of materializing im2col in
    # HBM; this is the largest remaining HBM-traffic win at realistic sizes.
    cols = []
    for kh in range(Kh):
        for kw in range(Kw):
            cols.append(xp[:, kh:kh + (Ho - 1) * stride + 1:stride,
                           kw:kw + (Wo - 1) * stride + 1:stride, :])
    patches = jnp.stack(cols, axis=-1)               # [B,Ho,Wo,Cin,Kh*Kw]
    patches = patches.reshape(B * Ho * Wo, Cin * Kh * Kw)
    wm = w.reshape(Cout, Cin * Kh * Kw).T
    out = matmul_bias_act(patches, wm, b, act=act).reshape(B, Ho, Wo, Cout)
    return jnp.transpose(out, (0, 3, 1, 2))


# ------------------------------- DSConv_pro ----------------------------------

def _cumulative_offset(off, center):
    """off: [B, K, H, W]; center stays 0, others accumulate outward."""
    K = off.shape[1]
    new = [None] * K
    new[center] = jnp.zeros_like(off[:, center])
    for i in range(1, center + 1):
        new[center + i] = new[center + i - 1] + off[:, center + i]
        new[center - i] = new[center - i + 1] + off[:, center - i]
    return jnp.stack(new, axis=1)


def get_coordinate_map_2d(offset, morph, extend_scope, K):
    B, _, H, W = offset.shape
    center = K // 2
    y_off = offset[:, :K]
    x_off = offset[:, K:]
    y_c = jnp.arange(H, dtype=jnp.float32).reshape(1, 1, H, 1)
    x_c = jnp.arange(W, dtype=jnp.float32).reshape(1, 1, 1, W)
    spread = jnp.linspace(-center, center, K, dtype=jnp.float32).reshape(1, K, 1, 1)
    if morph == 0:
        y_new = jnp.broadcast_to(y_c, (B, K, H, W))
        x_new = jnp.broadcast_to(x_c + spread, (B, K, H, W))
        y_new = y_new + _cumulative_offset(y_off, center) * extend_scope
        ymap = jnp.transpose(y_new, (0, 2, 1, 3)).reshape(B, H * K, W)
        xmap = jnp.transpose(x_new, (0, 2, 1, 3)).reshape(B, H * K, W)
    else:
        y_new = jnp.broadcast_to(y_c + spread, (B, K, H, W))
        x_new = jnp.broadcast_to(x_c, (B, K, H, W))
        x_new = x_new + _cumulative_offset(x_off, center) * extend_scope
        ymap = jnp.transpose(y_new, (0, 2, 3, 1)).reshape(B, H, W * K)
        xmap = jnp.transpose(x_new, (0, 2, 3, 1)).reshape(B, H, W * K)
    return ymap, xmap


def bilinear_sample(x_nchw, ymap, xmap):
    """grid_sample(bilinear, align_corners=True, coords clamped to border)."""
    # TODO(synk): data-dependent per-pixel gather (grid_sample) has no clean
    # Pallas/TPU equivalent at these sizes; kept in plain JAX.
    B, C, H, W = x_nchw.shape
    feat = jnp.transpose(x_nchw, (0, 2, 3, 1))       # NHWC
    y = jnp.clip(ymap, 0.0, H - 1)
    x = jnp.clip(xmap, 0.0, W - 1)
    y0 = jnp.floor(y)
    x0 = jnp.floor(x)
    y0i = y0.astype(jnp.int32)
    x0i = x0.astype(jnp.int32)
    y1i = jnp.minimum(y0i + 1, H - 1)
    x1i = jnp.minimum(x0i + 1, W - 1)
    wy = (y - y0)[..., None]
    wx = (x - x0)[..., None]
    bidx = jnp.arange(B).reshape(B, 1, 1)
    v00 = feat[bidx, y0i, x0i]
    v01 = feat[bidx, y0i, x1i]
    v10 = feat[bidx, y1i, x0i]
    v11 = feat[bidx, y1i, x1i]
    return (v00 * (1 - wy) * (1 - wx) + v01 * (1 - wy) * wx
            + v10 * wy * (1 - wx) + v11 * wy * wx)   # NHWC [B, Hm, Wm, C]


def dsc_conv(deformed_nhwc, w, b, morph, K):
    """(K,1)/(1,K) conv with matching stride -> im2col + Pallas matmul."""
    B, Hm, Wm, Cin = deformed_nhwc.shape
    Cout = w.shape[0]
    if morph == 0:
        H, W = Hm // K, Wm
        patches = deformed_nhwc.reshape(B, H, K, W, Cin)
        patches = jnp.transpose(patches, (0, 1, 3, 4, 2))   # [B,H,W,Cin,K]
    else:
        H, W = Hm, Wm // K
        patches = deformed_nhwc.reshape(B, H, W, K, Cin)
        patches = jnp.transpose(patches, (0, 1, 2, 4, 3))   # [B,H,W,Cin,K]
    patches = patches.reshape(B * H * W, Cin * K)
    wm = w.reshape(Cout, Cin * K).T
    out = matmul_bias_act(patches, wm, b).reshape(B, H, W, Cout)
    return jnp.transpose(out, (0, 3, 1, 2))


def dsconv_pro(x_nchw, offset_raw, p, morph, K=9, extend_scope=1.0):
    """DSConv_pro with the offset conv already computed (fused upstream)."""
    Cout = p["dsc_w"].shape[0]
    offset = group_norm_act(offset_raw, p["gn_off_w"], p["gn_off_b"],
                            num_groups=K, act="tanh")
    ymap, xmap = get_coordinate_map_2d(offset, morph, extend_scope, K)
    deformed = bilinear_sample(x_nchw, ymap, xmap)
    out = dsc_conv(deformed, p["dsc_w"], p["dsc_b"], morph, K)
    out = group_norm_act(out, p["gn_w"], p["gn_b"],
                         num_groups=Cout // 4, act="relu")
    return out


# -------------------------------- DSC modules --------------------------------

def dsc_module(x, p, bn, stride, final_relu, f=3):
    K = f * f
    pad = math.ceil(f / 2) - 1
    out_ch = p["conv_w"].shape[0]

    # Fuse the three stride-1 3x3 convs that all read x (conv + both DSConv
    # offset convs) into a single im2col + MXU matmul, then split channels.
    w_fused = jnp.concatenate(
        [p["conv_w"], p["xdsc"]["offset_w"], p["ydsc"]["offset_w"]], axis=0)
    b_fused = jnp.concatenate(
        [p["conv_b"], p["xdsc"]["offset_b"], p["ydsc"]["offset_b"]], axis=0)
    fused = conv2d(x, w_fused, b_fused, stride=1, padding=pad)
    c = fused[:, :out_ch]
    off_x = fused[:, out_ch:out_ch + 2 * K]
    off_y = fused[:, out_ch + 2 * K:]

    xd = dsconv_pro(x, off_x, p["xdsc"], morph=0, K=K)
    yd = dsconv_pro(x, off_y, p["ydsc"], morph=1, K=K)
    cat = jnp.concatenate([c, xd, yd], axis=1)

    # Fold eval-mode BatchNorm (+ ReLU) into the enc conv weights/bias and the
    # matmul epilogue: removes a full read+write HBM pass and two transposes.
    scale = bn["w"] * jax.lax.rsqrt(bn["var"] + 1e-5)
    shift = bn["b"] - bn["mean"] * scale
    enc_w = p["enc_w"] * scale[:, None, None, None]
    enc_b = p["enc_b"] * scale + shift
    return conv2d(cat, enc_w, enc_b, stride=stride, padding=pad,
                  act="relu" if final_relu else None)


def dsc_stem(x, params):
    for layer_number, layer in enumerate(params["layers"]):
        stride = 2 if layer_number < 2 else 1
        x = dsc_module(x, layer["module"], layer["bn"], stride=stride,
                       final_relu=layer_number < 2)
    return x


# -------------------------------- parameters ---------------------------------

def init_params(key, in_dim=1, total_layers=2, f=3):
    K = f * f
    keys = jax.random.split(key, total_layers * 16)
    ki = iter(keys)

    def nrm(shape, scale=0.1):
        return jax.random.normal(next(ki), shape, dtype=jnp.float32) * scale

    layers = []
    start = 16
    for _ in range(total_layers):
        out = start

        def dsc_branch(cin=in_dim, cout=out):
            return {
                "offset_w": nrm((2 * K, cin, 3, 3)),
                "offset_b": nrm((2 * K,)),
                "gn_off_w": jnp.ones((2 * K,), jnp.float32),
                "gn_off_b": jnp.zeros((2 * K,), jnp.float32),
                "dsc_w": nrm((cout, cin, K)),
                "dsc_b": nrm((cout,)),
                "gn_w": jnp.ones((cout,), jnp.float32),
                "gn_b": jnp.zeros((cout,), jnp.float32),
            }

        module = {
            "conv_w": nrm((out, in_dim, f, f)),
            "conv_b": nrm((out,)),
            "xdsc": dsc_branch(),
            "ydsc": dsc_branch(),
            "enc_w": nrm((out, 3 * out, f, f)),
            "enc_b": nrm((out,)),
        }
        layers.append({
            "module": module,
            "bn": {
                "w": jnp.ones((out,), jnp.float32),
                "b": jnp.zeros((out,), jnp.float32),
                "mean": jnp.zeros((out,), jnp.float32),
                "var": jnp.ones((out,), jnp.float32),
            },
        })
        in_dim = out
        start = start * 2
    return {"layers": layers}


# ----------------------------------- main -------------------------------------

if __name__ == "__main__":
    key = jax.random.PRNGKey(0)
    pkey, xkey = jax.random.split(key)
    params = init_params(pkey, in_dim=1, total_layers=2, f=3)
    x = jax.random.normal(xkey, (2, 1, 16, 16), dtype=jnp.float32)

    out = jax.jit(dsc_stem)(x, params)
    out = jax.block_until_ready(out)
    assert out.shape == (2, 32, 4, 4), out.shape
    assert jnp.all(jnp.isfinite(out))
    print("KERNEL_OK")
</pallas_src>

<mosaic_0001>
module attributes {stable_mosaic.version = 11 : i64} {
  func.func @_mm_kernel_single(%arg0: i32, %arg1: memref<512x9xbf16, #tpu.memory_space<vmem>>, %arg2: memref<9x52xbf16, #tpu.memory_space<vmem>>, %arg3: memref<1x52xf32, #tpu.memory_space<vmem>>, %arg4: memref<512x52xf32, #tpu.memory_space<vmem>>) attributes {dimension_semantics = [#tpu.dimension_semantics<parallel>], iteration_bounds = array<i64: 1>, scalar_prefetch = 0 : i64, scratch_operands = 0 : i64, tpu.core_type = #tpu.core_type<tc>, window_params = [{transform_indices = @transform_0, window_bounds = array<i64: 512, 9>}, {pipeline_mode = #tpu.pipeline_mode<synchronous>, transform_indices = @transform_1, window_bounds = array<i64: 9, 52>}, {pipeline_mode = #tpu.pipeline_mode<synchronous>, transform_indices = @transform_2, window_bounds = array<i64: 1, 52>}, {transform_indices = @transform_3, window_bounds = array<i64: 512, 52>}]} {
    %c0 = arith.constant 0 : index
    %c0_0 = arith.constant 0 : index
    %0 = vector.load %arg1[%c0, %c0_0] : memref<512x9xbf16, #tpu.memory_space<vmem>>, vector<512x9xbf16>
    %c0_1 = arith.constant 0 : index
    %c0_2 = arith.constant 0 : index
    %1 = vector.load %arg2[%c0_1, %c0_2] : memref<9x52xbf16, #tpu.memory_space<vmem>>, vector<9x52xbf16>
    %cst = arith.constant dense<0.000000e+00> : vector<512x52xf32>
    %2 = tpu.matmul %0, %1, %cst {dimension_numbers = #tpu.dot_dimension_numbers<[1], [0], [0], [1], [0, 0, 1, 1], [], []>} : vector<512x9xbf16>, vector<9x52xbf16>, vector<512x52xf32> -> vector<512x52xf32>
    %c0_3 = arith.constant 0 : index
    %c0_4 = arith.constant 0 : index
    %3 = vector.load %arg3[%c0_3, %c0_4] : memref<1x52xf32, #tpu.memory_space<vmem>>, vector<1x52xf32>
    %4 = vector.broadcast %3 : vector<1x52xf32> to vector<512x52xf32>
    %5 = arith.addf %2, %4 : vector<512x52xf32>
    %c0_5 = arith.constant 0 : index
    %c0_6 = arith.constant 0 : index
    %6 = vector.load %arg4[%c0_5, %c0_6] : memref<512x52xf32, #tpu.memory_space<vmem>>, vector<512x52xf32>
    tpu.vector_store %arg4[%c0_5, %c0_6], %5 {strides = array<i32>} : memref<512x52xf32, #tpu.memory_space<vmem>>, vector<512x52xf32>,
    return
  }
  func.func @transform_0(%arg0: i32) -> (i32, i32) {
    %c0_i32 = arith.constant 0 : i32
    %c0_i32_0 = arith.constant 0 : i32
    return %arg0, %c0_i32 : i32, i32
  }
  func.func @transform_1(%arg0: i32) -> (i32, i32) {
    %c0_i32 = arith.constant 0 : i32
    %c0_i32_0 = arith.constant 0 : i32
    %c0_i32_1 = arith.constant 0 : i32
    return %c0_i32, %c0_i32_0 : i32, i32
  }
  func.func @transform_2(%arg0: i32) -> (i32, i32) {
    %c0_i32 = arith.constant 0 : i32
    %c0_i32_0 = arith.constant 0 : i32
    %c0_i32_1 = arith.constant 0 : i32
    return %c0_i32, %c0_i32_0 : i32, i32
  }
  func.func @transform_3(%arg0: i32) -> (i32, i32) {
    %c0_i32 = arith.constant 0 : i32
    %c0_i32_0 = arith.constant 0 : i32
    return %arg0, %c0_i32 : i32, i32
  }
}

module attributes {stable_mosaic.version = 11 : i64} {
  func.func @_groupnorm_act_kernel(%arg0: i32, %arg1: i32, %arg2: memref<1x2x256xf32, #tpu.memory_space<vmem>>, %arg3: memref<1x2x1xf32, #tpu.memory_space<vmem>>, %arg4: memref<1x2x1xf32, #tpu.memory_space<vmem>>, %arg5: memref<1x2x256xf32, #tpu.memory_space<vmem>>) attributes {dimension_semantics = [#tpu.dimension_semantics<parallel>, #tpu.dimension_semantics<parallel>], iteration_bounds = array<i64: 2, 9>, scalar_prefetch = 0 : i64, scratch_operands = 0 : i64, tpu.core_type = #tpu.core_type<tc>, window_params = [{transform_indices = @transform_0, window_bounds = array<i64: 1, 2, 256>}, {transform_indices = @transform_1, window_bounds = array<i64: 1, 2, 1>}, {transform_indices = @transform_2, window_bounds = array<i64: 1, 2, 1>}, {transform_indices = @transform_3, window_bounds = array<i64: 1, 2, 256>}]} {
    %c0 = arith.constant 0 : index
    %c0_0 = arith.constant 0 : index
    %c0_1 = arith.constant 0 : index
    %0 = vector.load %arg2[%c0, %c0_0, %c0_1] : memref<1x2x256xf32, #tpu.memory_space<vmem>>, vector<1x2x256xf32>
    %1 = vector.shape_cast %0 : vector<1x2x256xf32> to vector<2x256xf32>
    %2 = vector.shape_cast %1 : vector<2x256xf32> to vector<1x2x256xf32>
    %cst = arith.constant dense<0.000000e+00> : vector<1xf32>
    %3 = vector.multi_reduction <add>, %2, %cst [1, 2] : vector<1x2x256xf32> to vector<1xf32>
    %4 = vector.shape_cast %3 : vector<1xf32> to vector<1x1x1xf32>
    %5 = vector.extract %4[0, 0, 0] : f32 from vector<1x1x1xf32>
    %6 = vector.broadcast %5 : f32 to vector<1x1xf32>
    %cst_2 = arith.constant 0.001953125 : f32
    %7 = vector.broadcast %cst_2 : f32 to vector<1x1xf32>
    %8 = arith.mulf %6, %7 : vector<1x1xf32>
    %9 = vector.broadcast %8 : vector<1x1xf32> to vector<2x256xf32>
    %10 = arith.subf %1, %9 : vector<2x256xf32>
    %11 = arith.mulf %10, %10 : vector<2x256xf32>
    %12 = vector.shape_cast %11 : vector<2x256xf32> to vector<1x2x256xf32>
    %cst_3 = arith.constant dense<0.000000e+00> : vector<1xf32>
    %13 = vector.multi_reduction <add>, %12, %cst_3 [1, 2] : vector<1x2x256xf32> to vector<1xf32>
    %14 = vector.shape_cast %13 : vector<1xf32> to vector<1x1x1xf32>
    %15 = vector.extract %14[0, 0, 0] : f32 from vector<1x1x1xf32>
    %16 = vector.broadcast %15 : f32 to vector<1x1xf32>
    %cst_4 = arith.constant 0.001953125 : f32
    %17 = vector.broadcast %cst_4 : f32 to vector<1x1xf32>
    %18 = arith.mulf %16, %17 : vector<1x1xf32>
    %cst_5 = arith.constant 9.99999974E-6 : f32
    %19 = vector.broadcast %cst_5 : f32 to vector<1x1xf32>
    %20 = arith.addf %18, %19 : vector<1x1xf32>
    %21 = math.rsqrt %20 : vector<1x1xf32>
    %22 = vector.broadcast %21 : vector<1x1xf32> to vector<2x256xf32>
    %23 = arith.mulf %10, %22 : vector<2x256xf32>
    %c0_6 = arith.constant 0 : index
    %c0_7 = arith.constant 0 : index
    %c0_8 = arith.constant 0 : index
    %24 = vector.load %arg3[%c0_6, %c0_7, %c0_8] : memref<1x2x1xf32, #tpu.memory_space<vmem>>, vector<1x2x1xf32>
    %25 = vector.shape_cast %24 : vector<1x2x1xf32> to vector<2x1xf32>
    %26 = vector.broadcast %25 : vector<2x1xf32> to vector<2x256xf32>
    %27 = arith.mulf %23, %26 : vector<2x256xf32>
    %c0_9 = arith.constant 0 : index
    %c0_10 = arith.constant 0 : index
    %c0_11 = arith.constant 0 : index
    %28 = vector.load %arg4[%c0_9, %c0_10, %c0_11] : memref<1x2x1xf32, #tpu.memory_space<vmem>>, vector<1x2x1xf32>
    %29 = vector.shape_cast %28 : vector<1x2x1xf32> to vector<2x1xf32>
    %30 = vector.broadcast %29 : vector<2x1xf32> to vector<2x256xf32>
    %31 = arith.addf %27, %30 : vector<2x256xf32>
    %32 = math.tanh %31 : vector<2x256xf32>
    %c0_12 = arith.constant 0 : index
    %c0_13 = arith.constant 0 : index
    %c0_14 = arith.constant 0 : index
    %33 = vector.load %arg5[%c0_12, %c0_13, %c0_14] : memref<1x2x256xf32, #tpu.memory_space<vmem>>, vector<1x2x256xf32>
    %34 = vector.shape_cast %33 : vector<1x2x256xf32> to vector<2x256xf32>
    %35 = vector.shape_cast %32 : vector<2x256xf32> to vector<1x2x256xf32>
    tpu.vector_store %arg5[%c0_12, %c0_13, %c0_14], %35 {strides = array<i32>} : memref<1x2x256xf32, #tpu.memory_space<vmem>>, vector<1x2x256xf32>,
    return
  }
  func.func @transform_0(%arg0: i32, %arg1: i32) -> (i32, i32, i32) {
    %c9_i32 = arith.constant 9 : i32
    %0 = arith.muli %arg0, %c9_i32 : i32
    %1 = arith.addi %0, %arg1 : i32
    %c0_i32 = arith.constant 0 : i32
    %c0_i32_0 = arith.constant 0 : i32
    %c0_i32_1 = arith.constant 0 : i32
    return %1, %c0_i32, %c0_i32_0 : i32, i32, i32
  }
  func.func @transform_1(%arg0: i32, %arg1: i32) -> (i32, i32, i32) {
    %c0_i32 = arith.constant 0 : i32
    %c0_i32_0 = arith.constant 0 : i32
    %c0_i32_1 = arith.constant 0 : i32
    return %arg1, %c0_i32, %c0_i32_0 : i32, i32, i32
  }
  func.func @transform_2(%arg0: i32, %arg1: i32) -> (i32, i32, i32) {
    %c0_i32 = arith.constant 0 : i32
    %c0_i32_0 = arith.constant 0 : i32
    %c0_i32_1 = arith.constant 0 : i32
    return %arg1, %c0_i32, %c0_i32_0 : i32, i32, i32
  }
  func.func @transform_3(%arg0: i32, %arg1: i32) -> (i32, i32, i32) {
    %c9_i32 = arith.constant 9 : i32
    %0 = arith.muli %arg0, %c9_i32 : i32
    %1 = arith.addi %0, %arg1 : i32
    %c0_i32 = arith.constant 0 : i32
    %c0_i32_0 = arith.constant 0 : i32
    %c0_i32_1 = arith.constant 0 : i32
    return %1, %c0_i32, %c0_i32_0 : i32, i32, i32
  }
}

module attributes {stable_mosaic.version = 11 : i64} {
  func.func @_mm_kernel_single(%arg0: i32, %arg1: memref<512x9xbf16, #tpu.memory_space<vmem>>, %arg2: memref<9x16xbf16, #tpu.memory_space<vmem>>, %arg3: memref<1x16xf32, #tpu.memory_space<vmem>>, %arg4: memref<512x16xf32, #tpu.memory_space<vmem>>) attributes {dimension_semantics = [#tpu.dimension_semantics<parallel>], iteration_bounds = array<i64: 1>, scalar_prefetch = 0 : i64, scratch_operands = 0 : i64, tpu.core_type = #tpu.core_type<tc>, window_params = [{transform_indices = @transform_0, window_bounds = array<i64: 512, 9>}, {pipeline_mode = #tpu.pipeline_mode<synchronous>, transform_indices = @transform_1, window_bounds = array<i64: 9, 16>}, {pipeline_mode = #tpu.pipeline_mode<synchronous>, transform_indices = @transform_2, window_bounds = array<i64: 1, 16>}, {transform_indices = @transform_3, window_bounds = array<i64: 512, 16>}]} {
    %c0 = arith.constant 0 : index
    %c0_0 = arith.constant 0 : index
    %0 = vector.load %arg1[%c0, %c0_0] : memref<512x9xbf16, #tpu.memory_space<vmem>>, vector<512x9xbf16>
    %c0_1 = arith.constant 0 : index
    %c0_2 = arith.constant 0 : index
    %1 = vector.load %arg2[%c0_1, %c0_2] : memref<9x16xbf16, #tpu.memory_space<vmem>>, vector<9x16xbf16>
    %cst = arith.constant dense<0.000000e+00> : vector<512x16xf32>
    %2 = tpu.matmul %0, %1, %cst {dimension_numbers = #tpu.dot_dimension_numbers<[1], [0], [0], [1], [0, 0, 1, 1], [], []>} : vector<512x9xbf16>, vector<9x16xbf16>, vector<512x16xf32> -> vector<512x16xf32>
    %c0_3 = arith.constant 0 : index
    %c0_4 = arith.constant 0 : index
    %3 = vector.load %arg3[%c0_3, %c0_4] : memref<1x16xf32, #tpu.memory_space<vmem>>, vector<1x16xf32>
    %4 = vector.broadcast %3 : vector<1x16xf32> to vector<512x16xf32>
    %5 = arith.addf %2, %4 : vector<512x16xf32>
    %c0_5 = arith.constant 0 : index
    %c0_6 = arith.constant 0 : index
    %6 = vector.load %arg4[%c0_5, %c0_6] : memref<512x16xf32, #tpu.memory_space<vmem>>, vector<512x16xf32>
    tpu.vector_store %arg4[%c0_5, %c0_6], %5 {strides = array<i32>} : memref<512x16xf32, #tpu.memory_space<vmem>>, vector<512x16xf32>,
    return
  }
  func.func @transform_0(%arg0: i32) -> (i32, i32) {
    %c0_i32 = arith.constant 0 : i32
    %c0_i32_0 = arith.constant 0 : i32
    return %arg0, %c0_i32 : i32, i32
  }
  func.func @transform_1(%arg0: i32) -> (i32, i32) {
    %c0_i32 = arith.constant 0 : i32
    %c0_i32_0 = arith.constant 0 : i32
    %c0_i32_1 = arith.constant 0 : i32
    return %c0_i32, %c0_i32_0 : i32, i32
  }
  func.func @transform_2(%arg0: i32) -> (i32, i32) {
    %c0_i32 = arith.constant 0 : i32
    %c0_i32_0 = arith.constant 0 : i32
    %c0_i32_1 = arith.constant 0 : i32
    return %c0_i32, %c0_i32_0 : i32, i32
  }
  func.func @transform_3(%arg0: i32) -> (i32, i32) {
    %c0_i32 = arith.constant 0 : i32
    %c0_i32_0 = arith.constant 0 : i32
    return %arg0, %c0_i32 : i32, i32
  }
}

module attributes {stable_mosaic.version = 11 : i64} {
  func.func @_groupnorm_act_kernel(%arg0: i32, %arg1: i32, %arg2: memref<1x4x256xf32, #tpu.memory_space<vmem>>, %arg3: memref<1x4x1xf32, #tpu.memory_space<vmem>>, %arg4: memref<1x4x1xf32, #tpu.memory_space<vmem>>, %arg5: memref<1x4x256xf32, #tpu.memory_space<vmem>>) attributes {dimension_semantics = [#tpu.dimension_semantics<parallel>, #tpu.dimension_semantics<parallel>], iteration_bounds = array<i64: 2, 4>, scalar_prefetch = 0 : i64, scratch_operands = 0 : i64, tpu.core_type = #tpu.core_type<tc>, window_params = [{transform_indices = @transform_0, window_bounds = array<i64: 1, 4, 256>}, {transform_indices = @transform_1, window_bounds = array<i64: 1, 4, 1>}, {transform_indices = @transform_2, window_bounds = array<i64: 1, 4, 1>}, {transform_indices = @transform_3, window_bounds = array<i64: 1, 4, 256>}]} {
    %c0 = arith.constant 0 : index
    %c0_0 = arith.constant 0 : index
    %c0_1 = arith.constant 0 : index
    %0 = vector.load %arg2[%c0, %c0_0, %c0_1] : memref<1x4x256xf32, #tpu.memory_space<vmem>>, vector<1x4x256xf32>
    %1 = vector.shape_cast %0 : vector<1x4x256xf32> to vector<4x256xf32>
    %2 = vector.shape_cast %1 : vector<4x256xf32> to vector<1x4x256xf32>
    %cst = arith.constant dense<0.000000e+00> : vector<1xf32>
    %3 = vector.multi_reduction <add>, %2, %cst [1, 2] : vector<1x4x256xf32> to vector<1xf32>
    %4 = vector.shape_cast %3 : vector<1xf32> to vector<1x1x1xf32>
    %5 = vector.extract %4[0, 0, 0] : f32 from vector<1x1x1xf32>
    %6 = vector.broadcast %5 : f32 to vector<1x1xf32>
    %cst_2 = arith.constant 9.765625E-4 : f32
    %7 = vector.broadcast %cst_2 : f32 to vector<1x1xf32>
    %8 = arith.mulf %6, %7 : vector<1x1xf32>
    %9 = vector.broadcast %8 : vector<1x1xf32> to vector<4x256xf32>
    %10 = arith.subf %1, %9 : vector<4x256xf32>
    %11 = arith.mulf %10, %10 : vector<4x256xf32>
    %12 = vector.shape_cast %11 : vector<4x256xf32> to vector<1x4x256xf32>
    %cst_3 = arith.constant dense<0.000000e+00> : vector<1xf32>
    %13 = vector.multi_reduction <add>, %12, %cst_3 [1, 2] : vector<1x4x256xf32> to vector<1xf32>
    %14 = vector.shape_cast %13 : vector<1xf32> to vector<1x1x1xf32>
    %15 = vector.extract %14[0, 0, 0] : f32 from vector<1x1x1xf32>
    %16 = vector.broadcast %15 : f32 to vector<1x1xf32>
    %cst_4 = arith.constant 9.765625E-4 : f32
    %17 = vector.broadcast %cst_4 : f32 to vector<1x1xf32>
    %18 = arith.mulf %16, %17 : vector<1x1xf32>
    %cst_5 = arith.constant 9.99999974E-6 : f32
    %19 = vector.broadcast %cst_5 : f32 to vector<1x1xf32>
    %20 = arith.addf %18, %19 : vector<1x1xf32>
    %21 = math.rsqrt %20 : vector<1x1xf32>
    %22 = vector.broadcast %21 : vector<1x1xf32> to vector<4x256xf32>
    %23 = arith.mulf %10, %22 : vector<4x256xf32>
    %c0_6 = arith.constant 0 : index
    %c0_7 = arith.constant 0 : index
    %c0_8 = arith.constant 0 : index
    %24 = vector.load %arg3[%c0_6, %c0_7, %c0_8] : memref<1x4x1xf32, #tpu.memory_space<vmem>>, vector<1x4x1xf32>
    %25 = vector.shape_cast %24 : vector<1x4x1xf32> to vector<4x1xf32>
    %26 = vector.broadcast %25 : vector<4x1xf32> to vector<4x256xf32>
    %27 = arith.mulf %23, %26 : vector<4x256xf32>
    %c0_9 = arith.constant 0 : index
    %c0_10 = arith.constant 0 : index
    %c0_11 = arith.constant 0 : index
    %28 = vector.load %arg4[%c0_9, %c0_10, %c0_11] : memref<1x4x1xf32, #tpu.memory_space<vmem>>, vector<1x4x1xf32>
    %29 = vector.shape_cast %28 : vector<1x4x1xf32> to vector<4x1xf32>
    %30 = vector.broadcast %29 : vector<4x1xf32> to vector<4x256xf32>
    %31 = arith.addf %27, %30 : vector<4x256xf32>
    %cst_12 = arith.constant 0.000000e+00 : f32
    %32 = vector.broadcast %cst_12 : f32 to vector<4x256xf32>
    %33 = arith.maximumf %31, %32 : vector<4x256xf32>
    %c0_13 = arith.constant 0 : index
    %c0_14 = arith.constant 0 : index
    %c0_15 = arith.constant 0 : index
    %34 = vector.load %arg5[%c0_13, %c0_14, %c0_15] : memref<1x4x256xf32, #tpu.memory_space<vmem>>, vector<1x4x256xf32>
    %35 = vector.shape_cast %34 : vector<1x4x256xf32> to vector<4x256xf32>
    %36 = vector.shape_cast %33 : vector<4x256xf32> to vector<1x4x256xf32>
    tpu.vector_store %arg5[%c0_13, %c0_14, %c0_15], %36 {strides = array<i32>} : memref<1x4x256xf32, #tpu.memory_space<vmem>>, vector<1x4x256xf32>,
    return
  }
  func.func @transform_0(%arg0: i32, %arg1: i32) -> (i32, i32, i32) {
    %c4_i32 = arith.constant 4 : i32
    %0 = arith.muli %arg0, %c4_i32 : i32
    %1 = arith.addi %0, %arg1 : i32
    %c0_i32 = arith.constant 0 : i32
    %c0_i32_0 = arith.constant 0 : i32
    %c0_i32_1 = arith.constant 0 : i32
    return %1, %c0_i32, %c0_i32_0 : i32, i32, i32
  }
  func.func @transform_1(%arg0: i32, %arg1: i32) -> (i32, i32, i32) {
    %c0_i32 = arith.constant 0 : i32
    %c0_i32_0 = arith.constant 0 : i32
    %c0_i32_1 = arith.constant 0 : i32
    return %arg1, %c0_i32, %c0_i32_0 : i32, i32, i32
  }
  func.func @transform_2(%arg0: i32, %arg1: i32) -> (i32, i32, i32) {
    %c0_i32 = arith.constant 0 : i32
    %c0_i32_0 = arith.constant 0 : i32
    %c0_i32_1 = arith.constant 0 : i32
    return %arg1, %c0_i32, %c0_i32_0 : i32, i32, i32
  }
  func.func @transform_3(%arg0: i32, %arg1: i32) -> (i32, i32, i32) {
    %c4_i32 = arith.constant 4 : i32
    %0 = arith.muli %arg0, %c4_i32 : i32
    %1 = arith.addi %0, %arg1 : i32
    %c0_i32 = arith.constant 0 : i32
    %c0_i32_0 = arith.constant 0 : i32
    %c0_i32_1 = arith.constant 0 : i32
    return %1, %c0_i32, %c0_i32_0 : i32, i32, i32
  }
}

module attributes {stable_mosaic.version = 11 : i64} {
  func.func @_mm_kernel_single(%arg0: i32, %arg1: memref<128x432xbf16, #tpu.memory_space<vmem>>, %arg2: memref<432x16xbf16, #tpu.memory_space<vmem>>, %arg3: memref<1x16xf32, #tpu.memory_space<vmem>>, %arg4: memref<128x16xf32, #tpu.memory_space<vmem>>) attributes {dimension_semantics = [#tpu.dimension_semantics<parallel>], iteration_bounds = array<i64: 1>, scalar_prefetch = 0 : i64, scratch_operands = 0 : i64, tpu.core_type = #tpu.core_type<tc>, window_params = [{transform_indices = @transform_0, window_bounds = array<i64: 128, 432>}, {pipeline_mode = #tpu.pipeline_mode<synchronous>, transform_indices = @transform_1, window_bounds = array<i64: 432, 16>}, {pipeline_mode = #tpu.pipeline_mode<synchronous>, transform_indices = @transform_2, window_bounds = array<i64: 1, 16>}, {transform_indices = @transform_3, window_bounds = array<i64: 128, 16>}]} {
    %c0 = arith.constant 0 : index
    %c0_0 = arith.constant 0 : index
    %0 = vector.load %arg1[%c0, %c0_0] : memref<128x432xbf16, #tpu.memory_space<vmem>>, vector<128x432xbf16>
    %c0_1 = arith.constant 0 : index
    %c0_2 = arith.constant 0 : index
    %1 = vector.load %arg2[%c0_1, %c0_2] : memref<432x16xbf16, #tpu.memory_space<vmem>>, vector<432x16xbf16>
    %cst = arith.constant dense<0.000000e+00> : vector<128x16xf32>
    %2 = tpu.matmul %0, %1, %cst {dimension_numbers = #tpu.dot_dimension_numbers<[1], [0], [0], [1], [0, 0, 1, 1], [], []>} : vector<128x432xbf16>, vector<432x16xbf16>, vector<128x16xf32> -> vector<128x16xf32>
    %c0_3 = arith.constant 0 : index
    %c0_4 = arith.constant 0 : index
    %3 = vector.load %arg3[%c0_3, %c0_4] : memref<1x16xf32, #tpu.memory_space<vmem>>, vector<1x16xf32>
    %4 = vector.broadcast %3 : vector<1x16xf32> to vector<128x16xf32>
    %5 = arith.addf %2, %4 : vector<128x16xf32>
    %cst_5 = arith.constant 0.000000e+00 : f32
    %6 = vector.broadcast %cst_5 : f32 to vector<128x16xf32>
    %7 = arith.maximumf %5, %6 : vector<128x16xf32>
    %c0_6 = arith.constant 0 : index
    %c0_7 = arith.constant 0 : index
    %8 = vector.load %arg4[%c0_6, %c0_7] : memref<128x16xf32, #tpu.memory_space<vmem>>, vector<128x16xf32>
    tpu.vector_store %arg4[%c0_6, %c0_7], %7 {strides = array<i32>} : memref<128x16xf32, #tpu.memory_space<vmem>>, vector<128x16xf32>,
    return
  }
  func.func @transform_0(%arg0: i32) -> (i32, i32) {
    %c0_i32 = arith.constant 0 : i32
    %c0_i32_0 = arith.constant 0 : i32
    return %arg0, %c0_i32 : i32, i32
  }
  func.func @transform_1(%arg0: i32) -> (i32, i32) {
    %c0_i32 = arith.constant 0 : i32
    %c0_i32_0 = arith.constant 0 : i32
    %c0_i32_1 = arith.constant 0 : i32
    return %c0_i32, %c0_i32_0 : i32, i32
  }
  func.func @transform_2(%arg0: i32) -> (i32, i32) {
    %c0_i32 = arith.constant 0 : i32
    %c0_i32_0 = arith.constant 0 : i32
    %c0_i32_1 = arith.constant 0 : i32
    return %c0_i32, %c0_i32_0 : i32, i32
  }
  func.func @transform_3(%arg0: i32) -> (i32, i32) {
    %c0_i32 = arith.constant 0 : i32
    %c0_i32_0 = arith.constant 0 : i32
    return %arg0, %c0_i32 : i32, i32
  }
}

module attributes {stable_mosaic.version = 11 : i64} {
  func.func @_mm_kernel_single(%arg0: i32, %arg1: memref<128x144xbf16, #tpu.memory_space<vmem>>, %arg2: memref<144x68xbf16, #tpu.memory_space<vmem>>, %arg3: memref<1x68xf32, #tpu.memory_space<vmem>>, %arg4: memref<128x68xf32, #tpu.memory_space<vmem>>) attributes {dimension_semantics = [#tpu.dimension_semantics<parallel>], iteration_bounds = array<i64: 1>, scalar_prefetch = 0 : i64, scratch_operands = 0 : i64, tpu.core_type = #tpu.core_type<tc>, window_params = [{transform_indices = @transform_0, window_bounds = array<i64: 128, 144>}, {pipeline_mode = #tpu.pipeline_mode<synchronous>, transform_indices = @transform_1, window_bounds = array<i64: 144, 68>}, {pipeline_mode = #tpu.pipeline_mode<synchronous>, transform_indices = @transform_2, window_bounds = array<i64: 1, 68>}, {transform_indices = @transform_3, window_bounds = array<i64: 128, 68>}]} {
    %c0 = arith.constant 0 : index
    %c0_0 = arith.constant 0 : index
    %0 = vector.load %arg1[%c0, %c0_0] : memref<128x144xbf16, #tpu.memory_space<vmem>>, vector<128x144xbf16>
    %c0_1 = arith.constant 0 : index
    %c0_2 = arith.constant 0 : index
    %1 = vector.load %arg2[%c0_1, %c0_2] : memref<144x68xbf16, #tpu.memory_space<vmem>>, vector<144x68xbf16>
    %cst = arith.constant dense<0.000000e+00> : vector<128x68xf32>
    %2 = tpu.matmul %0, %1, %cst {dimension_numbers = #tpu.dot_dimension_numbers<[1], [0], [0], [1], [0, 0, 1, 1], [], []>} : vector<128x144xbf16>, vector<144x68xbf16>, vector<128x68xf32> -> vector<128x68xf32>
    %c0_3 = arith.constant 0 : index
    %c0_4 = arith.constant 0 : index
    %3 = vector.load %arg3[%c0_3, %c0_4] : memref<1x68xf32, #tpu.memory_space<vmem>>, vector<1x68xf32>
    %4 = vector.broadcast %3 : vector<1x68xf32> to vector<128x68xf32>
    %5 = arith.addf %2, %4 : vector<128x68xf32>
    %c0_5 = arith.constant 0 : index
    %c0_6 = arith.constant 0 : index
    %6 = vector.load %arg4[%c0_5, %c0_6] : memref<128x68xf32, #tpu.memory_space<vmem>>, vector<128x68xf32>
    tpu.vector_store %arg4[%c0_5, %c0_6], %5 {strides = array<i32>} : memref<128x68xf32, #tpu.memory_space<vmem>>, vector<128x68xf32>,
    return
  }
  func.func @transform_0(%arg0: i32) -> (i32, i32) {
    %c0_i32 = arith.constant 0 : i32
    %c0_i32_0 = arith.constant 0 : i32
    return %arg0, %c0_i32 : i32, i32
  }
  func.func @transform_1(%arg0: i32) -> (i32, i32) {
    %c0_i32 = arith.constant 0 : i32
    %c0_i32_0 = arith.constant 0 : i32
    %c0_i32_1 = arith.constant 0 : i32
    return %c0_i32, %c0_i32_0 : i32, i32
  }
  func.func @transform_2(%arg0: i32) -> (i32, i32) {
    %c0_i32 = arith.constant 0 : i32
    %c0_i32_0 = arith.constant 0 : i32
    %c0_i32_1 = arith.constant 0 : i32
    return %c0_i32, %c0_i32_0 : i32, i32
  }
  func.func @transform_3(%arg0: i32) -> (i32, i32) {
    %c0_i32 = arith.constant 0 : i32
    %c0_i32_0 = arith.constant 0 : i32
    return %arg0, %c0_i32 : i32, i32
  }
}

module attributes {stable_mosaic.version = 11 : i64} {
  func.func @_groupnorm_act_kernel(%arg0: i32, %arg1: i32, %arg2: memref<1x2x64xf32, #tpu.memory_space<vmem>>, %arg3: memref<1x2x1xf32, #tpu.memory_space<vmem>>, %arg4: memref<1x2x1xf32, #tpu.memory_space<vmem>>, %arg5: memref<1x2x64xf32, #tpu.memory_space<vmem>>) attributes {dimension_semantics = [#tpu.dimension_semantics<parallel>, #tpu.dimension_semantics<parallel>], iteration_bounds = array<i64: 2, 9>, scalar_prefetch = 0 : i64, scratch_operands = 0 : i64, tpu.core_type = #tpu.core_type<tc>, window_params = [{transform_indices = @transform_0, window_bounds = array<i64: 1, 2, 64>}, {transform_indices = @transform_1, window_bounds = array<i64: 1, 2, 1>}, {transform_indices = @transform_2, window_bounds = array<i64: 1, 2, 1>}, {transform_indices = @transform_3, window_bounds = array<i64: 1, 2, 64>}]} {
    %c0 = arith.constant 0 : index
    %c0_0 = arith.constant 0 : index
    %c0_1 = arith.constant 0 : index
    %0 = vector.load %arg2[%c0, %c0_0, %c0_1] : memref<1x2x64xf32, #tpu.memory_space<vmem>>, vector<1x2x64xf32>
    %1 = vector.shape_cast %0 : vector<1x2x64xf32> to vector<2x64xf32>
    %2 = vector.shape_cast %1 : vector<2x64xf32> to vector<1x2x64xf32>
    %cst = arith.constant dense<0.000000e+00> : vector<1xf32>
    %3 = vector.multi_reduction <add>, %2, %cst [1, 2] : vector<1x2x64xf32> to vector<1xf32>
    %4 = vector.shape_cast %3 : vector<1xf32> to vector<1x1x1xf32>
    %5 = vector.extract %4[0, 0, 0] : f32 from vector<1x1x1xf32>
    %6 = vector.broadcast %5 : f32 to vector<1x1xf32>
    %cst_2 = arith.constant 7.812500e-03 : f32
    %7 = vector.broadcast %cst_2 : f32 to vector<1x1xf32>
    %8 = arith.mulf %6, %7 : vector<1x1xf32>
    %9 = vector.broadcast %8 : vector<1x1xf32> to vector<2x64xf32>
    %10 = arith.subf %1, %9 : vector<2x64xf32>
    %11 = arith.mulf %10, %10 : vector<2x64xf32>
    %12 = vector.shape_cast %11 : vector<2x64xf32> to vector<1x2x64xf32>
    %cst_3 = arith.constant dense<0.000000e+00> : vector<1xf32>
    %13 = vector.multi_reduction <add>, %12, %cst_3 [1, 2] : vector<1x2x64xf32> to vector<1xf32>
    %14 = vector.shape_cast %13 : vector<1xf32> to vector<1x1x1xf32>
    %15 = vector.extract %14[0, 0, 0] : f32 from vector<1x1x1xf32>
    %16 = vector.broadcast %15 : f32 to vector<1x1xf32>
    %cst_4 = arith.constant 7.812500e-03 : f32
    %17 = vector.broadcast %cst_4 : f32 to vector<1x1xf32>
    %18 = arith.mulf %16, %17 : vector<1x1xf32>
    %cst_5 = arith.constant 9.99999974E-6 : f32
    %19 = vector.broadcast %cst_5 : f32 to vector<1x1xf32>
    %20 = arith.addf %18, %19 : vector<1x1xf32>
    %21 = math.rsqrt %20 : vector<1x1xf32>
    %22 = vector.broadcast %21 : vector<1x1xf32> to vector<2x64xf32>
    %23 = arith.mulf %10, %22 : vector<2x64xf32>
    %c0_6 = arith.constant 0 : index
    %c0_7 = arith.constant 0 : index
    %c0_8 = arith.constant 0 : index
    %24 = vector.load %arg3[%c0_6, %c0_7, %c0_8] : memref<1x2x1xf32, #tpu.memory_space<vmem>>, vector<1x2x1xf32>
    %25 = vector.shape_cast %24 : vector<1x2x1xf32> to vector<2x1xf32>
    %26 = vector.broadcast %25 : vector<2x1xf32> to vector<2x64xf32>
    %27 = arith.mulf %23, %26 : vector<2x64xf32>
    %c0_9 = arith.constant 0 : index
    %c0_10 = arith.constant 0 : index
    %c0_11 = arith.constant 0 : index
    %28 = vector.load %arg4[%c0_9, %c0_10, %c0_11] : memref<1x2x1xf32, #tpu.memory_space<vmem>>, vector<1x2x1xf32>
    %29 = vector.shape_cast %28 : vector<1x2x1xf32> to vector<2x1xf32>
    %30 = vector.broadcast %29 : vector<2x1xf32> to vector<2x64xf32>
    %31 = arith.addf %27, %30 : vector<2x64xf32>
    %32 = math.tanh %31 : vector<2x64xf32>
    %c0_12 = arith.constant 0 : index
    %c0_13 = arith.constant 0 : index
    %c0_14 = arith.constant 0 : index
    %33 = vector.load %arg5[%c0_12, %c0_13, %c0_14] : memref<1x2x64xf32, #tpu.memory_space<vmem>>, vector<1x2x64xf32>
    %34 = vector.shape_cast %33 : vector<1x2x64xf32> to vector<2x64xf32>
    %35 = vector.shape_cast %32 : vector<2x64xf32> to vector<1x2x64xf32>
    tpu.vector_store %arg5[%c0_12, %c0_13, %c0_14], %35 {strides = array<i32>} : memref<1x2x64xf32, #tpu.memory_space<vmem>>, vector<1x2x64xf32>,
    return
  }
  func.func @transform_0(%arg0: i32, %arg1: i32) -> (i32, i32, i32) {
    %c9_i32 = arith.constant 9 : i32
    %0 = arith.muli %arg0, %c9_i32 : i32
    %1 = arith.addi %0, %arg1 : i32
    %c0_i32 = arith.constant 0 : i32
    %c0_i32_0 = arith.constant 0 : i32
    %c0_i32_1 = arith.constant 0 : i32
    return %1, %c0_i32, %c0_i32_0 : i32, i32, i32
  }
  func.func @transform_1(%arg0: i32, %arg1: i32) -> (i32, i32, i32) {
    %c0_i32 = arith.constant 0 : i32
    %c0_i32_0 = arith.constant 0 : i32
    %c0_i32_1 = arith.constant 0 : i32
    return %arg1, %c0_i32, %c0_i32_0 : i32, i32, i32
  }
  func.func @transform_2(%arg0: i32, %arg1: i32) -> (i32, i32, i32) {
    %c0_i32 = arith.constant 0 : i32
    %c0_i32_0 = arith.constant 0 : i32
    %c0_i32_1 = arith.constant 0 : i32
    return %arg1, %c0_i32, %c0_i32_0 : i32, i32, i32
  }
  func.func @transform_3(%arg0: i32, %arg1: i32) -> (i32, i32, i32) {
    %c9_i32 = arith.constant 9 : i32
    %0 = arith.muli %arg0, %c9_i32 : i32
    %1 = arith.addi %0, %arg1 : i32
    %c0_i32 = arith.constant 0 : i32
    %c0_i32_0 = arith.constant 0 : i32
    %c0_i32_1 = arith.constant 0 : i32
    return %1, %c0_i32, %c0_i32_0 : i32, i32, i32
  }
}

module attributes {stable_mosaic.version = 11 : i64} {
  func.func @_mm_kernel_single(%arg0: i32, %arg1: memref<128x144xbf16, #tpu.memory_space<vmem>>, %arg2: memref<144x32xbf16, #tpu.memory_space<vmem>>, %arg3: memref<1x32xf32, #tpu.memory_space<vmem>>, %arg4: memref<128x32xf32, #tpu.memory_space<vmem>>) attributes {dimension_semantics = [#tpu.dimension_semantics<parallel>], iteration_bounds = array<i64: 1>, scalar_prefetch = 0 : i64, scratch_operands = 0 : i64, tpu.core_type = #tpu.core_type<tc>, window_params = [{transform_indices = @transform_0, window_bounds = array<i64: 128, 144>}, {pipeline_mode = #tpu.pipeline_mode<synchronous>, transform_indices = @transform_1, window_bounds = array<i64: 144, 32>}, {pipeline_mode = #tpu.pipeline_mode<synchronous>, transform_indices = @transform_2, window_bounds = array<i64: 1, 32>}, {transform_indices = @transform_3, window_bounds = array<i64: 128, 32>}]} {
    %c0 = arith.constant 0 : index
    %c0_0 = arith.constant 0 : index
    %0 = vector.load %arg1[%c0, %c0_0] : memref<128x144xbf16, #tpu.memory_space<vmem>>, vector<128x144xbf16>
    %c0_1 = arith.constant 0 : index
    %c0_2 = arith.constant 0 : index
    %1 = vector.load %arg2[%c0_1, %c0_2] : memref<144x32xbf16, #tpu.memory_space<vmem>>, vector<144x32xbf16>
    %cst = arith.constant dense<0.000000e+00> : vector<128x32xf32>
    %2 = tpu.matmul %0, %1, %cst {dimension_numbers = #tpu.dot_dimension_numbers<[1], [0], [0], [1], [0, 0, 1, 1], [], []>} : vector<128x144xbf16>, vector<144x32xbf16>, vector<128x32xf32> -> vector<128x32xf32>
    %c0_3 = arith.constant 0 : index
    %c0_4 = arith.constant 0 : index
    %3 = vector.load %arg3[%c0_3, %c0_4] : memref<1x32xf32, #tpu.memory_space<vmem>>, vector<1x32xf32>
    %4 = vector.broadcast %3 : vector<1x32xf32> to vector<128x32xf32>
    %5 = arith.addf %2, %4 : vector<128x32xf32>
    %c0_5 = arith.constant 0 : index
    %c0_6 = arith.constant 0 : index
    %6 = vector.load %arg4[%c0_5, %c0_6] : memref<128x32xf32, #tpu.memory_space<vmem>>, vector<128x32xf32>
    tpu.vector_store %arg4[%c0_5, %c0_6], %5 {strides = array<i32>} : memref<128x32xf32, #tpu.memory_space<vmem>>, vector<128x32xf32>,
    return
  }
  func.func @transform_0(%arg0: i32) -> (i32, i32) {
    %c0_i32 = arith.constant 0 : i32
    %c0_i32_0 = arith.constant 0 : i32
    return %arg0, %c0_i32 : i32, i32
  }
  func.func @transform_1(%arg0: i32) -> (i32, i32) {
    %c0_i32 = arith.constant 0 : i32
    %c0_i32_0 = arith.constant 0 : i32
    %c0_i32_1 = arith.constant 0 : i32
    return %c0_i32, %c0_i32_0 : i32, i32
  }
  func.func @transform_2(%arg0: i32) -> (i32, i32) {
    %c0_i32 = arith.constant 0 : i32
    %c0_i32_0 = arith.constant 0 : i32
    %c0_i32_1 = arith.constant 0 : i32
    return %c0_i32, %c0_i32_0 : i32, i32
  }
  func.func @transform_3(%arg0: i32) -> (i32, i32) {
    %c0_i32 = arith.constant 0 : i32
    %c0_i32_0 = arith.constant 0 : i32
    return %arg0, %c0_i32 : i32, i32
  }
}

module attributes {stable_mosaic.version = 11 : i64} {
  func.func @_groupnorm_act_kernel(%arg0: i32, %arg1: i32, %arg2: memref<1x4x64xf32, #tpu.memory_space<vmem>>, %arg3: memref<1x4x1xf32, #tpu.memory_space<vmem>>, %arg4: memref<1x4x1xf32, #tpu.memory_space<vmem>>, %arg5: memref<1x4x64xf32, #tpu.memory_space<vmem>>) attributes {dimension_semantics = [#tpu.dimension_semantics<parallel>, #tpu.dimension_semantics<parallel>], iteration_bounds = array<i64: 2, 8>, scalar_prefetch = 0 : i64, scratch_operands = 0 : i64, tpu.core_type = #tpu.core_type<tc>, window_params = [{transform_indices = @transform_0, window_bounds = array<i64: 1, 4, 64>}, {transform_indices = @transform_1, window_bounds = array<i64: 1, 4, 1>}, {transform_indices = @transform_2, window_bounds = array<i64: 1, 4, 1>}, {transform_indices = @transform_3, window_bounds = array<i64: 1, 4, 64>}]} {
    %c0 = arith.constant 0 : index
    %c0_0 = arith.constant 0 : index
    %c0_1 = arith.constant 0 : index
    %0 = vector.load %arg2[%c0, %c0_0, %c0_1] : memref<1x4x64xf32, #tpu.memory_space<vmem>>, vector<1x4x64xf32>
    %1 = vector.shape_cast %0 : vector<1x4x64xf32> to vector<4x64xf32>
    %2 = vector.shape_cast %1 : vector<4x64xf32> to vector<1x4x64xf32>
    %cst = arith.constant dense<0.000000e+00> : vector<1xf32>
    %3 = vector.multi_reduction <add>, %2, %cst [1, 2] : vector<1x4x64xf32> to vector<1xf32>
    %4 = vector.shape_cast %3 : vector<1xf32> to vector<1x1x1xf32>
    %5 = vector.extract %4[0, 0, 0] : f32 from vector<1x1x1xf32>
    %6 = vector.broadcast %5 : f32 to vector<1x1xf32>
    %cst_2 = arith.constant 3.906250e-03 : f32
    %7 = vector.broadcast %cst_2 : f32 to vector<1x1xf32>
    %8 = arith.mulf %6, %7 : vector<1x1xf32>
    %9 = vector.broadcast %8 : vector<1x1xf32> to vector<4x64xf32>
    %10 = arith.subf %1, %9 : vector<4x64xf32>
    %11 = arith.mulf %10, %10 : vector<4x64xf32>
    %12 = vector.shape_cast %11 : vector<4x64xf32> to vector<1x4x64xf32>
    %cst_3 = arith.constant dense<0.000000e+00> : vector<1xf32>
    %13 = vector.multi_reduction <add>, %12, %cst_3 [1, 2] : vector<1x4x64xf32> to vector<1xf32>
    %14 = vector.shape_cast %13 : vector<1xf32> to vector<1x1x1xf32>
    %15 = vector.extract %14[0, 0, 0] : f32 from vector<1x1x1xf32>
    %16 = vector.broadcast %15 : f32 to vector<1x1xf32>
    %cst_4 = arith.constant 3.906250e-03 : f32
    %17 = vector.broadcast %cst_4 : f32 to vector<1x1xf32>
    %18 = arith.mulf %16, %17 : vector<1x1xf32>
    %cst_5 = arith.constant 9.99999974E-6 : f32
    %19 = vector.broadcast %cst_5 : f32 to vector<1x1xf32>
    %20 = arith.addf %18, %19 : vector<1x1xf32>
    %21 = math.rsqrt %20 : vector<1x1xf32>
    %22 = vector.broadcast %21 : vector<1x1xf32> to vector<4x64xf32>
    %23 = arith.mulf %10, %22 : vector<4x64xf32>
    %c0_6 = arith.constant 0 : index
    %c0_7 = arith.constant 0 : index
    %c0_8 = arith.constant 0 : index
    %24 = vector.load %arg3[%c0_6, %c0_7, %c0_8] : memref<1x4x1xf32, #tpu.memory_space<vmem>>, vector<1x4x1xf32>
    %25 = vector.shape_cast %24 : vector<1x4x1xf32> to vector<4x1xf32>
    %26 = vector.broadcast %25 : vector<4x1xf32> to vector<4x64xf32>
    %27 = arith.mulf %23, %26 : vector<4x64xf32>
    %c0_9 = arith.constant 0 : index
    %c0_10 = arith.constant 0 : index
    %c0_11 = arith.constant 0 : index
    %28 = vector.load %arg4[%c0_9, %c0_10, %c0_11] : memref<1x4x1xf32, #tpu.memory_space<vmem>>, vector<1x4x1xf32>
    %29 = vector.shape_cast %28 : vector<1x4x1xf32> to vector<4x1xf32>
    %30 = vector.broadcast %29 : vector<4x1xf32> to vector<4x64xf32>
    %31 = arith.addf %27, %30 : vector<4x64xf32>
    %cst_12 = arith.constant 0.000000e+00 : f32
    %32 = vector.broadcast %cst_12 : f32 to vector<4x64xf32>
    %33 = arith.maximumf %31, %32 : vector<4x64xf32>
    %c0_13 = arith.constant 0 : index
    %c0_14 = arith.constant 0 : index
    %c0_15 = arith.constant 0 : index
    %34 = vector.load %arg5[%c0_13, %c0_14, %c0_15] : memref<1x4x64xf32, #tpu.memory_space<vmem>>, vector<1x4x64xf32>
    %35 = vector.shape_cast %34 : vector<1x4x64xf32> to vector<4x64xf32>
    %36 = vector.shape_cast %33 : vector<4x64xf32> to vector<1x4x64xf32>
    tpu.vector_store %arg5[%c0_13, %c0_14, %c0_15], %36 {strides = array<i32>} : memref<1x4x64xf32, #tpu.memory_space<vmem>>, vector<1x4x64xf32>,
    return
  }
  func.func @transform_0(%arg0: i32, %arg1: i32) -> (i32, i32, i32) {
    %c8_i32 = arith.constant 8 : i32
    %0 = arith.muli %arg0, %c8_i32 : i32
    %1 = arith.addi %0, %arg1 : i32
    %c0_i32 = arith.constant 0 : i32
    %c0_i32_0 = arith.constant 0 : i32
    %c0_i32_1 = arith.constant 0 : i32
    return %1, %c0_i32, %c0_i32_0 : i32, i32, i32
  }
  func.func @transform_1(%arg0: i32, %arg1: i32) -> (i32, i32, i32) {
    %c0_i32 = arith.constant 0 : i32
    %c0_i32_0 = arith.constant 0 : i32
    %c0_i32_1 = arith.constant 0 : i32
    return %arg1, %c0_i32, %c0_i32_0 : i32, i32, i32
  }
  func.func @transform_2(%arg0: i32, %arg1: i32) -> (i32, i32, i32) {
    %c0_i32 = arith.constant 0 : i32
    %c0_i32_0 = arith.constant 0 : i32
    %c0_i32_1 = arith.constant 0 : i32
    return %arg1, %c0_i32, %c0_i32_0 : i32, i32, i32
  }
  func.func @transform_3(%arg0: i32, %arg1: i32) -> (i32, i32, i32) {
    %c8_i32 = arith.constant 8 : i32
    %0 = arith.muli %arg0, %c8_i32 : i32
    %1 = arith.addi %0, %arg1 : i32
    %c0_i32 = arith.constant 0 : i32
    %c0_i32_0 = arith.constant 0 : i32
    %c0_i32_1 = arith.constant 0 : i32
    return %1, %c0_i32, %c0_i32_0 : i32, i32, i32
  }
}

module attributes {stable_mosaic.version = 11 : i64} {
  func.func @_mm_kernel_single(%arg0: i32, %arg1: memref<32x864xbf16, #tpu.memory_space<vmem>>, %arg2: memref<864x32xbf16, #tpu.memory_space<vmem>>, %arg3: memref<1x32xf32, #tpu.memory_space<vmem>>, %arg4: memref<32x32xf32, #tpu.memory_space<vmem>>) attributes {dimension_semantics = [#tpu.dimension_semantics<parallel>], iteration_bounds = array<i64: 1>, scalar_prefetch = 0 : i64, scratch_operands = 0 : i64, tpu.core_type = #tpu.core_type<tc>, window_params = [{transform_indices = @transform_0, window_bounds = array<i64: 32, 864>}, {pipeline_mode = #tpu.pipeline_mode<synchronous>, transform_indices = @transform_1, window_bounds = array<i64: 864, 32>}, {pipeline_mode = #tpu.pipeline_mode<synchronous>, transform_indices = @transform_2, window_bounds = array<i64: 1, 32>}, {transform_indices = @transform_3, window_bounds = array<i64: 32, 32>}]} {
    %c0 = arith.constant 0 : index
    %c0_0 = arith.constant 0 : index
    %0 = vector.load %arg1[%c0, %c0_0] : memref<32x864xbf16, #tpu.memory_space<vmem>>, vector<32x864xbf16>
    %c0_1 = arith.constant 0 : index
    %c0_2 = arith.constant 0 : index
    %1 = vector.load %arg2[%c0_1, %c0_2] : memref<864x32xbf16, #tpu.memory_space<vmem>>, vector<864x32xbf16>
    %cst = arith.constant dense<0.000000e+00> : vector<32x32xf32>
    %2 = tpu.matmul %0, %1, %cst {dimension_numbers = #tpu.dot_dimension_numbers<[1], [0], [0], [1], [0, 0, 1, 1], [], []>} : vector<32x864xbf16>, vector<864x32xbf16>, vector<32x32xf32> -> vector<32x32xf32>
    %c0_3 = arith.constant 0 : index
    %c0_4 = arith.constant 0 : index
    %3 = vector.load %arg3[%c0_3, %c0_4] : memref<1x32xf32, #tpu.memory_space<vmem>>, vector<1x32xf32>
    %4 = vector.broadcast %3 : vector<1x32xf32> to vector<32x32xf32>
    %5 = arith.addf %2, %4 : vector<32x32xf32>
    %cst_5 = arith.constant 0.000000e+00 : f32
    %6 = vector.broadcast %cst_5 : f32 to vector<32x32xf32>
    %7 = arith.maximumf %5, %6 : vector<32x32xf32>
    %c0_6 = arith.constant 0 : index
    %c0_7 = arith.constant 0 : index
    %8 = vector.load %arg4[%c0_6, %c0_7] : memref<32x32xf32, #tpu.memory_space<vmem>>, vector<32x32xf32>
    tpu.vector_store %arg4[%c0_6, %c0_7], %7 {strides = array<i32>} : memref<32x32xf32, #tpu.memory_space<vmem>>, vector<32x32xf32>,
    return
  }
  func.func @transform_0(%arg0: i32) -> (i32, i32) {
    %c0_i32 = arith.constant 0 : i32
    %c0_i32_0 = arith.constant 0 : i32
    return %arg0, %c0_i32 : i32, i32
  }
  func.func @transform_1(%arg0: i32) -> (i32, i32) {
    %c0_i32 = arith.constant 0 : i32
    %c0_i32_0 = arith.constant 0 : i32
    %c0_i32_1 = arith.constant 0 : i32
    return %c0_i32, %c0_i32_0 : i32, i32
  }
  func.func @transform_2(%arg0: i32) -> (i32, i32) {
    %c0_i32 = arith.constant 0 : i32
    %c0_i32_0 = arith.constant 0 : i32
    %c0_i32_1 = arith.constant 0 : i32
    return %c0_i32, %c0_i32_0 : i32, i32
  }
  func.func @transform_3(%arg0: i32) -> (i32, i32) {
    %c0_i32 = arith.constant 0 : i32
    %c0_i32_0 = arith.constant 0 : i32
    return %arg0, %c0_i32 : i32, i32
  }
}

</mosaic_0001>

<bundles_post_ra>
// kernel: dsc_stem.17
= control target key start
LH: loop header
LB: loop body
LE: loop exit
PB: predicated region body
PF: predicated region fallthrough
CT: control target
= control target key end

     0   :  { %s556_s12 = smov 0   ;;  %s558_s13 = smov 0   ;;  %s633_s0 = inlined_call_operand.vmem [shape: f32[18,2,256], index: 0, kind: input, shape index: {}]   ;;  %s634_s1 = inlined_call_operand.vmem [shape: f32[9,2,1], index: 1, kind: input, shape index: {}]   ;;  %s635_s2 = inlined_call_operand.vmem [shape: f32[9,2,1], index: 2, kind: input, shape index: {}]   ;;  %s636_s3 = inlined_call_operand.vmem [shape: f32[18,2,256], index: 3, kind: output, shape index: {}]  }
   0x1   :  { %s560_s14 = smov 0   ;;  %s562_s15 = smov 0  }
   0x2   :  { %s564_s16 = smov 0  }
   0x3 LB: > { %s22_s17 = sadd.s32 1, %s523_s14  ;;  %s25_s18 = sadd.s32 1, %s527_s15  ;;  %s531_s16 = sphi %s564_s16, %s13_s16   ;;  %s527_s15 = sphi %s562_s15, %s640_s15   ;;  %s523_s14 = sphi %s560_s14, %s639_s14   ;;  %s519_s13 = sphi %s558_s13, %s638_s13   ;;  %s515_s12 = sphi %s556_s12, %s637_s12  }
   0x4   : > { %p23_p0 = scmp.ge.s32.totalorder %s22_s17, 9  ;;  %p429_p1 = scmp.ge.s32.totalorder %s531_s16, 1 }
   0x5   : > { %p179_p2 = scmp.lt.s32.totalorder %s531_s16, 19 }
   0x6   : > { %s642_s17 = smov (%p23_p0, %s22_s17), 0  ;;  %s644_s18 = smov (!%p23_p0, %s25_s18), %s527_s15 }
   0x7   : > { %p180_p3 = pnand %p429_p1, %p179_p2  ;;  %p27_p4 = scmp.ge.s32.totalorder %s644_s18, 2 }
   0x8   : > { %s215_s19 = smul.u32 (!%p180_p3), 9, %s519_s13  ;;  %v246_v0 = vlaneseq (!%p180_p3)  ;;  %v533_v1 = vmov (!%p180_p3), 1983009808   ;;  %vm253_vm0 = vcmask (!%p180_p3), 1041408   ;;  %p224_p6 = scmp.lt.s32.totalorder (!%p180_p3), %s515_s12, 8  ;;  %v534_v12 = vmov (!%p180_p3), 0  }
   0x9   : > { %s646_s18 = smov (%p27_p4, %s644_s18), 0  ;;  %183 = sbr.rel (%p180_p3) target bundleno = 483 (0x1e3), region = 32 }
   0xa   : > { %v244_v2 = vunpack.c.l.s4 (!%p180_p3), %v533_v1  ;;  %s216_s20 = sadd.s32 (!%p180_p3), %s515_s12, %s215_s19  ;;  %v589_v3 = vshrl.u32 (!%p180_p3), %v246_v0, 7  ;;  %487 = vset.pattern.permute.xlu1 (!%p180_p3), %v534_v12  ;;  %488 = vset.pattern.permute.xlu0 (!%p180_p3), %v534_v12  ;;  %v535_v41 = vmov (!%p180_p3), 269488144  }
   0xb   : > { %p217_p5 = scmp.lt.s32.totalorder (!%p180_p3), %s216_s20, 17  ;;  %v304_v42 = vunpack.c.l.s4 (!%p180_p3), %v535_v41 }
   0xc   : > { %v245_v4 = vunpack.c.0.s8 (!%p180_p3), %v244_v2 }
   0xd   : > { %v305_v43 = vunpack.c.0.s8 (!%p180_p3), %v304_v42 }
   0xe   : > { %v248_v5 = vsub.s32 (!%p180_p3), %v245_v4, %v589_v3 }
   0xf   : > { %v308_v45 = vsub.s32 (!%p180_p3), %v305_v43, %v589_v3 }
  0x10   : > { %s648_s20 = smov (!%p217_p5, %s216_s20), 17  ;;  %s650_s12 = smov (!%p224_p6, %s515_s12), 8 }
  0x11   : > { %s438_s21 = sshll.u32 %s648_s20, 2  ;;  %s432_s25 = sshll.u32 %s650_s12, 1 }
  0x12   : > { %s221_s24 = scalar_lea.vmem %s633_s0, %s438_s21  ;;  %s227_s28 = scalar_lea.vmem %s634_s1, %s432_s25 }
  0x13   : > { %v241_v6 = vld [vmem:[%s221_s24] sm:$0xf]  ;;  %s231_s4 = scalar_lea.vmem %s635_s2, %s432_s25  ;;  %s238_s9 = scalar_lea.vmem %s636_s3, %s438_s21 }
  0x14   : > { %v249_v7 = vrot.slane %v241_v6, %v248_v5  ;;  %v298_v13 = vld [vmem:[%s227_s28] sm:$0x3] }
  0x15   : > { %301 = vperm.xlu1 %487, %v298_v13   ;;  %v312_v14 = vld [vmem:[%s231_s4] sm:$0x3] }
  0x16   : > { %v250_v8 = vcombine.high %v249_v7, %v249_v7  ;;  %v254_v9 = vsel %vm253_vm0, %v249_v7, 0.0 }
  0x18   : > { %v255_v10 = vsel %vm253_vm0, %v250_v8, 0.0 }
  0x19   : > { %v256_v11 = vadd.f32 %v255_v10, %v254_v9  ;;  %315 = vperm.xlu1 %487, %v312_v14  }
  0x1b   : > { %257 = vadd.xlane.f32.xlu0 %v256_v11 }
  0x94   : > { %v302_v44 = vpop.permute.xlu1 %301 }
  0x95   : > { %v309_v49 = vrot.slane %v302_v44, %v308_v45 }
  0x98   : > { %v316_v47 = vpop.permute.xlu1 %315 }
  0x99   : > { %v323_v51 = vrot.slane %v316_v47, %v308_v45 }
  0xa8   : > { %v258_v15 = vpop.xlane.xlu0 %257 }
  0xa9   : > { %v259_v16 = vrot.slane %v258_v15, 4 }
  0xab   : > { %v260_v17 = vadd.f32 %v259_v16, %v258_v15 }
  0xad   : > { %v261_v18 = vrot.slane %v260_v17, 2 }
  0xaf   : > { %v262_v19 = vadd.f32 %v261_v18, %v260_v17 }
  0xb1   : > { %v263_v20 = vrot.slane %v262_v19, 1 }
  0xb3   : > { %v264_v21 = vadd.f32 %v263_v20, %v262_v19 }
  0xb5   : > { %440 = vpush %v264_v21 }
  0xe6   : > { %s441_s5 = spop %440 }
  0xe7   : > { %v266_v22 = vstv %s441_s5 }
  0xe8   : > { %v267_v23 = vmul.f32 0.001953125, %v266_v22 }
  0xea   : > { %v268_v24 = vsub.f32 %v241_v6, %v267_v23 }
  0xec   : > { %v269_v25 = vmul.f32 %v268_v24, %v268_v24 }
  0xee   : > { %v277_v26 = vrot.slane %v269_v25, %v248_v5 }
  0xf0   : > { %v278_v27 = vcombine.high %v277_v26, %v277_v26  ;;  %v281_v28 = vsel %vm253_vm0, %v277_v26, 0.0 }
  0xf2   : > { %v282_v29 = vsel %vm253_vm0, %v278_v27, 0.0 }
  0xf3   : > { %v283_v30 = vadd.f32 %v282_v29, %v281_v28 }
  0xf5   : > { %284 = vadd.xlane.f32.xlu0 %v283_v30 }
 0x182   : > { %v285_v31 = vpop.xlane.xlu0 %284 }
 0x183   : > { %v286_v32 = vrot.slane %v285_v31, 4 }
 0x185   : > { %v287_v33 = vadd.f32 %v286_v32, %v285_v31 }
 0x187   : > { %v288_v34 = vrot.slane %v287_v33, 2 }
 0x189   : > { %v289_v35 = vadd.f32 %v288_v34, %v287_v33 }
 0x18b   : > { %v290_v36 = vrot.slane %v289_v35, 1 }
 0x18d   : > { %v291_v37 = vadd.f32 %v290_v36, %v289_v35 }
 0x18f   : > { %442 = vpush %v291_v37 }
 0x1c0   : > { %s443_s6 = spop %442 }
 0x1c1   : > { %v293_v38 = vstv %s443_s6 }
 0x1c2   : > { %v294_v39 = vmul.f32 0.001953125, %v293_v38 }
 0x1c4   : > { %v295_v40 = vadd.f32 1e-05, %v294_v39 }
 0x1c6   : > { %489 = vrsqrt.f32 %v295_v40 }
 0x1d0   : > { %v490_v46 = vpop.eup %489 }
 0x1d1   : > { %v297_v48 = vmul.f32 %v490_v46, %v268_v24 }
 0x1d3   : > { %v311_v50 = vmul.f32 %v309_v49, %v297_v48 }
 0x1d5   : > { %v325_v52 = vadd.f32 %v323_v51, %v311_v50 }
 0x1d7   : > { %491 = vtanh.f32 %v325_v52 }
 0x1e1   : > { %v492_v53 = vpop.eup %491 }
 0x1e2   : > { %327 = vst [vmem:[%s238_s9] sm:$0xf] %v492_v53 }
 0x1e3 PF: > { %s13_s16 = sadd.s32 1, %s531_s16   ;;  %s637_s12 = smov %s523_s14 }
 0x1e4   : > { %p10_p7 = scmp.ge.s32.totalorder %s13_s16, 20   ;;  %s638_s13 = smov %s527_s15 }
 0x1e5   : > { %s639_s14 = smov %s642_s17  ;;  %s640_s15 = smov %s646_s18 }
 0x1e6   :  { %12 = sbr.rel (!%p10_p7) target bundleno = 3 (0x3), region = 68 }

// kernel: dsc_stem.16
= control target key start
LH: loop header
LB: loop body
LE: loop exit
PB: predicated region body
PF: predicated region fallthrough
CT: control target
= control target key end

     0   :  { %vm350_vm0 = vcmask 1043456   ;;  %vm351_vm1 = vcmask 1044480   ;;  %vm253_vm2 = vcmask 72704   ;;  %v916_v1 = vmov 65535   ;;  %s1393_s1 = inlined_call_operand.vmem [shape: bf16[9,52], index: 1, kind: input, shape index: {}]   ;;  %s1394_s0 = inlined_call_operand.vmem [shape: bf16[512,9], index: 0, kind: input, shape index: {}]   ;;  %s1395_s2 = inlined_call_operand.vmem [shape: f32[1,52], index: 2, kind: input, shape index: {}]   ;;  %s1396_s3 = inlined_call_operand.vmem [shape: f32[512,52], index: 3, kind: output, shape index: {}]  }
   0x1   :  { %v883_v0 = vld [vmem:[%s1393_s1] sm:$0x1f]   ;;  %v352_v2 = vsel %vm350_vm0, 4294967295, %v916_v1  ;;  %v886_v7 = vld [vmem:[%s1394_s0 + $0x8] sm:$0xff]   ;;  %v888_v9 = vld [vmem:[%s1394_s0 + $0x10] sm:$0xff]   ;;  %vm646_vm3 = vcmask 424960  }
   0x2   :  { %v884_v3 = vld [vmem:[%s1394_s0] sm:$0xff]   ;;  %v353_v4 = vsel %vm351_vm1, %v352_v2, 0  ;;  %v887_v8 = vld [vmem:[%s1394_s0 + $0x88] sm:$0xff]   ;;  %v889_v10 = vld [vmem:[%s1394_s0 + $0x90] sm:$0xff]  }
   0x3   :  { %v885_v5 = vld [vmem:[%s1394_s0 + $0x80] sm:$0xff]   ;;  %v355_v6 = vand.u32 %v883_v0, %v353_v4  ;;  %816 = vmatprep.mubr.msk.bf16.mxu0 %vm253_vm2, %v884_v3  ;;  %v890_v11 = vld [vmem:[%s1394_s0 + $0x18] sm:$0xff]   ;;  %v894_v15 = vld [vmem:[%s1394_s0 + $0x28] sm:$0xff]  }
   0x4   :  { %848 = vmatprep.mubr.msk.bf16.mxu1 %vm253_vm2, %v885_v5  ;;  %v891_v12 = vld [vmem:[%s1394_s0 + $0x98] sm:$0xff]   ;;  %v892_v13 = vld [vmem:[%s1394_s0 + $0x20] sm:$0xff]   ;;  %v895_v16 = vld [vmem:[%s1394_s0 + $0xa8] sm:$0xff]  }
   0x5   :  { %814 = vmatprep.subr.bf16.mxu0 %v355_v6  ;;  %880 = vmatprep.subr.bf16.mxu1 %v355_v6  ;;  %v893_v14 = vld [vmem:[%s1394_s0 + $0xa0] sm:$0xff]   ;;  %v896_v17 = vld [vmem:[%s1394_s0 + $0x30] sm:$0xff]   ;;  %v898_v19 = vld [vmem:[%s1394_s0 + $0x38] sm:$0xff]  }
   0x6   :  { %815 = vmatpush3.bf16.msra.mxu0 %v355_v6  ;;  %881 = vmatpush3.bf16.msra.mxu1 %v355_v6  ;;  %v897_v18 = vld [vmem:[%s1394_s0 + $0xb0] sm:$0xff]   ;;  %v899_v20 = vld [vmem:[%s1394_s0 + $0xb8] sm:$0xff]   ;;  %v900_v21 = vld [vmem:[%s1394_s0 + $0x40] sm:$0xff]  }
   0x7   :  { %v901_v22 = vld [vmem:[%s1394_s0 + $0xc0] sm:$0xff]   ;;  %v902_v23 = vld [vmem:[%s1394_s0 + $0x48] sm:$0xff]   ;;  %v904_v25 = vld [vmem:[%s1394_s0 + $0x50] sm:$0xff]  }
   0x8   :  { %v903_v24 = vld [vmem:[%s1394_s0 + $0xc8] sm:$0xff]   ;;  %v905_v26 = vld [vmem:[%s1394_s0 + $0xd0] sm:$0xff]   ;;  %v906_v27 = vld [vmem:[%s1394_s0 + $0x58] sm:$0xff]  }
   0x9   :  { %817 = vmatmul.mubr.msk.bf16.vlgmr.msra.gmra.mrb[0].mxu0 %vm253_vm2, %v886_v7  ;;  %849 = vmatmul.mubr.msk.bf16.vlgmr.msra.gmra.mrb[0].mxu1 %vm253_vm2, %v887_v8  ;;  %v907_v28 = vld [vmem:[%s1394_s0 + $0xd8] sm:$0xff]   ;;  %v908_v29 = vld [vmem:[%s1394_s0 + $0x60] sm:$0xff]   ;;  %v910_v31 = vld [vmem:[%s1394_s0 + $0x68] sm:$0xff]  }
   0xa   :  { %820 = vmatprep.mubr.msk.bf16.mxu0 %vm253_vm2, %v888_v9  ;;  %852 = vmatprep.mubr.msk.bf16.mxu1 %vm253_vm2, %v889_v10  ;;  %v909_v30 = vld [vmem:[%s1394_s0 + $0xe0] sm:$0xff]   ;;  %v911_v32 = vld [vmem:[%s1394_s0 + $0xe8] sm:$0xff]   ;;  %v912_v33 = vld [vmem:[%s1394_s0 + $0x70] sm:$0xff]  }
   0xb   :  { %v913_v34 = vld [vmem:[%s1394_s0 + $0xf0] sm:$0xff]   ;;  %v914_v35 = vld [vmem:[%s1394_s0 + $0x78] sm:$0xff]   ;;  %v1071_v37 = vld [vmem:[%s1395_s2] ss:$0 sm:$0xff] }
   0xc   :  { %v915_v36 = vld [vmem:[%s1394_s0 + $0xf8] sm:$0xff]  }
  0x11   :  { %821 = vmatmul.mubr.msk.bf16.gmra.mrb[4].mxu0 %vm253_vm2, %v890_v11  ;;  %853 = vmatmul.mubr.msk.bf16.gmra.mrb[4].mxu1 %vm253_vm2, %v891_v12 }
  0x12   :  { %824 = vmatprep.mubr.msk.bf16.mxu0 %vm253_vm2, %v892_v13  ;;  %856 = vmatprep.mubr.msk.bf16.mxu1 %vm253_vm2, %v893_v14 }
  0x19   :  { %825 = vmatmul.mubr.msk.bf16.gmra.mrb[8].mxu0 %vm253_vm2, %v894_v15  ;;  %857 = vmatmul.mubr.msk.bf16.gmra.mrb[8].mxu1 %vm253_vm2, %v895_v16 }
  0x1a   :  { %828 = vmatprep.mubr.msk.bf16.mxu0 %vm253_vm2, %v896_v17  ;;  %860 = vmatprep.mubr.msk.bf16.mxu1 %vm253_vm2, %v897_v18 }
  0x21   :  { %829 = vmatmul.mubr.msk.bf16.gmra.mrb[12].mxu0 %vm253_vm2, %v898_v19  ;;  %861 = vmatmul.mubr.msk.bf16.gmra.mrb[12].mxu1 %vm253_vm2, %v899_v20 }
  0x22   :  { %832 = vmatprep.mubr.msk.bf16.mxu0 %vm253_vm2, %v900_v21  ;;  %864 = vmatprep.mubr.msk.bf16.mxu1 %vm253_vm2, %v901_v22 }
  0x29   :  { %833 = vmatmul.mubr.msk.bf16.gmra.mrb[16].mxu0 %vm253_vm2, %v902_v23  ;;  %865 = vmatmul.mubr.msk.bf16.gmra.mrb[16].mxu1 %vm253_vm2, %v903_v24 }
  0x2a   :  { %836 = vmatprep.mubr.msk.bf16.mxu0 %vm253_vm2, %v904_v25  ;;  %868 = vmatprep.mubr.msk.bf16.mxu1 %vm253_vm2, %v905_v26 }
  0x31   :  { %837 = vmatmul.mubr.msk.bf16.gmra.mrb[20].mxu0 %vm253_vm2, %v906_v27  ;;  %869 = vmatmul.mubr.msk.bf16.gmra.mrb[20].mxu1 %vm253_vm2, %v907_v28 }
  0x32   :  { %840 = vmatprep.mubr.msk.bf16.mxu0 %vm253_vm2, %v908_v29  ;;  %872 = vmatprep.mubr.msk.bf16.mxu1 %vm253_vm2, %v909_v30 }
  0x39   :  { %841 = vmatmul.mubr.msk.bf16.gmra.mrb[24].mxu0 %vm253_vm2, %v910_v31  ;;  %873 = vmatmul.mubr.msk.bf16.gmra.mrb[24].mxu1 %vm253_vm2, %v911_v32 }
  0x3a   :  { %844 = vmatprep.mubr.msk.bf16.mxu0 %vm253_vm2, %v912_v33  ;;  %876 = vmatprep.mubr.msk.bf16.mxu1 %vm253_vm2, %v913_v34 }
  0x41   :  { %845 = vmatmul.mubr.msk.bf16.gmra.mrb[28].mxu0 %vm253_vm2, %v914_v35  ;;  %877 = vmatmul.mubr.msk.bf16.gmra.mrb[28].mxu1 %vm253_vm2, %v915_v36 }
  0xdc   :  { %v818_v38 = vpop.f32.mrb[0].mxu0  ;;  %v850_v39 = vpop.f32.mrb[0].mxu1 }
  0xdd   :  { %v400_v40 = vadd.f32 %v818_v38, %v1071_v37  ;;  %v528_v41 = vadd.f32 %v850_v39, %v1071_v37  ;;  %v391_v42 = vpop.f32.mrb[1].mxu0  ;;  %v519_v43 = vpop.f32.mrb[1].mxu1 }
  0xde   :  { %v392_v44 = vadd.f32 %v1071_v37, %v391_v42  ;;  %v520_v45 = vadd.f32 %v1071_v37, %v519_v43  ;;  %v819_v46 = vpop.f32.mrb[2].mxu0  ;;  %v851_v47 = vpop.f32.mrb[2].mxu1 }
  0xdf   :  { %649 = vst.msk [vmem:[%s1396_s3 + $0x10] sm:$0xff] %vm646_vm3, %v400_v40  ;;  %681 = vst.msk [vmem:[%s1396_s3 + $0x110] sm:$0xff] %vm646_vm3, %v528_v41  ;;  %v403_v48 = vadd.f32 %v819_v46, %v1071_v37  ;;  %v531_v49 = vadd.f32 %v851_v47, %v1071_v37  ;;  %v394_v50 = vpop.f32.mrb[3].mxu0  ;;  %v522_v51 = vpop.f32.mrb[3].mxu1 }
  0xe0   :  { %647 = vst.msk [vmem:[%s1396_s3] sm:$0xff] %vm646_vm3, %v392_v44  ;;  %679 = vst.msk [vmem:[%s1396_s3 + $0x100] sm:$0xff] %vm646_vm3, %v520_v45  ;;  %v395_v52 = vadd.f32 %v1071_v37, %v394_v50  ;;  %v523_v53 = vadd.f32 %v1071_v37, %v522_v51 }
  0xe1   :  { %650 = vst.msk [vmem:[%s1396_s3 + $0x18] sm:$0xff] %vm646_vm3, %v403_v48  ;;  %682 = vst.msk [vmem:[%s1396_s3 + $0x118] sm:$0xff] %vm646_vm3, %v531_v49 }
  0xe2   :  { %648 = vst.msk [vmem:[%s1396_s3 + $0x8] sm:$0xff] %vm646_vm3, %v395_v52  ;;  %680 = vst.msk [vmem:[%s1396_s3 + $0x108] sm:$0xff] %vm646_vm3, %v523_v53 }
  0xe4   :  { %v822_v54 = vpop.f32.mrb[4].mxu0  ;;  %v854_v55 = vpop.f32.mrb[4].mxu1 }
  0xe5   :  { %v416_v56 = vadd.f32 %v822_v54, %v1071_v37  ;;  %v544_v57 = vadd.f32 %v854_v55, %v1071_v37  ;;  %v407_v58 = vpop.f32.mrb[5].mxu0  ;;  %v535_v59 = vpop.f32.mrb[5].mxu1 }
  0xe6   :  { %v408_v60 = vadd.f32 %v1071_v37, %v407_v58  ;;  %v536_v61 = vadd.f32 %v1071_v37, %v535_v59  ;;  %v823_v62 = vpop.f32.mrb[6].mxu0  ;;  %v855_v63 = vpop.f32.mrb[6].mxu1 }
  0xe7   :  { %653 = vst.msk [vmem:[%s1396_s3 + $0x30] sm:$0xff] %vm646_vm3, %v416_v56  ;;  %685 = vst.msk [vmem:[%s1396_s3 + $0x130] sm:$0xff] %vm646_vm3, %v544_v57  ;;  %v419_v0 = vadd.f32 %v823_v62, %v1071_v37  ;;  %v547_v1 = vadd.f32 %v855_v63, %v1071_v37  ;;  %v410_v2 = vpop.f32.mrb[7].mxu0  ;;  %v538_v3 = vpop.f32.mrb[7].mxu1 }
  0xe8   :  { %651 = vst.msk [vmem:[%s1396_s3 + $0x20] sm:$0xff] %vm646_vm3, %v408_v60  ;;  %683 = vst.msk [vmem:[%s1396_s3 + $0x120] sm:$0xff] %vm646_vm3, %v536_v61  ;;  %v411_v4 = vadd.f32 %v1071_v37, %v410_v2  ;;  %v539_v5 = vadd.f32 %v1071_v37, %v538_v3 }
  0xe9   :  { %654 = vst.msk [vmem:[%s1396_s3 + $0x38] sm:$0xff] %vm646_vm3, %v419_v0  ;;  %686 = vst.msk [vmem:[%s1396_s3 + $0x138] sm:$0xff] %vm646_vm3, %v547_v1 }
  0xea   :  { %652 = vst.msk [vmem:[%s1396_s3 + $0x28] sm:$0xff] %vm646_vm3, %v411_v4  ;;  %684 = vst.msk [vmem:[%s1396_s3 + $0x128] sm:$0xff] %vm646_vm3, %v539_v5 }
  0xec   :  { %v826_v6 = vpop.f32.mrb[8].mxu0  ;;  %v858_v7 = vpop.f32.mrb[8].mxu1 }
  0xed   :  { %v432_v8 = vadd.f32 %v826_v6, %v1071_v37  ;;  %v560_v9 = vadd.f32 %v858_v7, %v1071_v37  ;;  %v423_v10 = vpop.f32.mrb[9].mxu0  ;;  %v551_v11 = vpop.f32.mrb[9].mxu1 }
  0xee   :  { %v424_v12 = vadd.f32 %v1071_v37, %v423_v10  ;;  %v552_v13 = vadd.f32 %v1071_v37, %v551_v11  ;;  %v827_v14 = vpop.f32.mrb[10].mxu0  ;;  %v859_v15 = vpop.f32.mrb[10].mxu1 }
  0xef   :  { %657 = vst.msk [vmem:[%s1396_s3 + $0x50] sm:$0xff] %vm646_vm3, %v432_v8  ;;  %689 = vst.msk [vmem:[%s1396_s3 + $0x150] sm:$0xff] %vm646_vm3, %v560_v9  ;;  %v435_v16 = vadd.f32 %v827_v14, %v1071_v37  ;;  %v563_v17 = vadd.f32 %v859_v15, %v1071_v37  ;;  %v426_v18 = vpop.f32.mrb[11].mxu0  ;;  %v554_v19 = vpop.f32.mrb[11].mxu1 }
  0xf0   :  { %655 = vst.msk [vmem:[%s1396_s3 + $0x40] sm:$0xff] %vm646_vm3, %v424_v12  ;;  %687 = vst.msk [vmem:[%s1396_s3 + $0x140] sm:$0xff] %vm646_vm3, %v552_v13  ;;  %v427_v20 = vadd.f32 %v1071_v37, %v426_v18  ;;  %v555_v21 = vadd.f32 %v1071_v37, %v554_v19 }
  0xf1   :  { %658 = vst.msk [vmem:[%s1396_s3 + $0x58] sm:$0xff] %vm646_vm3, %v435_v16  ;;  %690 = vst.msk [vmem:[%s1396_s3 + $0x158] sm:$0xff] %vm646_vm3, %v563_v17 }
  0xf2   :  { %656 = vst.msk [vmem:[%s1396_s3 + $0x48] sm:$0xff] %vm646_vm3, %v427_v20  ;;  %688 = vst.msk [vmem:[%s1396_s3 + $0x148] sm:$0xff] %vm646_vm3, %v555_v21 }
  0xf4   :  { %v830_v22 = vpop.f32.mrb[12].mxu0  ;;  %v862_v23 = vpop.f32.mrb[12].mxu1 }
  0xf5   :  { %v448_v24 = vadd.f32 %v830_v22, %v1071_v37  ;;  %v576_v25 = vadd.f32 %v862_v23, %v1071_v37  ;;  %v439_v26 = vpop.f32.mrb[13].mxu0  ;;  %v567_v27 = vpop.f32.mrb[13].mxu1 }
  0xf6   :  { %v440_v28 = vadd.f32 %v1071_v37, %v439_v26  ;;  %v568_v29 = vadd.f32 %v1071_v37, %v567_v27  ;;  %v831_v30 = vpop.f32.mrb[14].mxu0  ;;  %v863_v31 = vpop.f32.mrb[14].mxu1 }
  0xf7   :  { %661 = vst.msk [vmem:[%s1396_s3 + $0x70] sm:$0xff] %vm646_vm3, %v448_v24  ;;  %693 = vst.msk [vmem:[%s1396_s3 + $0x170] sm:$0xff] %vm646_vm3, %v576_v25  ;;  %v451_v32 = vadd.f32 %v831_v30, %v1071_v37  ;;  %v579_v33 = vadd.f32 %v863_v31, %v1071_v37  ;;  %v442_v34 = vpop.f32.mrb[15].mxu0  ;;  %v570_v35 = vpop.f32.mrb[15].mxu1 }
  0xf8   :  { %659 = vst.msk [vmem:[%s1396_s3 + $0x60] sm:$0xff] %vm646_vm3, %v440_v28  ;;  %691 = vst.msk [vmem:[%s1396_s3 + $0x160] sm:$0xff] %vm646_vm3, %v568_v29  ;;  %v443_v36 = vadd.f32 %v1071_v37, %v442_v34  ;;  %v571_v38 = vadd.f32 %v1071_v37, %v570_v35 }
  0xf9   :  { %662 = vst.msk [vmem:[%s1396_s3 + $0x78] sm:$0xff] %vm646_vm3, %v451_v32  ;;  %694 = vst.msk [vmem:[%s1396_s3 + $0x178] sm:$0xff] %vm646_vm3, %v579_v33 }
  0xfa   :  { %660 = vst.msk [vmem:[%s1396_s3 + $0x68] sm:$0xff] %vm646_vm3, %v443_v36  ;;  %692 = vst.msk [vmem:[%s1396_s3 + $0x168] sm:$0xff] %vm646_vm3, %v571_v38 }
  0xfc   :  { %v834_v39 = vpop.f32.mrb[16].mxu0  ;;  %v866_v40 = vpop.f32.mrb[16].mxu1 }
  0xfd   :  { %v464_v41 = vadd.f32 %v834_v39, %v1071_v37  ;;  %v592_v42 = vadd.f32 %v866_v40, %v1071_v37  ;;  %v455_v43 = vpop.f32.mrb[17].mxu0  ;;  %v583_v44 = vpop.f32.mrb[17].mxu1 }
  0xfe   :  { %v456_v45 = vadd.f32 %v1071_v37, %v455_v43  ;;  %v584_v46 = vadd.f32 %v1071_v37, %v583_v44  ;;  %v835_v47 = vpop.f32.mrb[18].mxu0  ;;  %v867_v48 = vpop.f32.mrb[18].mxu1 }
  0xff   :  { %665 = vst.msk [vmem:[%s1396_s3 + $0x90] sm:$0xff] %vm646_vm3, %v464_v41  ;;  %697 = vst.msk [vmem:[%s1396_s3 + $0x190] sm:$0xff] %vm646_vm3, %v592_v42  ;;  %v467_v49 = vadd.f32 %v835_v47, %v1071_v37  ;;  %v595_v50 = vadd.f32 %v867_v48, %v1071_v37  ;;  %v458_v51 = vpop.f32.mrb[19].mxu0  ;;  %v586_v52 = vpop.f32.mrb[19].mxu1 }
 0x100   :  { %663 = vst.msk [vmem:[%s1396_s3 + $0x80] sm:$0xff] %vm646_vm3, %v456_v45  ;;  %695 = vst.msk [vmem:[%s1396_s3 + $0x180] sm:$0xff] %vm646_vm3, %v584_v46  ;;  %v459_v53 = vadd.f32 %v1071_v37, %v458_v51  ;;  %v587_v54 = vadd.f32 %v1071_v37, %v586_v52 }
 0x101   :  { %666 = vst.msk [vmem:[%s1396_s3 + $0x98] sm:$0xff] %vm646_vm3, %v467_v49  ;;  %698 = vst.msk [vmem:[%s1396_s3 + $0x198] sm:$0xff] %vm646_vm3, %v595_v50 }
 0x102   :  { %664 = vst.msk [vmem:[%s1396_s3 + $0x88] sm:$0xff] %vm646_vm3, %v459_v53  ;;  %696 = vst.msk [vmem:[%s1396_s3 + $0x188] sm:$0xff] %vm646_vm3, %v587_v54 }
 0x104   :  { %v838_v55 = vpop.f32.mrb[20].mxu0  ;;  %v870_v56 = vpop.f32.mrb[20].mxu1 }
 0x105   :  { %v480_v57 = vadd.f32 %v838_v55, %v1071_v37  ;;  %v608_v58 = vadd.f32 %v870_v56, %v1071_v37  ;;  %v471_v59 = vpop.f32.mrb[21].mxu0  ;;  %v599_v60 = vpop.f32.mrb[21].mxu1 }
 0x106   :  { %v472_v61 = vadd.f32 %v1071_v37, %v471_v59  ;;  %v600_v62 = vadd.f32 %v1071_v37, %v599_v60  ;;  %v839_v63 = vpop.f32.mrb[22].mxu0  ;;  %v871_v0 = vpop.f32.mrb[22].mxu1 }
 0x107   :  { %669 = vst.msk [vmem:[%s1396_s3 + $0xb0] sm:$0xff] %vm646_vm3, %v480_v57  ;;  %701 = vst.msk [vmem:[%s1396_s3 + $0x1b0] sm:$0xff] %vm646_vm3, %v608_v58  ;;  %v483_v1 = vadd.f32 %v839_v63, %v1071_v37  ;;  %v611_v2 = vadd.f32 %v871_v0, %v1071_v37  ;;  %v474_v3 = vpop.f32.mrb[23].mxu0  ;;  %v602_v4 = vpop.f32.mrb[23].mxu1 }
 0x108   :  { %667 = vst.msk [vmem:[%s1396_s3 + $0xa0] sm:$0xff] %vm646_vm3, %v472_v61  ;;  %699 = vst.msk [vmem:[%s1396_s3 + $0x1a0] sm:$0xff] %vm646_vm3, %v600_v62  ;;  %v475_v5 = vadd.f32 %v1071_v37, %v474_v3  ;;  %v603_v6 = vadd.f32 %v1071_v37, %v602_v4 }
 0x109   :  { %670 = vst.msk [vmem:[%s1396_s3 + $0xb8] sm:$0xff] %vm646_vm3, %v483_v1  ;;  %702 = vst.msk [vmem:[%s1396_s3 + $0x1b8] sm:$0xff] %vm646_vm3, %v611_v2 }
 0x10a   :  { %668 = vst.msk [vmem:[%s1396_s3 + $0xa8] sm:$0xff] %vm646_vm3, %v475_v5  ;;  %700 = vst.msk [vmem:[%s1396_s3 + $0x1a8] sm:$0xff] %vm646_vm3, %v603_v6 }
 0x10c   :  { %v842_v7 = vpop.f32.mrb[24].mxu0  ;;  %v874_v8 = vpop.f32.mrb[24].mxu1 }
 0x10d   :  { %v496_v9 = vadd.f32 %v842_v7, %v1071_v37  ;;  %v624_v10 = vadd.f32 %v874_v8, %v1071_v37  ;;  %v487_v11 = vpop.f32.mrb[25].mxu0  ;;  %v615_v12 = vpop.f32.mrb[25].mxu1 }
 0x10e   :  { %v488_v13 = vadd.f32 %v1071_v37, %v487_v11  ;;  %v616_v14 = vadd.f32 %v1071_v37, %v615_v12  ;;  %v843_v15 = vpop.f32.mrb[26].mxu0  ;;  %v875_v16 = vpop.f32.mrb[26].mxu1 }
 0x10f   :  { %673 = vst.msk [vmem:[%s1396_s3 + $0xd0] sm:$0xff] %vm646_vm3, %v496_v9  ;;  %705 = vst.msk [vmem:[%s1396_s3 + $0x1d0] sm:$0xff] %vm646_vm3, %v624_v10  ;;  %v499_v17 = vadd.f32 %v843_v15, %v1071_v37  ;;  %v627_v18 = vadd.f32 %v875_v16, %v1071_v37  ;;  %v490_v19 = vpop.f32.mrb[27].mxu0  ;;  %v618_v20 = vpop.f32.mrb[27].mxu1 }
 0x110   :  { %671 = vst.msk [vmem:[%s1396_s3 + $0xc0] sm:$0xff] %vm646_vm3, %v488_v13  ;;  %703 = vst.msk [vmem:[%s1396_s3 + $0x1c0] sm:$0xff] %vm646_vm3, %v616_v14  ;;  %v491_v21 = vadd.f32 %v1071_v37, %v490_v19  ;;  %v619_v22 = vadd.f32 %v1071_v37, %v618_v20 }
 0x111   :  { %674 = vst.msk [vmem:[%s1396_s3 + $0xd8] sm:$0xff] %vm646_vm3, %v499_v17  ;;  %706 = vst.msk [vmem:[%s1396_s3 + $0x1d8] sm:$0xff] %vm646_vm3, %v627_v18 }
 0x112   :  { %672 = vst.msk [vmem:[%s1396_s3 + $0xc8] sm:$0xff] %vm646_vm3, %v491_v21  ;;  %704 = vst.msk [vmem:[%s1396_s3 + $0x1c8] sm:$0xff] %vm646_vm3, %v619_v22 }
 0x114   :  { %v846_v23 = vpop.f32.mrb[28].mxu0  ;;  %v878_v24 = vpop.f32.mrb[28].mxu1 }
 0x115   :  { %v512_v25 = vadd.f32 %v846_v23, %v1071_v37  ;;  %v640_v26 = vadd.f32 %v878_v24, %v1071_v37  ;;  %v503_v27 = vpop.f32.mrb[29].mxu0  ;;  %v631_v28 = vpop.f32.mrb[29].mxu1 }
 0x116   :  { %v504_v29 = vadd.f32 %v1071_v37, %v503_v27  ;;  %v632_v30 = vadd.f32 %v1071_v37, %v631_v28  ;;  %v847_v31 = vpop.f32.mrb[30].mxu0  ;;  %v879_v32 = vpop.f32.mrb[30].mxu1 }
 0x117   :  { %677 = vst.msk [vmem:[%s1396_s3 + $0xf0] sm:$0xff] %vm646_vm3, %v512_v25  ;;  %709 = vst.msk [vmem:[%s1396_s3 + $0x1f0] sm:$0xff] %vm646_vm3, %v640_v26  ;;  %v515_v33 = vadd.f32 %v847_v31, %v1071_v37  ;;  %v643_v34 = vadd.f32 %v879_v32, %v1071_v37  ;;  %v506_v35 = vpop.f32.mrb[31].mxu0  ;;  %v634_v36 = vpop.f32.mrb[31].mxu1 }
 0x118   :  { %675 = vst.msk [vmem:[%s1396_s3 + $0xe0] sm:$0xff] %vm646_vm3, %v504_v29  ;;  %707 = vst.msk [vmem:[%s1396_s3 + $0x1e0] sm:$0xff] %vm646_vm3, %v632_v30  ;;  %v507_v38 = vadd.f32 %v1071_v37, %v506_v35  ;;  %v635_v39 = vadd.f32 %v1071_v37, %v634_v36 }
 0x119   :  { %678 = vst.msk [vmem:[%s1396_s3 + $0xf8] sm:$0xff] %vm646_vm3, %v515_v33  ;;  %710 = vst.msk [vmem:[%s1396_s3 + $0x1f8] sm:$0xff] %vm646_vm3, %v643_v34 }
 0x11a   :  { %676 = vst.msk [vmem:[%s1396_s3 + $0xe8] sm:$0xff] %vm646_vm3, %v507_v38  ;;  %708 = vst.msk [vmem:[%s1396_s3 + $0x1e8] sm:$0xff] %vm646_vm3, %v635_v39 }

// kernel: dsc_stem.18
= control target key start
LH: loop header
LB: loop body
LE: loop exit
PB: predicated region body
PF: predicated region fallthrough
CT: control target
= control target key end

     0   :  { %vm350_vm0 = vcmask 1043456   ;;  %vm351_vm1 = vcmask 1044480   ;;  %vm253_vm2 = vcmask 72704   ;;  %v916_v1 = vmov 65535   ;;  %s1393_s1 = inlined_call_operand.vmem [shape: bf16[9,16], index: 1, kind: input, shape index: {}]   ;;  %s1394_s0 = inlined_call_operand.vmem [shape: bf16[512,9], index: 0, kind: input, shape index: {}]   ;;  %s1395_s2 = inlined_call_operand.vmem [shape: f32[1,16], index: 2, kind: input, shape index: {}]   ;;  %s1396_s3 = inlined_call_operand.vmem [shape: f32[512,16], index: 3, kind: output, shape index: {}]  }
   0x1   :  { %v883_v0 = vld [vmem:[%s1393_s1] sm:$0x1f]   ;;  %v352_v2 = vsel %vm350_vm0, 4294967295, %v916_v1  ;;  %v886_v7 = vld [vmem:[%s1394_s0 + $0x8] sm:$0xff]   ;;  %v888_v9 = vld [vmem:[%s1394_s0 + $0x10] sm:$0xff]   ;;  %vm646_vm3 = vcmask 130048  }
   0x2   :  { %v884_v3 = vld [vmem:[%s1394_s0] sm:$0xff]   ;;  %v353_v4 = vsel %vm351_vm1, %v352_v2, 0  ;;  %v887_v8 = vld [vmem:[%s1394_s0 + $0x88] sm:$0xff]   ;;  %v889_v10 = vld [vmem:[%s1394_s0 + $0x90] sm:$0xff]  }
   0x3   :  { %v885_v5 = vld [vmem:[%s1394_s0 + $0x80] sm:$0xff]   ;;  %v355_v6 = vand.u32 %v883_v0, %v353_v4  ;;  %816 = vmatprep.mubr.msk.bf16.mxu0 %vm253_vm2, %v884_v3  ;;  %v890_v11 = vld [vmem:[%s1394_s0 + $0x18] sm:$0xff]   ;;  %v894_v15 = vld [vmem:[%s1394_s0 + $0x28] sm:$0xff]  }
   0x4   :  { %848 = vmatprep.mubr.msk.bf16.mxu1 %vm253_vm2, %v885_v5  ;;  %v891_v12 = vld [vmem:[%s1394_s0 + $0x98] sm:$0xff]   ;;  %v892_v13 = vld [vmem:[%s1394_s0 + $0x20] sm:$0xff]   ;;  %v895_v16 = vld [vmem:[%s1394_s0 + $0xa8] sm:$0xff]  }
   0x5   :  { %814 = vmatprep.subr.bf16.mxu0 %v355_v6  ;;  %880 = vmatprep.subr.bf16.mxu1 %v355_v6  ;;  %v893_v14 = vld [vmem:[%s1394_s0 + $0xa0] sm:$0xff]   ;;  %v896_v17 = vld [vmem:[%s1394_s0 + $0x30] sm:$0xff]   ;;  %v898_v19 = vld [vmem:[%s1394_s0 + $0x38] sm:$0xff]  }
   0x6   :  { %815 = vmatpush3.bf16.msra.mxu0 %v355_v6  ;;  %881 = vmatpush3.bf16.msra.mxu1 %v355_v6  ;;  %v897_v18 = vld [vmem:[%s1394_s0 + $0xb0] sm:$0xff]   ;;  %v899_v20 = vld [vmem:[%s1394_s0 + $0xb8] sm:$0xff]   ;;  %v900_v21 = vld [vmem:[%s1394_s0 + $0x40] sm:$0xff]  }
   0x7   :  { %v901_v22 = vld [vmem:[%s1394_s0 + $0xc0] sm:$0xff]   ;;  %v902_v23 = vld [vmem:[%s1394_s0 + $0x48] sm:$0xff]   ;;  %v904_v25 = vld [vmem:[%s1394_s0 + $0x50] sm:$0xff]  }
   0x8   :  { %v903_v24 = vld [vmem:[%s1394_s0 + $0xc8] sm:$0xff]   ;;  %v905_v26 = vld [vmem:[%s1394_s0 + $0xd0] sm:$0xff]   ;;  %v906_v27 = vld [vmem:[%s1394_s0 + $0x58] sm:$0xff]  }
   0x9   :  { %817 = vmatmul.mubr.msk.bf16.vlgmr.msra.gmra.mrb[0].mxu0 %vm253_vm2, %v886_v7  ;;  %849 = vmatmul.mubr.msk.bf16.vlgmr.msra.gmra.mrb[0].mxu1 %vm253_vm2, %v887_v8  ;;  %v907_v28 = vld [vmem:[%s1394_s0 + $0xd8] sm:$0xff]   ;;  %v908_v29 = vld [vmem:[%s1394_s0 + $0x60] sm:$0xff]   ;;  %v910_v31 = vld [vmem:[%s1394_s0 + $0x68] sm:$0xff]  }
   0xa   :  { %820 = vmatprep.mubr.msk.bf16.mxu0 %vm253_vm2, %v888_v9  ;;  %852 = vmatprep.mubr.msk.bf16.mxu1 %vm253_vm2, %v889_v10  ;;  %v909_v30 = vld [vmem:[%s1394_s0 + $0xe0] sm:$0xff]   ;;  %v911_v32 = vld [vmem:[%s1394_s0 + $0xe8] sm:$0xff]   ;;  %v912_v33 = vld [vmem:[%s1394_s0 + $0x70] sm:$0xff]  }
   0xb   :  { %v913_v34 = vld [vmem:[%s1394_s0 + $0xf0] sm:$0xff]   ;;  %v914_v35 = vld [vmem:[%s1394_s0 + $0x78] sm:$0xff]   ;;  %v1071_v37 = vld [vmem:[%s1395_s2] ss:$0 sm:$0xff] }
   0xc   :  { %v915_v36 = vld [vmem:[%s1394_s0 + $0xf8] sm:$0xff]  }
  0x11   :  { %821 = vmatmul.mubr.msk.bf16.gmra.mrb[4].mxu0 %vm253_vm2, %v890_v11  ;;  %853 = vmatmul.mubr.msk.bf16.gmra.mrb[4].mxu1 %vm253_vm2, %v891_v12 }
  0x12   :  { %824 = vmatprep.mubr.msk.bf16.mxu0 %vm253_vm2, %v892_v13  ;;  %856 = vmatprep.mubr.msk.bf16.mxu1 %vm253_vm2, %v893_v14 }
  0x19   :  { %825 = vmatmul.mubr.msk.bf16.gmra.mrb[8].mxu0 %vm253_vm2, %v894_v15  ;;  %857 = vmatmul.mubr.msk.bf16.gmra.mrb[8].mxu1 %vm253_vm2, %v895_v16 }
  0x1a   :  { %828 = vmatprep.mubr.msk.bf16.mxu0 %vm253_vm2, %v896_v17  ;;  %860 = vmatprep.mubr.msk.bf16.mxu1 %vm253_vm2, %v897_v18 }
  0x21   :  { %829 = vmatmul.mubr.msk.bf16.gmra.mrb[12].mxu0 %vm253_vm2, %v898_v19  ;;  %861 = vmatmul.mubr.msk.bf16.gmra.mrb[12].mxu1 %vm253_vm2, %v899_v20 }
  0x22   :  { %832 = vmatprep.mubr.msk.bf16.mxu0 %vm253_vm2, %v900_v21  ;;  %864 = vmatprep.mubr.msk.bf16.mxu1 %vm253_vm2, %v901_v22 }
  0x29   :  { %833 = vmatmul.mubr.msk.bf16.gmra.mrb[16].mxu0 %vm253_vm2, %v902_v23  ;;  %865 = vmatmul.mubr.msk.bf16.gmra.mrb[16].mxu1 %vm253_vm2, %v903_v24 }
  0x2a   :  { %836 = vmatprep.mubr.msk.bf16.mxu0 %vm253_vm2, %v904_v25  ;;  %868 = vmatprep.mubr.msk.bf16.mxu1 %vm253_vm2, %v905_v26 }
  0x31   :  { %837 = vmatmul.mubr.msk.bf16.gmra.mrb[20].mxu0 %vm253_vm2, %v906_v27  ;;  %869 = vmatmul.mubr.msk.bf16.gmra.mrb[20].mxu1 %vm253_vm2, %v907_v28 }
  0x32   :  { %840 = vmatprep.mubr.msk.bf16.mxu0 %vm253_vm2, %v908_v29  ;;  %872 = vmatprep.mubr.msk.bf16.mxu1 %vm253_vm2, %v909_v30 }
  0x39   :  { %841 = vmatmul.mubr.msk.bf16.gmra.mrb[24].mxu0 %vm253_vm2, %v910_v31  ;;  %873 = vmatmul.mubr.msk.bf16.gmra.mrb[24].mxu1 %vm253_vm2, %v911_v32 }
  0x3a   :  { %844 = vmatprep.mubr.msk.bf16.mxu0 %vm253_vm2, %v912_v33  ;;  %876 = vmatprep.mubr.msk.bf16.mxu1 %vm253_vm2, %v913_v34 }
  0x41   :  { %845 = vmatmul.mubr.msk.bf16.gmra.mrb[28].mxu0 %vm253_vm2, %v914_v35  ;;  %877 = vmatmul.mubr.msk.bf16.gmra.mrb[28].mxu1 %vm253_vm2, %v915_v36 }
  0xdc   :  { %v818_v38 = vpop.f32.mrb[0].mxu0  ;;  %v850_v39 = vpop.f32.mrb[0].mxu1 }
  0xdd   :  { %v400_v40 = vadd.f32 %v818_v38, %v1071_v37  ;;  %v528_v41 = vadd.f32 %v850_v39, %v1071_v37  ;;  %v391_v42 = vpop.f32.mrb[1].mxu0  ;;  %v519_v43 = vpop.f32.mrb[1].mxu1 }
  0xde   :  { %v392_v44 = vadd.f32 %v1071_v37, %v391_v42  ;;  %v520_v45 = vadd.f32 %v1071_v37, %v519_v43  ;;  %v819_v46 = vpop.f32.mrb[2].mxu0  ;;  %v851_v47 = vpop.f32.mrb[2].mxu1 }
  0xdf   :  { %649 = vst.msk [vmem:[%s1396_s3 + $0x10] sm:$0xff] %vm646_vm3, %v400_v40  ;;  %681 = vst.msk [vmem:[%s1396_s3 + $0x110] sm:$0xff] %vm646_vm3, %v528_v41  ;;  %v403_v48 = vadd.f32 %v819_v46, %v1071_v37  ;;  %v531_v49 = vadd.f32 %v851_v47, %v1071_v37  ;;  %v394_v50 = vpop.f32.mrb[3].mxu0  ;;  %v522_v51 = vpop.f32.mrb[3].mxu1 }
  0xe0   :  { %647 = vst.msk [vmem:[%s1396_s3] sm:$0xff] %vm646_vm3, %v392_v44  ;;  %679 = vst.msk [vmem:[%s1396_s3 + $0x100] sm:$0xff] %vm646_vm3, %v520_v45  ;;  %v395_v52 = vadd.f32 %v1071_v37, %v394_v50  ;;  %v523_v53 = vadd.f32 %v1071_v37, %v522_v51 }
  0xe1   :  { %650 = vst.msk [vmem:[%s1396_s3 + $0x18] sm:$0xff] %vm646_vm3, %v403_v48  ;;  %682 = vst.msk [vmem:[%s1396_s3 + $0x118] sm:$0xff] %vm646_vm3, %v531_v49 }
  0xe2   :  { %648 = vst.msk [vmem:[%s1396_s3 + $0x8] sm:$0xff] %vm646_vm3, %v395_v52  ;;  %680 = vst.msk [vmem:[%s1396_s3 + $0x108] sm:$0xff] %vm646_vm3, %v523_v53 }
  0xe4   :  { %v822_v54 = vpop.f32.mrb[4].mxu0  ;;  %v854_v55 = vpop.f32.mrb[4].mxu1 }
  0xe5   :  { %v416_v56 = vadd.f32 %v822_v54, %v1071_v37  ;;  %v544_v57 = vadd.f32 %v854_v55, %v1071_v37  ;;  %v407_v58 = vpop.f32.mrb[5].mxu0  ;;  %v535_v59 = vpop.f32.mrb[5].mxu1 }
  0xe6   :  { %v408_v60 = vadd.f32 %v1071_v37, %v407_v58  ;;  %v536_v61 = vadd.f32 %v1071_v37, %v535_v59  ;;  %v823_v62 = vpop.f32.mrb[6].mxu0  ;;  %v855_v63 = vpop.f32.mrb[6].mxu1 }
  0xe7   :  { %653 = vst.msk [vmem:[%s1396_s3 + $0x30] sm:$0xff] %vm646_vm3, %v416_v56  ;;  %685 = vst.msk [vmem:[%s1396_s3 + $0x130] sm:$0xff] %vm646_vm3, %v544_v57  ;;  %v419_v0 = vadd.f32 %v823_v62, %v1071_v37  ;;  %v547_v1 = vadd.f32 %v855_v63, %v1071_v37  ;;  %v410_v2 = vpop.f32.mrb[7].mxu0  ;;  %v538_v3 = vpop.f32.mrb[7].mxu1 }
  0xe8   :  { %651 = vst.msk [vmem:[%s1396_s3 + $0x20] sm:$0xff] %vm646_vm3, %v408_v60  ;;  %683 = vst.msk [vmem:[%s1396_s3 + $0x120] sm:$0xff] %vm646_vm3, %v536_v61  ;;  %v411_v4 = vadd.f32 %v1071_v37, %v410_v2  ;;  %v539_v5 = vadd.f32 %v1071_v37, %v538_v3 }
  0xe9   :  { %654 = vst.msk [vmem:[%s1396_s3 + $0x38] sm:$0xff] %vm646_vm3, %v419_v0  ;;  %686 = vst.msk [vmem:[%s1396_s3 + $0x138] sm:$0xff] %vm646_vm3, %v547_v1 }
  0xea   :  { %652 = vst.msk [vmem:[%s1396_s3 + $0x28] sm:$0xff] %vm646_vm3, %v411_v4  ;;  %684 = vst.msk [vmem:[%s1396_s3 + $0x128] sm:$0xff] %vm646_vm3, %v539_v5 }
  0xec   :  { %v826_v6 = vpop.f32.mrb[8].mxu0  ;;  %v858_v7 = vpop.f32.mrb[8].mxu1 }
  0xed   :  { %v432_v8 = vadd.f32 %v826_v6, %v1071_v37  ;;  %v560_v9 = vadd.f32 %v858_v7, %v1071_v37  ;;  %v423_v10 = vpop.f32.mrb[9].mxu0  ;;  %v551_v11 = vpop.f32.mrb[9].mxu1 }
  0xee   :  { %v424_v12 = vadd.f32 %v1071_v37, %v423_v10  ;;  %v552_v13 = vadd.f32 %v1071_v37, %v551_v11  ;;  %v827_v14 = vpop.f32.mrb[10].mxu0  ;;  %v859_v15 = vpop.f32.mrb[10].mxu1 }
  0xef   :  { %657 = vst.msk [vmem:[%s1396_s3 + $0x50] sm:$0xff] %vm646_vm3, %v432_v8  ;;  %689 = vst.msk [vmem:[%s1396_s3 + $0x150] sm:$0xff] %vm646_vm3, %v560_v9  ;;  %v435_v16 = vadd.f32 %v827_v14, %v1071_v37  ;;  %v563_v17 = vadd.f32 %v859_v15, %v1071_v37  ;;  %v426_v18 = vpop.f32.mrb[11].mxu0  ;;  %v554_v19 = vpop.f32.mrb[11].mxu1 }
  0xf0   :  { %655 = vst.msk [vmem:[%s1396_s3 + $0x40] sm:$0xff] %vm646_vm3, %v424_v12  ;;  %687 = vst.msk [vmem:[%s1396_s3 + $0x140] sm:$0xff] %vm646_vm3, %v552_v13  ;;  %v427_v20 = vadd.f32 %v1071_v37, %v426_v18  ;;  %v555_v21 = vadd.f32 %v1071_v37, %v554_v19 }
  0xf1   :  { %658 = vst.msk [vmem:[%s1396_s3 + $0x58] sm:$0xff] %vm646_vm3, %v435_v16  ;;  %690 = vst.msk [vmem:[%s1396_s3 + $0x158] sm:$0xff] %vm646_vm3, %v563_v17 }
  0xf2   :  { %656 = vst.msk [vmem:[%s1396_s3 + $0x48] sm:$0xff] %vm646_vm3, %v427_v20  ;;  %688 = vst.msk [vmem:[%s1396_s3 + $0x148] sm:$0xff] %vm646_vm3, %v555_v21 }
  0xf4   :  { %v830_v22 = vpop.f32.mrb[12].mxu0  ;;  %v862_v23 = vpop.f32.mrb[12].mxu1 }
  0xf5   :  { %v448_v24 = vadd.f32 %v830_v22, %v1071_v37  ;;  %v576_v25 = vadd.f32 %v862_v23, %v1071_v37  ;;  %v439_v26 = vpop.f32.mrb[13].mxu0  ;;  %v567_v27 = vpop.f32.mrb[13].mxu1 }
  0xf6   :  { %v440_v28 = vadd.f32 %v1071_v37, %v439_v26  ;;  %v568_v29 = vadd.f32 %v1071_v37, %v567_v27  ;;  %v831_v30 = vpop.f32.mrb[14].mxu0  ;;  %v863_v31 = vpop.f32.mrb[14].mxu1 }
  0xf7   :  { %661 = vst.msk [vmem:[%s1396_s3 + $0x70] sm:$0xff] %vm646_vm3, %v448_v24  ;;  %693 = vst.msk [vmem:[%s1396_s3 + $0x170] sm:$0xff] %vm646_vm3, %v576_v25  ;;  %v451_v32 = vadd.f32 %v831_v30, %v1071_v37  ;;  %v579_v33 = vadd.f32 %v863_v31, %v1071_v37  ;;  %v442_v34 = vpop.f32.mrb[15].mxu0  ;;  %v570_v35 = vpop.f32.mrb[15].mxu1 }
  0xf8   :  { %659 = vst.msk [vmem:[%s1396_s3 + $0x60] sm:$0xff] %vm646_vm3, %v440_v28  ;;  %691 = vst.msk [vmem:[%s1396_s3 + $0x160] sm:$0xff] %vm646_vm3, %v568_v29  ;;  %v443_v36 = vadd.f32 %v1071_v37, %v442_v34  ;;  %v571_v38 = vadd.f32 %v1071_v37, %v570_v35 }
  0xf9   :  { %662 = vst.msk [vmem:[%s1396_s3 + $0x78] sm:$0xff] %vm646_vm3, %v451_v32  ;;  %694 = vst.msk [vmem:[%s1396_s3 + $0x178] sm:$0xff] %vm646_vm3, %v579_v33 }
  0xfa   :  { %660 = vst.msk [vmem:[%s1396_s3 + $0x68] sm:$0xff] %vm646_vm3, %v443_v36  ;;  %692 = vst.msk [vmem:[%s1396_s3 + $0x168] sm:$0xff] %vm646_vm3, %v571_v38 }
  0xfc   :  { %v834_v39 = vpop.f32.mrb[16].mxu0  ;;  %v866_v40 = vpop.f32.mrb[16].mxu1 }
  0xfd   :  { %v464_v41 = vadd.f32 %v834_v39, %v1071_v37  ;;  %v592_v42 = vadd.f32 %v866_v40, %v1071_v37  ;;  %v455_v43 = vpop.f32.mrb[17].mxu0  ;;  %v583_v44 = vpop.f32.mrb[17].mxu1 }
  0xfe   :  { %v456_v45 = vadd.f32 %v1071_v37, %v455_v43  ;;  %v584_v46 = vadd.f32 %v1071_v37, %v583_v44  ;;  %v835_v47 = vpop.f32.mrb[18].mxu0  ;;  %v867_v48 = vpop.f32.mrb[18].mxu1 }
  0xff   :  { %665 = vst.msk [vmem:[%s1396_s3 + $0x90] sm:$0xff] %vm646_vm3, %v464_v41  ;;  %697 = vst.msk [vmem:[%s1396_s3 + $0x190] sm:$0xff] %vm646_vm3, %v592_v42  ;;  %v467_v49 = vadd.f32 %v835_v47, %v1071_v37  ;;  %v595_v50 = vadd.f32 %v867_v48, %v1071_v37  ;;  %v458_v51 = vpop.f32.mrb[19].mxu0  ;;  %v586_v52 = vpop.f32.mrb[19].mxu1 }
 0x100   :  { %663 = vst.msk [vmem:[%s1396_s3 + $0x80] sm:$0xff] %vm646_vm3, %v456_v45  ;;  %695 = vst.msk [vmem:[%s1396_s3 + $0x180] sm:$0xff] %vm646_vm3, %v584_v46  ;;  %v459_v53 = vadd.f32 %v1071_v37, %v458_v51  ;;  %v587_v54 = vadd.f32 %v1071_v37, %v586_v52 }
 0x101   :  { %666 = vst.msk [vmem:[%s1396_s3 + $0x98] sm:$0xff] %vm646_vm3, %v467_v49  ;;  %698 = vst.msk [vmem:[%s1396_s3 + $0x198] sm:$0xff] %vm646_vm3, %v595_v50 }
 0x102   :  { %664 = vst.msk [vmem:[%s1396_s3 + $0x88] sm:$0xff] %vm646_vm3, %v459_v53  ;;  %696 = vst.msk [vmem:[%s1396_s3 + $0x188] sm:$0xff] %vm646_vm3, %v587_v54 }
 0x104   :  { %v838_v55 = vpop.f32.mrb[20].mxu0  ;;  %v870_v56 = vpop.f32.mrb[20].mxu1 }
 0x105   :  { %v480_v57 = vadd.f32 %v838_v55, %v1071_v37  ;;  %v608_v58 = vadd.f32 %v870_v56, %v1071_v37  ;;  %v471_v59 = vpop.f32.mrb[21].mxu0  ;;  %v599_v60 = vpop.f32.mrb[21].mxu1 }
 0x106   :  { %v472_v61 = vadd.f32 %v1071_v37, %v471_v59  ;;  %v600_v62 = vadd.f32 %v1071_v37, %v599_v60  ;;  %v839_v63 = vpop.f32.mrb[22].mxu0  ;;  %v871_v0 = vpop.f32.mrb[22].mxu1 }
 0x107   :  { %669 = vst.msk [vmem:[%s1396_s3 + $0xb0] sm:$0xff] %vm646_vm3, %v480_v57  ;;  %701 = vst.msk [vmem:[%s1396_s3 + $0x1b0] sm:$0xff] %vm646_vm3, %v608_v58  ;;  %v483_v1 = vadd.f32 %v839_v63, %v1071_v37  ;;  %v611_v2 = vadd.f32 %v871_v0, %v1071_v37  ;;  %v474_v3 = vpop.f32.mrb[23].mxu0  ;;  %v602_v4 = vpop.f32.mrb[23].mxu1 }
 0x108   :  { %667 = vst.msk [vmem:[%s1396_s3 + $0xa0] sm:$0xff] %vm646_vm3, %v472_v61  ;;  %699 = vst.msk [vmem:[%s1396_s3 + $0x1a0] sm:$0xff] %vm646_vm3, %v600_v62  ;;  %v475_v5 = vadd.f32 %v1071_v37, %v474_v3  ;;  %v603_v6 = vadd.f32 %v1071_v37, %v602_v4 }
 0x109   :  { %670 = vst.msk [vmem:[%s1396_s3 + $0xb8] sm:$0xff] %vm646_vm3, %v483_v1  ;;  %702 = vst.msk [vmem:[%s1396_s3 + $0x1b8] sm:$0xff] %vm646_vm3, %v611_v2 }
 0x10a   :  { %668 = vst.msk [vmem:[%s1396_s3 + $0xa8] sm:$0xff] %vm646_vm3, %v475_v5  ;;  %700 = vst.msk [vmem:[%s1396_s3 + $0x1a8] sm:$0xff] %vm646_vm3, %v603_v6 }
 0x10c   :  { %v842_v7 = vpop.f32.mrb[24].mxu0  ;;  %v874_v8 = vpop.f32.mrb[24].mxu1 }
 0x10d   :  { %v496_v9 = vadd.f32 %v842_v7, %v1071_v37  ;;  %v624_v10 = vadd.f32 %v874_v8, %v1071_v37  ;;  %v487_v11 = vpop.f32.mrb[25].mxu0  ;;  %v615_v12 = vpop.f32.mrb[25].mxu1 }
 0x10e   :  { %v488_v13 = vadd.f32 %v1071_v37, %v487_v11  ;;  %v616_v14 = vadd.f32 %v1071_v37, %v615_v12  ;;  %v843_v15 = vpop.f32.mrb[26].mxu0  ;;  %v875_v16 = vpop.f32.mrb[26].mxu1 }
 0x10f   :  { %673 = vst.msk [vmem:[%s1396_s3 + $0xd0] sm:$0xff] %vm646_vm3, %v496_v9  ;;  %705 = vst.msk [vmem:[%s1396_s3 + $0x1d0] sm:$0xff] %vm646_vm3, %v624_v10  ;;  %v499_v17 = vadd.f32 %v843_v15, %v1071_v37  ;;  %v627_v18 = vadd.f32 %v875_v16, %v1071_v37  ;;  %v490_v19 = vpop.f32.mrb[27].mxu0  ;;  %v618_v20 = vpop.f32.mrb[27].mxu1 }
 0x110   :  { %671 = vst.msk [vmem:[%s1396_s3 + $0xc0] sm:$0xff] %vm646_vm3, %v488_v13  ;;  %703 = vst.msk [vmem:[%s1396_s3 + $0x1c0] sm:$0xff] %vm646_vm3, %v616_v14  ;;  %v491_v21 = vadd.f32 %v1071_v37, %v490_v19  ;;  %v619_v22 = vadd.f32 %v1071_v37, %v618_v20 }
 0x111   :  { %674 = vst.msk [vmem:[%s1396_s3 + $0xd8] sm:$0xff] %vm646_vm3, %v499_v17  ;;  %706 = vst.msk [vmem:[%s1396_s3 + $0x1d8] sm:$0xff] %vm646_vm3, %v627_v18 }
 0x112   :  { %672 = vst.msk [vmem:[%s1396_s3 + $0xc8] sm:$0xff] %vm646_vm3, %v491_v21  ;;  %704 = vst.msk [vmem:[%s1396_s3 + $0x1c8] sm:$0xff] %vm646_vm3, %v619_v22 }
 0x114   :  { %v846_v23 = vpop.f32.mrb[28].mxu0  ;;  %v878_v24 = vpop.f32.mrb[28].mxu1 }
 0x115   :  { %v512_v25 = vadd.f32 %v846_v23, %v1071_v37  ;;  %v640_v26 = vadd.f32 %v878_v24, %v1071_v37  ;;  %v503_v27 = vpop.f32.mrb[29].mxu0  ;;  %v631_v28 = vpop.f32.mrb[29].mxu1 }
 0x116   :  { %v504_v29 = vadd.f32 %v1071_v37, %v503_v27  ;;  %v632_v30 = vadd.f32 %v1071_v37, %v631_v28  ;;  %v847_v31 = vpop.f32.mrb[30].mxu0  ;;  %v879_v32 = vpop.f32.mrb[30].mxu1 }
 0x117   :  { %677 = vst.msk [vmem:[%s1396_s3 + $0xf0] sm:$0xff] %vm646_vm3, %v512_v25  ;;  %709 = vst.msk [vmem:[%s1396_s3 + $0x1f0] sm:$0xff] %vm646_vm3, %v640_v26  ;;  %v515_v33 = vadd.f32 %v847_v31, %v1071_v37  ;;  %v643_v34 = vadd.f32 %v879_v32, %v1071_v37  ;;  %v506_v35 = vpop.f32.mrb[31].mxu0  ;;  %v634_v36 = vpop.f32.mrb[31].mxu1 }
 0x118   :  { %675 = vst.msk [vmem:[%s1396_s3 + $0xe0] sm:$0xff] %vm646_vm3, %v504_v29  ;;  %707 = vst.msk [vmem:[%s1396_s3 + $0x1e0] sm:$0xff] %vm646_vm3, %v632_v30  ;;  %v507_v38 = vadd.f32 %v1071_v37, %v506_v35  ;;  %v635_v39 = vadd.f32 %v1071_v37, %v634_v36 }
 0x119   :  { %678 = vst.msk [vmem:[%s1396_s3 + $0xf8] sm:$0xff] %vm646_vm3, %v515_v33  ;;  %710 = vst.msk [vmem:[%s1396_s3 + $0x1f8] sm:$0xff] %vm646_vm3, %v643_v34 }
 0x11a   :  { %676 = vst.msk [vmem:[%s1396_s3 + $0xe8] sm:$0xff] %vm646_vm3, %v507_v38  ;;  %708 = vst.msk [vmem:[%s1396_s3 + $0x1e8] sm:$0xff] %vm646_vm3, %v635_v39 }

// kernel: dsc_stem.19
= control target key start
LH: loop header
LB: loop body
LE: loop exit
PB: predicated region body
PF: predicated region fallthrough
CT: control target
= control target key end

     0   :  { %s543_s12 = smov 0   ;;  %s545_s13 = smov 0   ;;  %s616_s0 = inlined_call_operand.vmem [shape: f32[8,4,256], index: 0, kind: input, shape index: {}]   ;;  %s617_s1 = inlined_call_operand.vmem [shape: f32[4,4,1], index: 1, kind: input, shape index: {}]   ;;  %s618_s2 = inlined_call_operand.vmem [shape: f32[4,4,1], index: 2, kind: input, shape index: {}]   ;;  %s619_s3 = inlined_call_operand.vmem [shape: f32[8,4,256], index: 3, kind: output, shape index: {}]  }
   0x1   :  { %s547_s14 = smov 0   ;;  %s549_s15 = smov 0  }
   0x2   :  { %s551_s16 = smov 0  }
   0x3 LB: > { %s22_s17 = sadd.s32 1, %s511_s14  ;;  %s25_s18 = sadd.s32 1, %s515_s15  ;;  %s519_s16 = sphi %s551_s16, %s13_s16   ;;  %s515_s15 = sphi %s549_s15, %s623_s15   ;;  %s511_s14 = sphi %s547_s14, %s622_s14   ;;  %s507_s13 = sphi %s545_s13, %s621_s13   ;;  %s503_s12 = sphi %s543_s12, %s620_s12  }
   0x4   : > { %p23_p0 = scmp.ge.s32.totalorder %s22_s17, 4  ;;  %p417_p1 = scmp.ge.s32.totalorder %s519_s16, 1 }
   0x5   : > { %p179_p2 = scmp.lt.s32.totalorder %s519_s16, 9 }
   0x6   : > { %s625_s17 = smov (%p23_p0, %s22_s17), 0  ;;  %s627_s18 = smov (!%p23_p0, %s25_s18), %s515_s15 }
   0x7   : > { %p180_p3 = pnand %p417_p1, %p179_p2  ;;  %p27_p4 = scmp.ge.s32.totalorder %s627_s18, 2 }
   0x8   : > { %s418_s19 = sshll.u32 (!%p180_p3), %s507_s13, 2  ;;  %vm245_vm0 = vcmask (!%p180_p3), 1043456   ;;  %p224_p6 = scmp.lt.s32.totalorder (!%p180_p3), %s503_s12, 3  ;;  %v521_v5 = vmov (!%p180_p3), 0   ;;  %v522_v33 = vmov (!%p180_p3), 839922192   ;;  %v290_v35 = vlaneseq (!%p180_p3) }
   0x9   : > { %s629_s18 = smov (%p27_p4, %s627_s18), 0  ;;  %183 = sbr.rel (%p180_p3) target bundleno = 470 (0x1d6), region = 32 }
   0xa   : > { %s216_s20 = sadd.s32 (!%p180_p3), %s503_s12, %s418_s19  ;;  %476 = vset.pattern.permute.xlu1 (!%p180_p3), %v521_v5  ;;  %477 = vset.pattern.permute.xlu0 (!%p180_p3), %v521_v5  ;;  %v288_v34 = vunpack.c.l.s4 (!%p180_p3), %v522_v33  ;;  %v291_v37 = vshrl.u32 (!%p180_p3), %v290_v35, 7 }
   0xb   : > { %p217_p5 = scmp.lt.s32.totalorder (!%p180_p3), %s216_s20, 7 }
   0xc   : > { %v289_v36 = vunpack.c.0.s8 (!%p180_p3), %v288_v34 }
   0xe   : > { %v292_v39 = vsub.s32 (!%p180_p3), %v289_v36, %v291_v37 }
  0x10   : > { %s631_s20 = smov (!%p217_p5, %s216_s20), 7  ;;  %s633_s12 = smov (!%p224_p6, %s503_s12), 3 }
  0x11   : > { %s428_s21 = sshll.u32 %s631_s20, 3  ;;  %s421_s25 = sshll.u32 %s633_s12, 2 }
  0x12   : > { %s221_s24 = scalar_lea.vmem %s616_s0, %s428_s21  ;;  %s227_s28 = scalar_lea.vmem %s617_s1, %s421_s25 }
  0x13   : > { %v241_v0 = vld [vmem:[%s221_s24] sm:$0xff]  ;;  %s231_s4 = scalar_lea.vmem %s618_s2, %s421_s25  ;;  %s238_s9 = scalar_lea.vmem %s619_s3, %s428_s21 }
  0x14   : > { %v243_v1 = vcombine.high %v241_v0, %v241_v0  ;;  %v246_v2 = vsel %vm245_vm0, %v241_v0, 0.0  ;;  %v282_v6 = vld [vmem:[%s227_s28] sm:$0xf] }
  0x15   : > { %285 = vperm.xlu1 %476, %v282_v6   ;;  %v296_v7 = vld [vmem:[%s231_s4] sm:$0xf] }
  0x16   : > { %v247_v3 = vsel %vm245_vm0, %v243_v1, 0.0 }
  0x17   : > { %v248_v4 = vadd.f32 %v247_v3, %v246_v2 }
  0x19   : > { %249 = vadd.xlane.f32.xlu0 %v248_v4  ;;  %299 = vperm.xlu1 %476, %v296_v7  }
  0x94   : > { %v286_v38 = vpop.permute.xlu1 %285 }
  0x95   : > { %v293_v43 = vrot.slane %v286_v38, %v292_v39 }
  0x98   : > { %v300_v41 = vpop.permute.xlu1 %299 }
  0x99   : > { %v307_v45 = vrot.slane %v300_v41, %v292_v39 }
  0xa6   : > { %v250_v8 = vpop.xlane.xlu0 %249 }
  0xa7   : > { %v251_v9 = vrot.slane %v250_v8, 4 }
  0xa9   : > { %v252_v10 = vadd.f32 %v251_v9, %v250_v8 }
  0xab   : > { %v253_v11 = vrot.slane %v252_v10, 2 }
  0xad   : > { %v254_v12 = vadd.f32 %v253_v11, %v252_v10 }
  0xaf   : > { %v255_v13 = vrot.slane %v254_v12, 1 }
  0xb1   : > { %v256_v14 = vadd.f32 %v255_v13, %v254_v12 }
  0xb3   : > { %430 = vpush %v256_v14 }
  0xe4   : > { %s431_s5 = spop %430 }
  0xe5   : > { %v258_v15 = vstv %s431_s5 }
  0xe6   : > { %v259_v16 = vmul.f32 0.0009765625, %v258_v15 }
  0xe8   : > { %v260_v17 = vsub.f32 %v241_v0, %v259_v16 }
  0xea   : > { %v261_v18 = vmul.f32 %v260_v17, %v260_v17 }
  0xec   : > { %v263_v19 = vcombine.high %v261_v18, %v261_v18  ;;  %v265_v20 = vsel %vm245_vm0, %v261_v18, 0.0 }
  0xee   : > { %v266_v21 = vsel %vm245_vm0, %v263_v19, 0.0 }
  0xef   : > { %v267_v22 = vadd.f32 %v266_v21, %v265_v20 }
  0xf1   : > { %268 = vadd.xlane.f32.xlu0 %v267_v22 }
 0x17e   : > { %v269_v23 = vpop.xlane.xlu0 %268 }
 0x17f   : > { %v270_v24 = vrot.slane %v269_v23, 4 }
 0x181   : > { %v271_v25 = vadd.f32 %v270_v24, %v269_v23 }
 0x183   : > { %v272_v26 = vrot.slane %v271_v25, 2 }
 0x185   : > { %v273_v27 = vadd.f32 %v272_v26, %v271_v25 }
 0x187   : > { %v274_v28 = vrot.slane %v273_v27, 1 }
 0x189   : > { %v275_v29 = vadd.f32 %v274_v28, %v273_v27 }
 0x18b   : > { %432 = vpush %v275_v29 }
 0x1bc   : > { %s433_s6 = spop %432 }
 0x1bd   : > { %v277_v30 = vstv %s433_s6 }
 0x1be   : > { %v278_v31 = vmul.f32 0.0009765625, %v277_v30 }
 0x1c0   : > { %v279_v32 = vadd.f32 1e-05, %v278_v31 }
 0x1c2   : > { %479 = vrsqrt.f32 %v279_v32 }
 0x1cc   : > { %v480_v40 = vpop.eup %479 }
 0x1cd   : > { %v281_v42 = vmul.f32 %v480_v40, %v260_v17 }
 0x1cf   : > { %v295_v44 = vmul.f32 %v293_v43, %v281_v42 }
 0x1d1   : > { %v309_v46 = vadd.f32 %v307_v45, %v295_v44 }
 0x1d3   : > { %v310_v47 = vmax.f32 %v309_v46, 0.0 }
 0x1d5   : > { %311 = vst [vmem:[%s238_s9] sm:$0xff] %v310_v47 }
 0x1d6 PF: > { %s13_s16 = sadd.s32 1, %s519_s16   ;;  %s620_s12 = smov %s511_s14 }
 0x1d7   : > { %p10_p7 = scmp.ge.s32.totalorder %s13_s16, 10   ;;  %s621_s13 = smov %s515_s15 }
 0x1d8   : > { %s622_s14 = smov %s625_s17  ;;  %s623_s15 = smov %s629_s18 }
 0x1d9   :  { %12 = sbr.rel (!%p10_p7) target bundleno = 3 (0x3), region = 68 }

// kernel: dsc_stem.23
= control target key start
LH: loop header
LB: loop body
LE: loop exit
PB: predicated region body
PF: predicated region fallthrough
CT: control target
= control target key end

     0   :  { %v886_v0 = vmov 0   ;;  %vm422_vm0 = vcmask 392192   ;;  %vm657_vm1 = vcmask 130048   ;;  %s1188_s1 = inlined_call_operand.vmem [shape: bf16[432,16], index: 1, kind: input, shape index: {}]   ;;  %s1189_s0 = inlined_call_operand.vmem [shape: bf16[128,432], index: 0, kind: input, shape index: {}]   ;;  %s1190_s2 = inlined_call_operand.vmem [shape: f32[1,16], index: 2, kind: input, shape index: {}]   ;;  %s1191_s3 = inlined_call_operand.vmem [shape: f32[128,16], index: 3, kind: output, shape index: {}]  }
   0x1   :  { %544 = vmatprep.subr.bf16.mxu1 %v886_v0  ;;  %v811_v1 = vld [vmem:[%s1188_s1 + $0x80] sm:$0xff]   ;;  %v814_v4 = vld [vmem:[%s1188_s1 + $0x88] sm:$0xff]   ;;  %v817_v7 = vld [vmem:[%s1188_s1 + $0x90] sm:$0xff]  }
   0x2   :  { %v812_v2 = vld [vmem:[%s1188_s1 + $0x40] sm:$0xff]   ;;  %545 = vmatpush1.bf16.msra.mxu1 %v811_v1  ;;  %v815_v5 = vld [vmem:[%s1188_s1 + $0x48] sm:$0xff]   ;;  %v818_v8 = vld [vmem:[%s1188_s1 + $0x50] sm:$0xff]  }
   0x3   :  { %v813_v3 = vld [vmem:[%s1188_s1] sm:$0xff]   ;;  %746 = vmatprep.subr.bf16.mxu0 %v812_v2  ;;  %546 = vmatprep.subr.bf16.mxu1 %v886_v0  ;;  %v816_v6 = vld [vmem:[%s1188_s1 + $0x8] sm:$0xff]   ;;  %v819_v9 = vld [vmem:[%s1188_s1 + $0x10] sm:$0xff]  }
   0x4   :  { %747 = vmatpush3.bf16.msra.mxu0 %v813_v3  ;;  %v820_v10 = vld [vmem:[%s1188_s1 + $0x98] sm:$0xff]   ;;  %v824_v13 = vld [vmem:[%s1188_s1 + $0x60] sm:$0xff]   ;;  %v827_v16 = vld [vmem:[%s1188_s1 + $0x68] sm:$0xff]  }
   0x5   :  { %748 = vmatprep.subr.bf16.mxu0 %v815_v5  ;;  %v821_v11 = vld [vmem:[%s1188_s1 + $0x58] sm:$0xff]   ;;  %v823_v14 = vld [vmem:[%s1188_s1 + $0xa0] sm:$0xff]   ;;  %v826_v17 = vld [vmem:[%s1188_s1 + $0xa8] sm:$0xff]  }
   0x6   :  { %547 = vmatpush1.bf16.msra.mxu1 %v814_v4  ;;  %v822_v12 = vld [vmem:[%s1188_s1 + $0x18] sm:$0xff]   ;;  %v825_v15 = vld [vmem:[%s1188_s1 + $0x20] sm:$0xff]   ;;  %v828_v18 = vld [vmem:[%s1188_s1 + $0x28] sm:$0xff]  }
   0x7   :  { %548 = vmatprep.subr.bf16.mxu1 %v886_v0  ;;  %v830_v19 = vld [vmem:[%s1188_s1 + $0x70] sm:$0xff]   ;;  %v832_v22 = vld [vmem:[%s1188_s1 + $0xb8] sm:$0xff]   ;;  %v835_v26 = vld [vmem:[%s1188_s1 + $0xc0] sm:$0xff]  }
   0x8   :  { %749 = vmatpush3.bf16.msra.mxu0 %v816_v6  ;;  %v829_v20 = vld [vmem:[%s1188_s1 + $0xb0] sm:$0xff]   ;;  %v833_v23 = vld [vmem:[%s1188_s1 + $0x78] sm:$0xff]   ;;  %v839_v30 = vld [vmem:[%s1188_s1 + $0xc8] sm:$0xff]  }
   0x9   :  { %750 = vmatprep.subr.bf16.mxu0 %v818_v8  ;;  %v831_v21 = vld [vmem:[%s1188_s1 + $0x30] sm:$0xff]   ;;  %v834_v25 = vld [vmem:[%s1188_s1 + $0x38] sm:$0xff]   ;;  %v1106_v2 = vld [vmem:[%s1190_s2] ss:$0 sm:$0xff] }
   0xa   :  { %549 = vmatpush1.bf16.msra.mxu1 %v817_v7  ;;  %v838_v24 = vld [vmem:[%s1189_s0 + $0x4] ss:$16 sps:$4 sm:$0xff]   ;;  %v845_v27 = vld [vmem:[%s1189_s0 + $0xc] ss:$16 sps:$4 sm:$0xff]   ;;  %v836_v28 = vld [vmem:[%s1189_s0] ss:$16 sps:$4 sm:$0xff]  }
   0xb   :  { %550 = vmatprep.subr.bf16.mxu1 %v886_v0  ;;  %479 = vmatprep.mubr.bf16.mxu0 %v838_v24  ;;  %v841_v29 = vld [vmem:[%s1189_s0 + $0x24] ss:$16 sps:$4 sm:$0xff]   ;;  %v846_v32 = vld [vmem:[%s1189_s0 + $0x20] ss:$16 sps:$4 sm:$0xff]   ;;  %v843_v34 = vld [vmem:[%s1189_s0 + $0x8] ss:$16 sps:$4 sm:$0xff]  }
   0xc   :  { %751 = vmatpush3.bf16.msra.mxu0 %v819_v9  ;;  %738 = vmatprep.mubr.msk.bf16.mxu1 %vm422_vm0, %v845_v27  ;;  %v840_v31 = vld [vmem:[%s1188_s1 + $0xd0] sm:$0xff]   ;;  %v849_v35 = vld [vmem:[%s1189_s0 + $0x2c] ss:$16 sps:$4 sm:$0xff]   ;;  %v852_v38 = vld [vmem:[%s1189_s0 + $0x28] ss:$16 sps:$4 sm:$0xff]  }
   0xd   :  { %752 = vmatprep.subr.bf16.mxu0 %v821_v11  ;;  %v847_v33 = vld [vmem:[%s1189_s0 + $0x44] ss:$16 sps:$4 sm:$0xff]   ;;  %v851_v36 = vld [vmem:[%s1189_s0 + $0x40] ss:$16 sps:$4 sm:$0xff]   ;;  %v855_v39 = vld [vmem:[%s1189_s0 + $0x4c] ss:$16 sps:$4 sm:$0xff]  }
   0xe   :  { %551 = vmatpush1.bf16.msra.mxu1 %v820_v10  ;;  %v853_v37 = vld [vmem:[%s1189_s0 + $0x64] ss:$16 sps:$4 sm:$0xff]   ;;  %v857_v40 = vld [vmem:[%s1189_s0 + $0x60] ss:$16 sps:$4 sm:$0xff]   ;;  %v858_v42 = vld [vmem:[%s1189_s0 + $0x48] ss:$16 sps:$4 sm:$0xff]  }
   0xf   :  { %552 = vmatprep.subr.bf16.mxu1 %v886_v0  ;;  %v859_v41 = vld [vmem:[%s1189_s0 + $0x84] ss:$16 sps:$4 sm:$0xff]   ;;  %v861_v43 = vld [vmem:[%s1189_s0 + $0x6c] ss:$16 sps:$4 sm:$0xff]   ;;  %v863_v44 = vld [vmem:[%s1189_s0 + $0x80] ss:$16 sps:$4 sm:$0xff]  }
  0x10   :  { %753 = vmatpush3.bf16.msra.mxu0 %v822_v12  ;;  %v865_v45 = vld [vmem:[%s1189_s0 + $0xa4] ss:$16 sps:$4 sm:$0xff]   ;;  %v864_v46 = vld [vmem:[%s1189_s0 + $0x68] ss:$16 sps:$4 sm:$0xff]   ;;  %v867_v47 = vld [vmem:[%s1189_s0 + $0x8c] ss:$16 sps:$4 sm:$0xff]  }
  0x11   :  { %754 = vmatprep.subr.bf16.mxu0 %v824_v13  ;;  %v869_v48 = vld [vmem:[%s1189_s0 + $0xa0] ss:$16 sps:$4 sm:$0xff]   ;;  %v871_v49 = vld [vmem:[%s1189_s0 + $0xc4] ss:$16 sps:$4 sm:$0xff]   ;;  %v870_v50 = vld [vmem:[%s1189_s0 + $0x88] ss:$16 sps:$4 sm:$0xff]  }
  0x12   :  { %553 = vmatpush1.bf16.msra.mxu1 %v823_v14  ;;  %v873_v51 = vld [vmem:[%s1189_s0 + $0xac] ss:$16 sps:$4 sm:$0xff]   ;;  %v875_v52 = vld [vmem:[%s1189_s0 + $0xc0] ss:$16 sps:$4 sm:$0xff]   ;;  %v877_v53 = vld [vmem:[%s1189_s0 + $0xe4] ss:$16 sps:$4 sm:$0xff]  }
  0x13   :  { %554 = vmatprep.subr.bf16.mxu1 %v886_v0  ;;  %v876_v54 = vld [vmem:[%s1189_s0 + $0xa8] ss:$16 sps:$4 sm:$0xff]   ;;  %v879_v55 = vld [vmem:[%s1189_s0 + $0xcc] ss:$16 sps:$4 sm:$0xff]   ;;  %v881_v56 = vld [vmem:[%s1189_s0 + $0xe0] ss:$16 sps:$4 sm:$0xff]  }
  0x14   :  { %755 = vmatpush3.bf16.msra.mxu0 %v825_v15  ;;  %v882_v57 = vld [vmem:[%s1189_s0 + $0xc8] ss:$16 sps:$4 sm:$0xff]   ;;  %v883_v58 = vld [vmem:[%s1189_s0 + $0xec] ss:$16 sps:$4 sm:$0xff]  }
  0x15   :  { %756 = vmatprep.subr.bf16.mxu0 %v827_v16  ;;  %v885_v59 = vld [vmem:[%s1189_s0 + $0xe8] ss:$16 sps:$4 sm:$0xff]  }
  0x16   :  { %555 = vmatpush1.bf16.msra.mxu1 %v826_v17 }
  0x17   :  { %556 = vmatprep.subr.bf16.mxu1 %v886_v0 }
  0x18   :  { %757 = vmatpush3.bf16.msra.mxu0 %v828_v18 }
  0x19   :  { %758 = vmatprep.subr.bf16.mxu0 %v830_v19 }
  0x1a   :  { %557 = vmatpush1.bf16.msra.mxu1 %v829_v20 }
  0x1b   :  { %558 = vmatprep.subr.bf16.mxu1 %v886_v0 }
  0x1c   :  { %759 = vmatpush3.bf16.msra.mxu0 %v831_v21 }
  0x1d   :  { %760 = vmatprep.subr.bf16.mxu0 %v833_v23 }
  0x1e   :  { %559 = vmatpush1.bf16.msra.mxu1 %v832_v22 }
  0x1f   :  { %560 = vmatprep.subr.bf16.mxu1 %v886_v0 }
  0x20   :  { %761 = vmatpush3.bf16.msra.mxu0 %v834_v25 }
  0x22   :  { %561 = vmatpush1.bf16.msra.mxu1 %v835_v26 }
  0x23   :  { %480 = vmatmul.mubr.bf16.vlgmr.msra.gmra.mrb[0].mxu0 %v836_v28  ;;  %562 = vmatprep.subr.bf16.mxu1 %v886_v0 }
  0x24   :  { %487 = vmatprep.mubr.bf16.mxu0 %v841_v29 }
  0x26   :  { %563 = vmatpush1.bf16.msra.mxu1 %v839_v30 }
  0x27   :  { %564 = vmatprep.subr.bf16.mxu1 %v886_v0 }
  0x2a   :  { %565 = vmatpush1.bf16.msra.mxu1 %v840_v31 }
  0x2b   :  { %488 = vmatmul.mubr.bf16.gmra.mrb[4].mxu0 %v846_v32 }
  0x2c   :  { %495 = vmatprep.mubr.bf16.mxu0 %v847_v33 }
  0x2d   :  { %577 = vmatmul.mubr.bf16.vlgmr.msra.gmra.mrb[0].mxu1 %v843_v34 }
  0x2e   :  { %739 = vmatprep.mubr.msk.bf16.mxu1 %vm422_vm0, %v849_v35 }
  0x33   :  { %496 = vmatmul.mubr.bf16.gmra.mrb[8].mxu0 %v851_v36 }
  0x34   :  { %503 = vmatprep.mubr.bf16.mxu0 %v853_v37 }
  0x35   :  { %585 = vmatmul.mubr.bf16.gmra.mrb[4].mxu1 %v852_v38 }
  0x36   :  { %740 = vmatprep.mubr.msk.bf16.mxu1 %vm422_vm0, %v855_v39 }
  0x3b   :  { %504 = vmatmul.mubr.bf16.gmra.mrb[12].mxu0 %v857_v40 }
  0x3c   :  { %511 = vmatprep.mubr.bf16.mxu0 %v859_v41 }
  0x3d   :  { %593 = vmatmul.mubr.bf16.gmra.mrb[8].mxu1 %v858_v42 }
  0x3e   :  { %741 = vmatprep.mubr.msk.bf16.mxu1 %vm422_vm0, %v861_v43 }
  0x43   :  { %512 = vmatmul.mubr.bf16.gmra.mrb[16].mxu0 %v863_v44 }
  0x44   :  { %519 = vmatprep.mubr.bf16.mxu0 %v865_v45 }
  0x45   :  { %601 = vmatmul.mubr.bf16.gmra.mrb[12].mxu1 %v864_v46 }
  0x46   :  { %742 = vmatprep.mubr.msk.bf16.mxu1 %vm422_vm0, %v867_v47 }
  0x4b   :  { %520 = vmatmul.mubr.bf16.gmra.mrb[20].mxu0 %v869_v48 }
  0x4c   :  { %527 = vmatprep.mubr.bf16.mxu0 %v871_v49 }
  0x4d   :  { %609 = vmatmul.mubr.bf16.gmra.mrb[16].mxu1 %v870_v50 }
  0x4e   :  { %743 = vmatprep.mubr.msk.bf16.mxu1 %vm422_vm0, %v873_v51 }
  0x53   :  { %528 = vmatmul.mubr.bf16.gmra.mrb[24].mxu0 %v875_v52 }
  0x54   :  { %535 = vmatprep.mubr.bf16.mxu0 %v877_v53 }
  0x55   :  { %617 = vmatmul.mubr.bf16.gmra.mrb[20].mxu1 %v876_v54 }
  0x56   :  { %744 = vmatprep.mubr.msk.bf16.mxu1 %vm422_vm0, %v879_v55 }
  0x5b   :  { %536 = vmatmul.mubr.bf16.gmra.mrb[28].mxu0 %v881_v56 }
  0x5d   :  { %625 = vmatmul.mubr.bf16.gmra.mrb[24].mxu1 %v882_v57 }
  0x5e   :  { %745 = vmatprep.mubr.msk.bf16.mxu1 %vm422_vm0, %v883_v58 }
  0x65   :  { %633 = vmatmul.mubr.bf16.gmra.mrb[28].mxu1 %v885_v59 }
  0xf6   :  { %v762_v60 = vpop.f32.mrb[0].mxu0 }
  0xf7   :  { %v763_v61 = vpop.f32.mrb[1].mxu0 }
  0xf8   :  { %v764_v62 = vadd.f32 %v763_v61, %v762_v60  ;;  %v765_v63 = vpop.f32.mrb[2].mxu0 }
  0xf9   :  { %v766_v0 = vpop.f32.mrb[3].mxu0 }
  0xfa   :  { %v767_v1 = vadd.f32 %v766_v0, %v765_v63  ;;  %v482_v3 = vadd.f32 %v764_v62, %v1106_v2 }
  0xfc   :  { %v485_v11 = vadd.f32 %v767_v1, %v1106_v2 }
  0xfe   :  { %v768_v4 = vpop.f32.mrb[4].mxu0 }
  0xff   :  { %v769_v5 = vpop.f32.mrb[5].mxu0 }
 0x100   :  { %v578_v6 = vpop.f32.mrb[0].mxu1  ;;  %v770_v7 = vadd.f32 %v769_v5, %v768_v4  ;;  %v771_v8 = vpop.f32.mrb[6].mxu0 }
 0x101   :  { %v579_v9 = vadd.f32 %v578_v6, %v482_v3  ;;  %v580_v10 = vpop.f32.mrb[1].mxu1  ;;  %v772_v12 = vpop.f32.mrb[7].mxu0 }
 0x102   :  { %v581_v13 = vpop.f32.mrb[2].mxu1  ;;  %v773_v14 = vadd.f32 %v772_v12, %v771_v8  ;;  %v490_v19 = vadd.f32 %v770_v7, %v1106_v2 }
 0x103   :  { %v641_v15 = vmax.f32 %v579_v9, 0.0  ;;  %v582_v16 = vadd.f32 %v581_v13, %v485_v11  ;;  %v583_v17 = vpop.f32.mrb[3].mxu1 }
 0x104   :  { %v493_v27 = vadd.f32 %v773_v14, %v1106_v2 }
 0x105   :  { %658 = vst.msk [vmem:[%s1191_s3] sm:$0xff] %vm657_vm1, %v641_v15  ;;  %v642_v18 = vmax.f32 %v582_v16, 0.0 }
 0x106   :  { %v774_v20 = vpop.f32.mrb[8].mxu0 }
 0x107   :  { %659 = vst.msk [vmem:[%s1191_s3 + $0x8] sm:$0xff] %vm657_vm1, %v642_v18  ;;  %v775_v21 = vpop.f32.mrb[9].mxu0 }
 0x108   :  { %v586_v22 = vpop.f32.mrb[4].mxu1  ;;  %v776_v23 = vadd.f32 %v775_v21, %v774_v20  ;;  %v777_v24 = vpop.f32.mrb[10].mxu0 }
 0x109   :  { %v587_v25 = vadd.f32 %v586_v22, %v490_v19  ;;  %v588_v26 = vpop.f32.mrb[5].mxu1  ;;  %v778_v28 = vpop.f32.mrb[11].mxu0 }
 0x10a   :  { %v589_v29 = vpop.f32.mrb[6].mxu1  ;;  %v779_v30 = vadd.f32 %v778_v28, %v777_v24  ;;  %v498_v35 = vadd.f32 %v776_v23, %v1106_v2 }
 0x10b   :  { %v643_v31 = vmax.f32 %v587_v25, 0.0  ;;  %v590_v32 = vadd.f32 %v589_v29, %v493_v27  ;;  %v591_v33 = vpop.f32.mrb[7].mxu1 }
 0x10c   :  { %v501_v43 = vadd.f32 %v779_v30, %v1106_v2 }
 0x10d   :  { %660 = vst.msk [vmem:[%s1191_s3 + $0x10] sm:$0xff] %vm657_vm1, %v643_v31  ;;  %v644_v34 = vmax.f32 %v590_v32, 0.0 }
 0x10e   :  { %v780_v36 = vpop.f32.mrb[12].mxu0 }
 0x10f   :  { %661 = vst.msk [vmem:[%s1191_s3 + $0x18] sm:$0xff] %vm657_vm1, %v644_v34  ;;  %v781_v37 = vpop.f32.mrb[13].mxu0 }
 0x110   :  { %v594_v38 = vpop.f32.mrb[8].mxu1  ;;  %v782_v39 = vadd.f32 %v781_v37, %v780_v36  ;;  %v783_v40 = vpop.f32.mrb[14].mxu0 }
 0x111   :  { %v595_v41 = vadd.f32 %v594_v38, %v498_v35  ;;  %v596_v42 = vpop.f32.mrb[9].mxu1  ;;  %v784_v44 = vpop.f32.mrb[15].mxu0 }
 0x112   :  { %v597_v45 = vpop.f32.mrb[10].mxu1  ;;  %v785_v46 = vadd.f32 %v784_v44, %v783_v40  ;;  %v506_v51 = vadd.f32 %v782_v39, %v1106_v2 }
 0x113   :  { %v645_v47 = vmax.f32 %v595_v41, 0.0  ;;  %v598_v48 = vadd.f32 %v597_v45, %v501_v43  ;;  %v599_v49 = vpop.f32.mrb[11].mxu1 }
 0x114   :  { %v509_v59 = vadd.f32 %v785_v46, %v1106_v2 }
 0x115   :  { %662 = vst.msk [vmem:[%s1191_s3 + $0x20] sm:$0xff] %vm657_vm1, %v645_v47  ;;  %v646_v50 = vmax.f32 %v598_v48, 0.0 }
 0x116   :  { %v786_v52 = vpop.f32.mrb[16].mxu0 }
 0x117   :  { %663 = vst.msk [vmem:[%s1191_s3 + $0x28] sm:$0xff] %vm657_vm1, %v646_v50  ;;  %v787_v53 = vpop.f32.mrb[17].mxu0 }
 0x118   :  { %v602_v54 = vpop.f32.mrb[12].mxu1  ;;  %v788_v55 = vadd.f32 %v787_v53, %v786_v52  ;;  %v789_v56 = vpop.f32.mrb[18].mxu0 }
 0x119   :  { %v603_v57 = vadd.f32 %v602_v54, %v506_v51  ;;  %v604_v58 = vpop.f32.mrb[13].mxu1  ;;  %v790_v60 = vpop.f32.mrb[19].mxu0 }
 0x11a   :  { %v605_v61 = vpop.f32.mrb[14].mxu1  ;;  %v791_v62 = vadd.f32 %v790_v60, %v789_v56  ;;  %v514_v4 = vadd.f32 %v788_v55, %v1106_v2 }
 0x11b   :  { %v647_v63 = vmax.f32 %v603_v57, 0.0  ;;  %v606_v0 = vadd.f32 %v605_v61, %v509_v59  ;;  %v607_v1 = vpop.f32.mrb[15].mxu1 }
 0x11c   :  { %v517_v12 = vadd.f32 %v791_v62, %v1106_v2 }
 0x11d   :  { %664 = vst.msk [vmem:[%s1191_s3 + $0x30] sm:$0xff] %vm657_vm1, %v647_v63  ;;  %v648_v3 = vmax.f32 %v606_v0, 0.0 }
 0x11e   :  { %v792_v5 = vpop.f32.mrb[20].mxu0 }
 0x11f   :  { %665 = vst.msk [vmem:[%s1191_s3 + $0x38] sm:$0xff] %vm657_vm1, %v648_v3  ;;  %v793_v6 = vpop.f32.mrb[21].mxu0 }
 0x120   :  { %v610_v7 = vpop.f32.mrb[16].mxu1  ;;  %v794_v8 = vadd.f32 %v793_v6, %v792_v5  ;;  %v795_v9 = vpop.f32.mrb[22].mxu0 }
 0x121   :  { %v611_v10 = vadd.f32 %v610_v7, %v514_v4  ;;  %v612_v11 = vpop.f32.mrb[17].mxu1  ;;  %v796_v13 = vpop.f32.mrb[23].mxu0 }
 0x122   :  { %v613_v14 = vpop.f32.mrb[18].mxu1  ;;  %v797_v15 = vadd.f32 %v796_v13, %v795_v9  ;;  %v522_v20 = vadd.f32 %v794_v8, %v1106_v2 }
 0x123   :  { %v649_v16 = vmax.f32 %v611_v10, 0.0  ;;  %v614_v17 = vadd.f32 %v613_v14, %v517_v12  ;;  %v615_v18 = vpop.f32.mrb[19].mxu1 }
 0x124   :  { %v525_v28 = vadd.f32 %v797_v15, %v1106_v2 }
 0x125   :  { %666 = vst.msk [vmem:[%s1191_s3 + $0x40] sm:$0xff] %vm657_vm1, %v649_v16  ;;  %v650_v19 = vmax.f32 %v614_v17, 0.0 }
 0x126   :  { %v798_v21 = vpop.f32.mrb[24].mxu0 }
 0x127   :  { %667 = vst.msk [vmem:[%s1191_s3 + $0x48] sm:$0xff] %vm657_vm1, %v650_v19  ;;  %v799_v22 = vpop.f32.mrb[25].mxu0 }
 0x128   :  { %v618_v23 = vpop.f32.mrb[20].mxu1  ;;  %v800_v24 = vadd.f32 %v799_v22, %v798_v21  ;;  %v801_v25 = vpop.f32.mrb[26].mxu0 }
 0x129   :  { %v619_v26 = vadd.f32 %v618_v23, %v522_v20  ;;  %v620_v27 = vpop.f32.mrb[21].mxu1  ;;  %v802_v29 = vpop.f32.mrb[27].mxu0 }
 0x12a   :  { %v621_v30 = vpop.f32.mrb[22].mxu1  ;;  %v803_v31 = vadd.f32 %v802_v29, %v801_v25  ;;  %v530_v36 = vadd.f32 %v800_v24, %v1106_v2 }
 0x12b   :  { %v651_v32 = vmax.f32 %v619_v26, 0.0  ;;  %v622_v33 = vadd.f32 %v621_v30, %v525_v28  ;;  %v623_v34 = vpop.f32.mrb[23].mxu1 }
 0x12c   :  { %v533_v44 = vadd.f32 %v803_v31, %v1106_v2 }
 0x12d   :  { %668 = vst.msk [vmem:[%s1191_s3 + $0x50] sm:$0xff] %vm657_vm1, %v651_v32  ;;  %v652_v35 = vmax.f32 %v622_v33, 0.0 }
 0x12e   :  { %v804_v37 = vpop.f32.mrb[28].mxu0 }
 0x12f   :  { %669 = vst.msk [vmem:[%s1191_s3 + $0x58] sm:$0xff] %vm657_vm1, %v652_v35  ;;  %v805_v38 = vpop.f32.mrb[29].mxu0 }
 0x130   :  { %v626_v39 = vpop.f32.mrb[24].mxu1  ;;  %v806_v40 = vadd.f32 %v805_v38, %v804_v37  ;;  %v807_v41 = vpop.f32.mrb[30].mxu0 }
 0x131   :  { %v627_v42 = vadd.f32 %v626_v39, %v530_v36  ;;  %v628_v43 = vpop.f32.mrb[25].mxu1  ;;  %v808_v45 = vpop.f32.mrb[31].mxu0 }
 0x132   :  { %v629_v46 = vpop.f32.mrb[26].mxu1  ;;  %v809_v47 = vadd.f32 %v808_v45, %v807_v41  ;;  %v538_v52 = vadd.f32 %v806_v40, %v1106_v2 }
 0x133   :  { %v653_v48 = vmax.f32 %v627_v42, 0.0  ;;  %v630_v49 = vadd.f32 %v629_v46, %v533_v44  ;;  %v631_v50 = vpop.f32.mrb[27].mxu1 }
 0x134   :  { %v541_v56 = vadd.f32 %v809_v47, %v1106_v2 }
 0x135   :  { %670 = vst.msk [vmem:[%s1191_s3 + $0x60] sm:$0xff] %vm657_vm1, %v653_v48  ;;  %v654_v51 = vmax.f32 %v630_v49, 0.0 }
 0x137   :  { %671 = vst.msk [vmem:[%s1191_s3 + $0x68] sm:$0xff] %vm657_vm1, %v654_v51 }
 0x138   :  { %v634_v53 = vpop.f32.mrb[28].mxu1 }
 0x139   :  { %v635_v54 = vadd.f32 %v634_v53, %v538_v52  ;;  %v636_v55 = vpop.f32.mrb[29].mxu1 }
 0x13a   :  { %v637_v57 = vpop.f32.mrb[30].mxu1 }
 0x13b   :  { %v655_v58 = vmax.f32 %v635_v54, 0.0  ;;  %v638_v59 = vadd.f32 %v637_v57, %v541_v56  ;;  %v639_v60 = vpop.f32.mrb[31].mxu1 }
 0x13d   :  { %672 = vst.msk [vmem:[%s1191_s3 + $0x70] sm:$0xff] %vm657_vm1, %v655_v58  ;;  %v656_v61 = vmax.f32 %v638_v59, 0.0 }
 0x13f   :  { %673 = vst.msk [vmem:[%s1191_s3 + $0x78] sm:$0xff] %vm657_vm1, %v656_v61 }

// kernel: dsc_stem.24
= control target key start
LH: loop header
LB: loop body
LE: loop exit
PB: predicated region body
PF: predicated region fallthrough
CT: control target
= control target key end

     0   :  { %v411_v0 = vmov 0   ;;  %vm182_vm0 = vcmask 130048   ;;  %vm304_vm1 = vcmask 556032   ;;  %s582_s1 = inlined_call_operand.vmem [shape: bf16[144,68], index: 1, kind: input, shape index: {}]   ;;  %s583_s0 = inlined_call_operand.vmem [shape: bf16[128,144], index: 0, kind: input, shape index: {}]   ;;  %s584_s2 = inlined_call_operand.vmem [shape: f32[1,68], index: 2, kind: input, shape index: {}]   ;;  %s585_s3 = inlined_call_operand.vmem [shape: f32[128,68], index: 3, kind: output, shape index: {}]  }
   0x1   :  { %207 = vmatprep.subr.bf16.mxu0 %v411_v0  ;;  %359 = vmatprep.subr.bf16.mxu1 %v411_v0  ;;  %v378_v1 = vld [vmem:[%s582_s1] sm:$0xff]   ;;  %v379_v2 = vld [vmem:[%s582_s1 + $0x8] sm:$0xff]   ;;  %v380_v3 = vld [vmem:[%s582_s1 + $0x10] sm:$0xff]  }
   0x2   :  { %208 = vmatpush1.bf16.msra.mxu0 %v378_v1  ;;  %368 = vmatpush1.bf16.msra.mxu1 %v378_v1  ;;  %v381_v4 = vld [vmem:[%s582_s1 + $0x18] sm:$0xff]   ;;  %v389_v5 = vld [vmem:[%s583_s0 + $0x4] ss:$8 sps:$4 sm:$0xff]   ;;  %v384_v9 = vld [vmem:[%s582_s1 + $0x30] sm:$0xff]  }
   0x3   :  { %209 = vmatprep.subr.bf16.mxu0 %v411_v0  ;;  %360 = vmatprep.subr.bf16.mxu1 %v411_v0  ;;  %v392_v6 = vld [vmem:[%s583_s0 + $0x44] ss:$8 sps:$4 sm:$0xff]   ;;  %v385_v10 = vld [vmem:[%s582_s1 + $0x38] sm:$0xff]   ;;  %v387_v12 = vld [vmem:[%s583_s0] ss:$8 sps:$4 sm:$0xff]  }
   0x4   :  { %351 = vmatprep.mubr.msk.bf16.mxu0 %vm182_vm0, %v389_v5  ;;  %355 = vmatprep.mubr.msk.bf16.mxu1 %vm182_vm0, %v392_v6  ;;  %v382_v7 = vld [vmem:[%s582_s1 + $0x20] sm:$0xff]   ;;  %v383_v8 = vld [vmem:[%s582_s1 + $0x28] sm:$0xff]   ;;  %v393_v14 = vld [vmem:[%s583_s0 + $0x14] ss:$8 sps:$4 sm:$0xff]  }
   0x5   :  { %v386_v11 = vld [vmem:[%s582_s1 + $0x40] sm:$0xff]   ;;  %v395_v15 = vld [vmem:[%s583_s0 + $0x54] ss:$8 sps:$4 sm:$0xff]   ;;  %v397_v16 = vld [vmem:[%s583_s0 + $0x10] ss:$8 sps:$4 sm:$0xff]  }
   0x6   :  { %210 = vmatpush1.bf16.msra.mxu0 %v379_v2  ;;  %369 = vmatpush1.bf16.msra.mxu1 %v379_v2  ;;  %v390_v13 = vld [vmem:[%s583_s0 + $0x40] ss:$8 sps:$4 sm:$0xff]   ;;  %v398_v17 = vld [vmem:[%s583_s0 + $0x50] ss:$8 sps:$4 sm:$0xff]   ;;  %v399_v18 = vld [vmem:[%s583_s0 + $0x24] ss:$8 sps:$4 sm:$0xff]  }
   0x7   :  { %211 = vmatprep.subr.bf16.mxu0 %v411_v0  ;;  %361 = vmatprep.subr.bf16.mxu1 %v411_v0  ;;  %v401_v19 = vld [vmem:[%s583_s0 + $0x64] ss:$8 sps:$4 sm:$0xff]   ;;  %v403_v20 = vld [vmem:[%s583_s0 + $0x20] ss:$8 sps:$4 sm:$0xff]   ;;  %v405_v22 = vld [vmem:[%s583_s0 + $0x34] ss:$8 sps:$4 sm:$0xff]  }
   0x8   :  { %v404_v21 = vld [vmem:[%s583_s0 + $0x60] ss:$8 sps:$4 sm:$0xff]   ;;  %v407_v23 = vld [vmem:[%s583_s0 + $0x74] ss:$8 sps:$4 sm:$0xff]   ;;  %v409_v24 = vld [vmem:[%s583_s0 + $0x30] ss:$8 sps:$4 sm:$0xff]  }
   0x9   :  { %v410_v25 = vld [vmem:[%s583_s0 + $0x70] ss:$8 sps:$4 sm:$0xff]   ;;  %v325_v26 = vld [vmem:[%s584_s2] ss:$0 sm:$0xff] }
   0xa   :  { %212 = vmatpush1.bf16.msra.mxu0 %v380_v3  ;;  %370 = vmatpush1.bf16.msra.mxu1 %v380_v3 }
   0xb   :  { %213 = vmatprep.subr.bf16.mxu0 %v411_v0  ;;  %362 = vmatprep.subr.bf16.mxu1 %v411_v0 }
   0xe   :  { %214 = vmatpush1.bf16.msra.mxu0 %v381_v4  ;;  %371 = vmatpush1.bf16.msra.mxu1 %v381_v4 }
   0xf   :  { %215 = vmatprep.subr.bf16.mxu0 %v411_v0  ;;  %363 = vmatprep.subr.bf16.mxu1 %v411_v0 }
  0x12   :  { %216 = vmatpush1.bf16.msra.mxu0 %v382_v7  ;;  %372 = vmatpush1.bf16.msra.mxu1 %v382_v7 }
  0x13   :  { %217 = vmatprep.subr.bf16.mxu0 %v411_v0  ;;  %364 = vmatprep.subr.bf16.mxu1 %v411_v0 }
  0x16   :  { %218 = vmatpush1.bf16.msra.mxu0 %v383_v8  ;;  %373 = vmatpush1.bf16.msra.mxu1 %v383_v8 }
  0x17   :  { %219 = vmatprep.subr.bf16.mxu0 %v411_v0  ;;  %365 = vmatprep.subr.bf16.mxu1 %v411_v0 }
  0x1a   :  { %220 = vmatpush1.bf16.msra.mxu0 %v384_v9  ;;  %374 = vmatpush1.bf16.msra.mxu1 %v384_v9 }
  0x1b   :  { %221 = vmatprep.subr.bf16.mxu0 %v411_v0  ;;  %366 = vmatprep.subr.bf16.mxu1 %v411_v0 }
  0x1e   :  { %222 = vmatpush1.bf16.msra.mxu0 %v385_v10  ;;  %375 = vmatpush1.bf16.msra.mxu1 %v385_v10 }
  0x1f   :  { %223 = vmatprep.subr.bf16.mxu0 %v411_v0  ;;  %367 = vmatprep.subr.bf16.mxu1 %v411_v0 }
  0x22   :  { %224 = vmatpush1.bf16.msra.mxu0 %v386_v11  ;;  %376 = vmatpush1.bf16.msra.mxu1 %v386_v11 }
  0x25   :  { %240 = vmatmul.mubr.bf16.vlgmr.msra.gmra.mrb[0].mxu0 %v387_v12  ;;  %272 = vmatmul.mubr.bf16.vlgmr.msra.gmra.mrb[0].mxu1 %v390_v13 }
  0x26   :  { %352 = vmatprep.mubr.msk.bf16.mxu0 %vm182_vm0, %v393_v14  ;;  %356 = vmatprep.mubr.msk.bf16.mxu1 %vm182_vm0, %v395_v15 }
  0x2d   :  { %248 = vmatmul.mubr.bf16.gmra.mrb[4].mxu0 %v397_v16  ;;  %280 = vmatmul.mubr.bf16.gmra.mrb[4].mxu1 %v398_v17 }
  0x2e   :  { %353 = vmatprep.mubr.msk.bf16.mxu0 %vm182_vm0, %v399_v18  ;;  %357 = vmatprep.mubr.msk.bf16.mxu1 %vm182_vm0, %v401_v19 }
  0x35   :  { %256 = vmatmul.mubr.bf16.gmra.mrb[8].mxu0 %v403_v20  ;;  %288 = vmatmul.mubr.bf16.gmra.mrb[8].mxu1 %v404_v21 }
  0x36   :  { %354 = vmatprep.mubr.msk.bf16.mxu0 %vm182_vm0, %v405_v22  ;;  %358 = vmatprep.mubr.msk.bf16.mxu1 %vm182_vm0, %v407_v23 }
  0x3d   :  { %264 = vmatmul.mubr.bf16.gmra.mrb[12].mxu0 %v409_v24  ;;  %296 = vmatmul.mubr.bf16.gmra.mrb[12].mxu1 %v410_v25 }
  0xf8   :  { %v241_v27 = vpop.f32.mrb[0].mxu0  ;;  %v273_v28 = vpop.f32.mrb[0].mxu1 }
  0xf9   :  { %v242_v29 = vadd.f32 %v325_v26, %v241_v27  ;;  %v274_v30 = vadd.f32 %v325_v26, %v273_v28  ;;  %v243_v31 = vpop.f32.mrb[1].mxu0  ;;  %v275_v32 = vpop.f32.mrb[1].mxu1 }
  0xfa   :  { %v244_v33 = vpop.f32.mrb[2].mxu0  ;;  %v276_v34 = vpop.f32.mrb[2].mxu1 }
  0xfb   :  { %305 = vst.msk [vmem:[%s585_s3] sm:$0xff] %vm304_vm1, %v242_v29  ;;  %313 = vst.msk [vmem:[%s585_s3 + $0x40] sm:$0xff] %vm304_vm1, %v274_v30  ;;  %v245_v35 = vadd.f32 %v325_v26, %v244_v33  ;;  %v277_v36 = vadd.f32 %v325_v26, %v276_v34  ;;  %v246_v37 = vpop.f32.mrb[3].mxu0  ;;  %v278_v38 = vpop.f32.mrb[3].mxu1 }
  0xfd   :  { %306 = vst.msk [vmem:[%s585_s3 + $0x8] sm:$0xff] %vm304_vm1, %v245_v35  ;;  %314 = vst.msk [vmem:[%s585_s3 + $0x48] sm:$0xff] %vm304_vm1, %v277_v36 }
 0x100   :  { %v249_v39 = vpop.f32.mrb[4].mxu0  ;;  %v281_v40 = vpop.f32.mrb[4].mxu1 }
 0x101   :  { %v250_v41 = vadd.f32 %v325_v26, %v249_v39  ;;  %v282_v42 = vadd.f32 %v325_v26, %v281_v40  ;;  %v251_v43 = vpop.f32.mrb[5].mxu0  ;;  %v283_v44 = vpop.f32.mrb[5].mxu1 }
 0x102   :  { %v252_v45 = vpop.f32.mrb[6].mxu0  ;;  %v284_v46 = vpop.f32.mrb[6].mxu1 }
 0x103   :  { %307 = vst.msk [vmem:[%s585_s3 + $0x10] sm:$0xff] %vm304_vm1, %v250_v41  ;;  %315 = vst.msk [vmem:[%s585_s3 + $0x50] sm:$0xff] %vm304_vm1, %v282_v42  ;;  %v253_v47 = vadd.f32 %v325_v26, %v252_v45  ;;  %v285_v48 = vadd.f32 %v325_v26, %v284_v46  ;;  %v254_v49 = vpop.f32.mrb[7].mxu0  ;;  %v286_v50 = vpop.f32.mrb[7].mxu1 }
 0x105   :  { %308 = vst.msk [vmem:[%s585_s3 + $0x18] sm:$0xff] %vm304_vm1, %v253_v47  ;;  %316 = vst.msk [vmem:[%s585_s3 + $0x58] sm:$0xff] %vm304_vm1, %v285_v48 }
 0x108   :  { %v257_v51 = vpop.f32.mrb[8].mxu0  ;;  %v289_v52 = vpop.f32.mrb[8].mxu1 }
 0x109   :  { %v258_v53 = vadd.f32 %v325_v26, %v257_v51  ;;  %v290_v54 = vadd.f32 %v325_v26, %v289_v52  ;;  %v259_v55 = vpop.f32.mrb[9].mxu0  ;;  %v291_v56 = vpop.f32.mrb[9].mxu1 }
 0x10a   :  { %v260_v57 = vpop.f32.mrb[10].mxu0  ;;  %v292_v58 = vpop.f32.mrb[10].mxu1 }
 0x10b   :  { %309 = vst.msk [vmem:[%s585_s3 + $0x20] sm:$0xff] %vm304_vm1, %v258_v53  ;;  %317 = vst.msk [vmem:[%s585_s3 + $0x60] sm:$0xff] %vm304_vm1, %v290_v54  ;;  %v261_v59 = vadd.f32 %v325_v26, %v260_v57  ;;  %v293_v60 = vadd.f32 %v325_v26, %v292_v58  ;;  %v262_v61 = vpop.f32.mrb[11].mxu0  ;;  %v294_v62 = vpop.f32.mrb[11].mxu1 }
 0x10d   :  { %310 = vst.msk [vmem:[%s585_s3 + $0x28] sm:$0xff] %vm304_vm1, %v261_v59  ;;  %318 = vst.msk [vmem:[%s585_s3 + $0x68] sm:$0xff] %vm304_vm1, %v293_v60 }
 0x110   :  { %v265_v63 = vpop.f32.mrb[12].mxu0  ;;  %v297_v0 = vpop.f32.mrb[12].mxu1 }
 0x111   :  { %v266_v1 = vadd.f32 %v325_v26, %v265_v63  ;;  %v298_v2 = vadd.f32 %v325_v26, %v297_v0  ;;  %v267_v3 = vpop.f32.mrb[13].mxu0  ;;  %v299_v4 = vpop.f32.mrb[13].mxu1 }
 0x112   :  { %v268_v5 = vpop.f32.mrb[14].mxu0  ;;  %v300_v6 = vpop.f32.mrb[14].mxu1 }
 0x113   :  { %311 = vst.msk [vmem:[%s585_s3 + $0x30] sm:$0xff] %vm304_vm1, %v266_v1  ;;  %319 = vst.msk [vmem:[%s585_s3 + $0x70] sm:$0xff] %vm304_vm1, %v298_v2  ;;  %v269_v7 = vadd.f32 %v325_v26, %v268_v5  ;;  %v301_v8 = vadd.f32 %v325_v26, %v300_v6  ;;  %v270_v9 = vpop.f32.mrb[15].mxu0  ;;  %v302_v10 = vpop.f32.mrb[15].mxu1 }
 0x115   :  { %312 = vst.msk [vmem:[%s585_s3 + $0x38] sm:$0xff] %vm304_vm1, %v269_v7  ;;  %320 = vst.msk [vmem:[%s585_s3 + $0x78] sm:$0xff] %vm304_vm1, %v301_v8 }

// kernel: dsc_stem.25
= control target key start
LH: loop header
LB: loop body
LE: loop exit
PB: predicated region body
PF: predicated region fallthrough
CT: control target
= control target key end

     0   :  { %s501_s12 = smov 0   ;;  %s503_s13 = smov 0   ;;  %s573_s0 = inlined_call_operand.vmem [shape: f32[18,2,64], index: 0, kind: input, shape index: {}]   ;;  %s574_s1 = inlined_call_operand.vmem [shape: f32[9,2,1], index: 1, kind: input, shape index: {}]   ;;  %s575_s2 = inlined_call_operand.vmem [shape: f32[9,2,1], index: 2, kind: input, shape index: {}]   ;;  %s576_s3 = inlined_call_operand.vmem [shape: f32[18,2,64], index: 3, kind: output, shape index: {}]  }
   0x1   :  { %s505_s14 = smov 0   ;;  %s507_s15 = smov 0  }
   0x2   :  { %s509_s16 = smov 0  }
   0x3 LB: > { %s22_s17 = sadd.s32 1, %s470_s14  ;;  %s25_s18 = sadd.s32 1, %s474_s15  ;;  %s478_s16 = sphi %s509_s16, %s13_s16   ;;  %s474_s15 = sphi %s507_s15, %s580_s15   ;;  %s470_s14 = sphi %s505_s14, %s579_s14   ;;  %s466_s13 = sphi %s503_s13, %s578_s13   ;;  %s462_s12 = sphi %s501_s12, %s577_s12  }
   0x4   : > { %p23_p0 = scmp.ge.s32.totalorder %s22_s17, 9  ;;  %p382_p1 = scmp.ge.s32.totalorder %s478_s16, 1 }
   0x5   : > { %p178_p2 = scmp.lt.s32.totalorder %s478_s16, 19 }
   0x6   : > { %s582_s17 = smov (%p23_p0, %s22_s17), 0  ;;  %s584_s18 = smov (!%p23_p0, %s25_s18), %s474_s15 }
   0x7   : > { %p179_p3 = pnand %p382_p1, %p178_p2  ;;  %p27_p4 = scmp.ge.s32.totalorder %s584_s18, 2 }
   0x8   : > { %s212_s19 = smul.u32 (!%p179_p3), 9, %s466_s13  ;;  %vm237_vm0 = vcmask (!%p179_p3), 517120   ;;  %p220_p6 = scmp.lt.s32.totalorder (!%p179_p3), %s462_s12, 8  ;;  %v480_v2 = vmov (!%p179_p3), 0  }
   0x9   : > { %s586_s18 = smov (%p27_p4, %s584_s18), 0  ;;  %182 = sbr.rel (%p179_p3) target bundleno = 471 (0x1d7), region = 32 }
   0xa   : > { %s213_s20 = sadd.s32 (!%p179_p3), %s462_s12, %s212_s19  ;;  %434 = vset.pattern.permute.xlu1 (!%p179_p3), %v480_v2  ;;  %435 = vset.pattern.permute.xlu0 (!%p179_p3), %v480_v2 }
   0xb   : > { %p214_p5 = scmp.lt.s32.totalorder (!%p179_p3), %s213_s20, 17 }
  0x10   : > { %s588_s20 = smov (!%p214_p5, %s213_s20), 17  ;;  %s590_s12 = smov (!%p220_p6, %s462_s12), 8 }
  0x11   : > { %s383_s21 = sshll.u32 %s588_s20, 1  ;;  %s384_s25 = sshll.u32 %s590_s12, 1 }
  0x12   : > { %s217_s24 = scalar_lea.vmem %s573_s0, %s383_s21  ;;  %s223_s28 = scalar_lea.vmem %s574_s1, %s384_s25 }
  0x13   : > { %v236_v0 = vld [vmem:[%s217_s24] sm:$0x3]  ;;  %s227_s4 = scalar_lea.vmem %s575_s2, %s384_s25  ;;  %s233_s9 = scalar_lea.vmem %s576_s3, %s383_s21 }
  0x14   : > { %v238_v1 = vsel %vm237_vm0, %v236_v0, 0.0  ;;  %v267_v3 = vld [vmem:[%s223_s28] sm:$0x3] }
  0x15   : > { %239 = vadd.xlane.f32.xlu0 %v238_v1  ;;  %270 = vperm.xlu1 %434, %v267_v3   ;;  %v274_v4 = vld [vmem:[%s227_s4] sm:$0x3] }
  0x19   : > { %277 = vperm.xlu1 %434, %v274_v4  }
  0x94   : > { %v271_v27 = vpop.permute.xlu1 %270 }
  0x98   : > { %v278_v31 = vpop.permute.xlu1 %277 }
  0xa2   : > { %v240_v5 = vpop.xlane.xlu0 %239 }
  0xa3   : > { %v241_v6 = vrot.slane %v240_v5, 4 }
  0xa5   : > { %v242_v7 = vadd.f32 %v241_v6, %v240_v5 }
  0xa7   : > { %v243_v8 = vrot.slane %v242_v7, 2 }
  0xa9   : > { %v244_v9 = vadd.f32 %v243_v8, %v242_v7 }
  0xab   : > { %v245_v10 = vrot.slane %v244_v9, 1 }
  0xad   : > { %v246_v11 = vadd.f32 %v245_v10, %v244_v9 }
  0xaf   : > { %389 = vpush %v246_v11 }
  0xe0   : > { %s390_s5 = spop %389 }
  0xe1   : > { %v248_v12 = vstv %s390_s5 }
  0xe2   : > { %v249_v13 = vmul.f32 0.0078125, %v248_v12 }
  0xe4   : > { %v250_v14 = vsub.f32 %v236_v0, %v249_v13 }
  0xe6   : > { %v251_v15 = vmul.f32 %v250_v14, %v250_v14 }
  0xe8   : > { %v252_v16 = vsel %vm237_vm0, %v251_v15, 0.0 }
  0xe9   : > { %253 = vadd.xlane.f32.xlu0 %v252_v16 }
 0x176   : > { %v254_v17 = vpop.xlane.xlu0 %253 }
 0x177   : > { %v255_v18 = vrot.slane %v254_v17, 4 }
 0x179   : > { %v256_v19 = vadd.f32 %v255_v18, %v254_v17 }
 0x17b   : > { %v257_v20 = vrot.slane %v256_v19, 2 }
 0x17d   : > { %v258_v21 = vadd.f32 %v257_v20, %v256_v19 }
 0x17f   : > { %v259_v22 = vrot.slane %v258_v21, 1 }
 0x181   : > { %v260_v23 = vadd.f32 %v259_v22, %v258_v21 }
 0x183   : > { %391 = vpush %v260_v23 }
 0x1b4   : > { %s392_s6 = spop %391 }
 0x1b5   : > { %v262_v24 = vstv %s392_s6 }
 0x1b6   : > { %v263_v25 = vmul.f32 0.0078125, %v262_v24 }
 0x1b8   : > { %v264_v26 = vadd.f32 1e-05, %v263_v25 }
 0x1ba   : > { %436 = vrsqrt.f32 %v264_v26 }
 0x1c4   : > { %v437_v28 = vpop.eup %436 }
 0x1c5   : > { %v266_v29 = vmul.f32 %v437_v28, %v250_v14 }
 0x1c7   : > { %v273_v30 = vmul.f32 %v271_v27, %v266_v29 }
 0x1c9   : > { %v280_v32 = vadd.f32 %v278_v31, %v273_v30 }
 0x1cb   : > { %438 = vtanh.f32 %v280_v32 }
 0x1d5   : > { %v439_v33 = vpop.eup %438 }
 0x1d6   : > { %282 = vst.msk [vmem:[%s233_s9] sm:$0x3] %vm237_vm0, %v439_v33 }
 0x1d7 PF: > { %s13_s16 = sadd.s32 1, %s478_s16   ;;  %s577_s12 = smov %s470_s14 }
 0x1d8   : > { %p10_p7 = scmp.ge.s32.totalorder %s13_s16, 20   ;;  %s578_s13 = smov %s474_s15 }
 0x1d9   : > { %s579_s14 = smov %s582_s17  ;;  %s580_s15 = smov %s586_s18 }
 0x1da   :  { %12 = sbr.rel (!%p10_p7) target bundleno = 3 (0x3), region = 68 }

// kernel: dsc_stem.26
= control target key start
LH: loop header
LB: loop body
LE: loop exit
PB: predicated region body
PF: predicated region fallthrough
CT: control target
= control target key end

     0   :  { %v411_v0 = vmov 0   ;;  %vm182_vm0 = vcmask 130048   ;;  %vm304_vm1 = vcmask 261120   ;;  %s582_s1 = inlined_call_operand.vmem [shape: bf16[144,32], index: 1, kind: input, shape index: {}]   ;;  %s583_s0 = inlined_call_operand.vmem [shape: bf16[128,144], index: 0, kind: input, shape index: {}]   ;;  %s584_s2 = inlined_call_operand.vmem [shape: f32[1,32], index: 2, kind: input, shape index: {}]   ;;  %s585_s3 = inlined_call_operand.vmem [shape: f32[128,32], index: 3, kind: output, shape index: {}]  }
   0x1   :  { %207 = vmatprep.subr.bf16.mxu0 %v411_v0  ;;  %359 = vmatprep.subr.bf16.mxu1 %v411_v0  ;;  %v378_v1 = vld [vmem:[%s582_s1] sm:$0xff]   ;;  %v379_v2 = vld [vmem:[%s582_s1 + $0x8] sm:$0xff]   ;;  %v380_v3 = vld [vmem:[%s582_s1 + $0x10] sm:$0xff]  }
   0x2   :  { %208 = vmatpush1.bf16.msra.mxu0 %v378_v1  ;;  %368 = vmatpush1.bf16.msra.mxu1 %v378_v1  ;;  %v381_v4 = vld [vmem:[%s582_s1 + $0x18] sm:$0xff]   ;;  %v389_v5 = vld [vmem:[%s583_s0 + $0x4] ss:$8 sps:$4 sm:$0xff]   ;;  %v384_v9 = vld [vmem:[%s582_s1 + $0x30] sm:$0xff]  }
   0x3   :  { %209 = vmatprep.subr.bf16.mxu0 %v411_v0  ;;  %360 = vmatprep.subr.bf16.mxu1 %v411_v0  ;;  %v392_v6 = vld [vmem:[%s583_s0 + $0x44] ss:$8 sps:$4 sm:$0xff]   ;;  %v385_v10 = vld [vmem:[%s582_s1 + $0x38] sm:$0xff]   ;;  %v387_v12 = vld [vmem:[%s583_s0] ss:$8 sps:$4 sm:$0xff]  }
   0x4   :  { %351 = vmatprep.mubr.msk.bf16.mxu0 %vm182_vm0, %v389_v5  ;;  %355 = vmatprep.mubr.msk.bf16.mxu1 %vm182_vm0, %v392_v6  ;;  %v382_v7 = vld [vmem:[%s582_s1 + $0x20] sm:$0xff]   ;;  %v383_v8 = vld [vmem:[%s582_s1 + $0x28] sm:$0xff]   ;;  %v393_v14 = vld [vmem:[%s583_s0 + $0x14] ss:$8 sps:$4 sm:$0xff]  }
   0x5   :  { %v386_v11 = vld [vmem:[%s582_s1 + $0x40] sm:$0xff]   ;;  %v395_v15 = vld [vmem:[%s583_s0 + $0x54] ss:$8 sps:$4 sm:$0xff]   ;;  %v397_v16 = vld [vmem:[%s583_s0 + $0x10] ss:$8 sps:$4 sm:$0xff]  }
   0x6   :  { %210 = vmatpush1.bf16.msra.mxu0 %v379_v2  ;;  %369 = vmatpush1.bf16.msra.mxu1 %v379_v2  ;;  %v390_v13 = vld [vmem:[%s583_s0 + $0x40] ss:$8 sps:$4 sm:$0xff]   ;;  %v398_v17 = vld [vmem:[%s583_s0 + $0x50] ss:$8 sps:$4 sm:$0xff]   ;;  %v399_v18 = vld [vmem:[%s583_s0 + $0x24] ss:$8 sps:$4 sm:$0xff]  }
   0x7   :  { %211 = vmatprep.subr.bf16.mxu0 %v411_v0  ;;  %361 = vmatprep.subr.bf16.mxu1 %v411_v0  ;;  %v401_v19 = vld [vmem:[%s583_s0 + $0x64] ss:$8 sps:$4 sm:$0xff]   ;;  %v403_v20 = vld [vmem:[%s583_s0 + $0x20] ss:$8 sps:$4 sm:$0xff]   ;;  %v405_v22 = vld [vmem:[%s583_s0 + $0x34] ss:$8 sps:$4 sm:$0xff]  }
   0x8   :  { %v404_v21 = vld [vmem:[%s583_s0 + $0x60] ss:$8 sps:$4 sm:$0xff]   ;;  %v407_v23 = vld [vmem:[%s583_s0 + $0x74] ss:$8 sps:$4 sm:$0xff]   ;;  %v409_v24 = vld [vmem:[%s583_s0 + $0x30] ss:$8 sps:$4 sm:$0xff]  }
   0x9   :  { %v410_v25 = vld [vmem:[%s583_s0 + $0x70] ss:$8 sps:$4 sm:$0xff]   ;;  %v325_v26 = vld [vmem:[%s584_s2] ss:$0 sm:$0xff] }
   0xa   :  { %212 = vmatpush1.bf16.msra.mxu0 %v380_v3  ;;  %370 = vmatpush1.bf16.msra.mxu1 %v380_v3 }
   0xb   :  { %213 = vmatprep.subr.bf16.mxu0 %v411_v0  ;;  %362 = vmatprep.subr.bf16.mxu1 %v411_v0 }
   0xe   :  { %214 = vmatpush1.bf16.msra.mxu0 %v381_v4  ;;  %371 = vmatpush1.bf16.msra.mxu1 %v381_v4 }
   0xf   :  { %215 = vmatprep.subr.bf16.mxu0 %v411_v0  ;;  %363 = vmatprep.subr.bf16.mxu1 %v411_v0 }
  0x12   :  { %216 = vmatpush1.bf16.msra.mxu0 %v382_v7  ;;  %372 = vmatpush1.bf16.msra.mxu1 %v382_v7 }
  0x13   :  { %217 = vmatprep.subr.bf16.mxu0 %v411_v0  ;;  %364 = vmatprep.subr.bf16.mxu1 %v411_v0 }
  0x16   :  { %218 = vmatpush1.bf16.msra.mxu0 %v383_v8  ;;  %373 = vmatpush1.bf16.msra.mxu1 %v383_v8 }
  0x17   :  { %219 = vmatprep.subr.bf16.mxu0 %v411_v0  ;;  %365 = vmatprep.subr.bf16.mxu1 %v411_v0 }
  0x1a   :  { %220 = vmatpush1.bf16.msra.mxu0 %v384_v9  ;;  %374 = vmatpush1.bf16.msra.mxu1 %v384_v9 }
  0x1b   :  { %221 = vmatprep.subr.bf16.mxu0 %v411_v0  ;;  %366 = vmatprep.subr.bf16.mxu1 %v411_v0 }
  0x1e   :  { %222 = vmatpush1.bf16.msra.mxu0 %v385_v10  ;;  %375 = vmatpush1.bf16.msra.mxu1 %v385_v10 }
  0x1f   :  { %223 = vmatprep.subr.bf16.mxu0 %v411_v0  ;;  %367 = vmatprep.subr.bf16.mxu1 %v411_v0 }
  0x22   :  { %224 = vmatpush1.bf16.msra.mxu0 %v386_v11  ;;  %376 = vmatpush1.bf16.msra.mxu1 %v386_v11 }
  0x25   :  { %240 = vmatmul.mubr.bf16.vlgmr.msra.gmra.mrb[0].mxu0 %v387_v12  ;;  %272 = vmatmul.mubr.bf16.vlgmr.msra.gmra.mrb[0].mxu1 %v390_v13 }
  0x26   :  { %352 = vmatprep.mubr.msk.bf16.mxu0 %vm182_vm0, %v393_v14  ;;  %356 = vmatprep.mubr.msk.bf16.mxu1 %vm182_vm0, %v395_v15 }
  0x2d   :  { %248 = vmatmul.mubr.bf16.gmra.mrb[4].mxu0 %v397_v16  ;;  %280 = vmatmul.mubr.bf16.gmra.mrb[4].mxu1 %v398_v17 }
  0x2e   :  { %353 = vmatprep.mubr.msk.bf16.mxu0 %vm182_vm0, %v399_v18  ;;  %357 = vmatprep.mubr.msk.bf16.mxu1 %vm182_vm0, %v401_v19 }
  0x35   :  { %256 = vmatmul.mubr.bf16.gmra.mrb[8].mxu0 %v403_v20  ;;  %288 = vmatmul.mubr.bf16.gmra.mrb[8].mxu1 %v404_v21 }
  0x36   :  { %354 = vmatprep.mubr.msk.bf16.mxu0 %vm182_vm0, %v405_v22  ;;  %358 = vmatprep.mubr.msk.bf16.mxu1 %vm182_vm0, %v407_v23 }
  0x3d   :  { %264 = vmatmul.mubr.bf16.gmra.mrb[12].mxu0 %v409_v24  ;;  %296 = vmatmul.mubr.bf16.gmra.mrb[12].mxu1 %v410_v25 }
  0xf8   :  { %v241_v27 = vpop.f32.mrb[0].mxu0  ;;  %v273_v28 = vpop.f32.mrb[0].mxu1 }
  0xf9   :  { %v242_v29 = vadd.f32 %v325_v26, %v241_v27  ;;  %v274_v30 = vadd.f32 %v325_v26, %v273_v28  ;;  %v243_v31 = vpop.f32.mrb[1].mxu0  ;;  %v275_v32 = vpop.f32.mrb[1].mxu1 }
  0xfa   :  { %v244_v33 = vpop.f32.mrb[2].mxu0  ;;  %v276_v34 = vpop.f32.mrb[2].mxu1 }
  0xfb   :  { %305 = vst.msk [vmem:[%s585_s3] sm:$0xff] %vm304_vm1, %v242_v29  ;;  %313 = vst.msk [vmem:[%s585_s3 + $0x40] sm:$0xff] %vm304_vm1, %v274_v30  ;;  %v245_v35 = vadd.f32 %v325_v26, %v244_v33  ;;  %v277_v36 = vadd.f32 %v325_v26, %v276_v34  ;;  %v246_v37 = vpop.f32.mrb[3].mxu0  ;;  %v278_v38 = vpop.f32.mrb[3].mxu1 }
  0xfd   :  { %306 = vst.msk [vmem:[%s585_s3 + $0x8] sm:$0xff] %vm304_vm1, %v245_v35  ;;  %314 = vst.msk [vmem:[%s585_s3 + $0x48] sm:$0xff] %vm304_vm1, %v277_v36 }
 0x100   :  { %v249_v39 = vpop.f32.mrb[4].mxu0  ;;  %v281_v40 = vpop.f32.mrb[4].mxu1 }
 0x101   :  { %v250_v41 = vadd.f32 %v325_v26, %v249_v39  ;;  %v282_v42 = vadd.f32 %v325_v26, %v281_v40  ;;  %v251_v43 = vpop.f32.mrb[5].mxu0  ;;  %v283_v44 = vpop.f32.mrb[5].mxu1 }
 0x102   :  { %v252_v45 = vpop.f32.mrb[6].mxu0  ;;  %v284_v46 = vpop.f32.mrb[6].mxu1 }
 0x103   :  { %307 = vst.msk [vmem:[%s585_s3 + $0x10] sm:$0xff] %vm304_vm1, %v250_v41  ;;  %315 = vst.msk [vmem:[%s585_s3 + $0x50] sm:$0xff] %vm304_vm1, %v282_v42  ;;  %v253_v47 = vadd.f32 %v325_v26, %v252_v45  ;;  %v285_v48 = vadd.f32 %v325_v26, %v284_v46  ;;  %v254_v49 = vpop.f32.mrb[7].mxu0  ;;  %v286_v50 = vpop.f32.mrb[7].mxu1 }
 0x105   :  { %308 = vst.msk [vmem:[%s585_s3 + $0x18] sm:$0xff] %vm304_vm1, %v253_v47  ;;  %316 = vst.msk [vmem:[%s585_s3 + $0x58] sm:$0xff] %vm304_vm1, %v285_v48 }
 0x108   :  { %v257_v51 = vpop.f32.mrb[8].mxu0  ;;  %v289_v52 = vpop.f32.mrb[8].mxu1 }
 0x109   :  { %v258_v53 = vadd.f32 %v325_v26, %v257_v51  ;;  %v290_v54 = vadd.f32 %v325_v26, %v289_v52  ;;  %v259_v55 = vpop.f32.mrb[9].mxu0  ;;  %v291_v56 = vpop.f32.mrb[9].mxu1 }
 0x10a   :  { %v260_v57 = vpop.f32.mrb[10].mxu0  ;;  %v292_v58 = vpop.f32.mrb[10].mxu1 }
 0x10b   :  { %309 = vst.msk [vmem:[%s585_s3 + $0x20] sm:$0xff] %vm304_vm1, %v258_v53  ;;  %317 = vst.msk [vmem:[%s585_s3 + $0x60] sm:$0xff] %vm304_vm1, %v290_v54  ;;  %v261_v59 = vadd.f32 %v325_v26, %v260_v57  ;;  %v293_v60 = vadd.f32 %v325_v26, %v292_v58  ;;  %v262_v61 = vpop.f32.mrb[11].mxu0  ;;  %v294_v62 = vpop.f32.mrb[11].mxu1 }
 0x10d   :  { %310 = vst.msk [vmem:[%s585_s3 + $0x28] sm:$0xff] %vm304_vm1, %v261_v59  ;;  %318 = vst.msk [vmem:[%s585_s3 + $0x68] sm:$0xff] %vm304_vm1, %v293_v60 }
 0x110   :  { %v265_v63 = vpop.f32.mrb[12].mxu0  ;;  %v297_v0 = vpop.f32.mrb[12].mxu1 }
 0x111   :  { %v266_v1 = vadd.f32 %v325_v26, %v265_v63  ;;  %v298_v2 = vadd.f32 %v325_v26, %v297_v0  ;;  %v267_v3 = vpop.f32.mrb[13].mxu0  ;;  %v299_v4 = vpop.f32.mrb[13].mxu1 }
 0x112   :  { %v268_v5 = vpop.f32.mrb[14].mxu0  ;;  %v300_v6 = vpop.f32.mrb[14].mxu1 }
 0x113   :  { %311 = vst.msk [vmem:[%s585_s3 + $0x30] sm:$0xff] %vm304_vm1, %v266_v1  ;;  %319 = vst.msk [vmem:[%s585_s3 + $0x70] sm:$0xff] %vm304_vm1, %v298_v2  ;;  %v269_v7 = vadd.f32 %v325_v26, %v268_v5  ;;  %v301_v8 = vadd.f32 %v325_v26, %v300_v6  ;;  %v270_v9 = vpop.f32.mrb[15].mxu0  ;;  %v302_v10 = vpop.f32.mrb[15].mxu1 }
 0x115   :  { %312 = vst.msk [vmem:[%s585_s3 + $0x38] sm:$0xff] %vm304_vm1, %v269_v7  ;;  %320 = vst.msk [vmem:[%s585_s3 + $0x78] sm:$0xff] %vm304_vm1, %v301_v8 }

// kernel: dsc_stem.27
= control target key start
LH: loop header
LB: loop body
LE: loop exit
PB: predicated region body
PF: predicated region fallthrough
CT: control target
= control target key end

     0   :  { %s505_s12 = smov 0   ;;  %s507_s13 = smov 0   ;;  %s577_s0 = inlined_call_operand.vmem [shape: f32[16,4,64], index: 0, kind: input, shape index: {}]   ;;  %s578_s1 = inlined_call_operand.vmem [shape: f32[8,4,1], index: 1, kind: input, shape index: {}]   ;;  %s579_s2 = inlined_call_operand.vmem [shape: f32[8,4,1], index: 2, kind: input, shape index: {}]   ;;  %s580_s3 = inlined_call_operand.vmem [shape: f32[16,4,64], index: 3, kind: output, shape index: {}]  }
   0x1   :  { %s509_s14 = smov 0   ;;  %s511_s15 = smov 0  }
   0x2   :  { %s513_s16 = smov 0  }
   0x3 LB: > { %s22_s17 = sadd.s32 1, %s474_s14  ;;  %s25_s18 = sadd.s32 1, %s478_s15  ;;  %s482_s16 = sphi %s513_s16, %s13_s16   ;;  %s478_s15 = sphi %s511_s15, %s584_s15   ;;  %s474_s14 = sphi %s509_s14, %s583_s14   ;;  %s470_s13 = sphi %s507_s13, %s582_s13   ;;  %s466_s12 = sphi %s505_s12, %s581_s12  }
   0x4   : > { %p23_p0 = scmp.ge.s32.totalorder %s22_s17, 8  ;;  %p386_p1 = scmp.ge.s32.totalorder %s482_s16, 1 }
   0x5   : > { %p178_p2 = scmp.lt.s32.totalorder %s482_s16, 17 }
   0x6   : > { %s586_s17 = smov (%p23_p0, %s22_s17), 0  ;;  %s588_s18 = smov (!%p23_p0, %s25_s18), %s478_s15 }
   0x7   : > { %p179_p3 = pnand %p386_p1, %p178_p2  ;;  %p27_p4 = scmp.ge.s32.totalorder %s588_s18, 2 }
   0x8   : > { %s387_s19 = sshll.u32 (!%p179_p3), %s470_s13, 3  ;;  %vm237_vm0 = vcmask (!%p179_p3), 519168   ;;  %p220_p6 = scmp.lt.s32.totalorder (!%p179_p3), %s466_s12, 7  ;;  %v484_v2 = vmov (!%p179_p3), 0  }
   0x9   : > { %s590_s18 = smov (%p27_p4, %s588_s18), 0  ;;  %182 = sbr.rel (%p179_p3) target bundleno = 462 (0x1ce), region = 32 }
   0xa   : > { %s213_s20 = sadd.s32 (!%p179_p3), %s466_s12, %s387_s19  ;;  %440 = vset.pattern.permute.xlu1 (!%p179_p3), %v484_v2  ;;  %441 = vset.pattern.permute.xlu0 (!%p179_p3), %v484_v2 }
   0xb   : > { %p214_p5 = scmp.lt.s32.totalorder (!%p179_p3), %s213_s20, 15 }
  0x10   : > { %s592_s20 = smov (!%p214_p5, %s213_s20), 15  ;;  %s594_s12 = smov (!%p220_p6, %s466_s12), 7 }
  0x11   : > { %s388_s21 = sshll.u32 %s592_s20, 2  ;;  %s389_s25 = sshll.u32 %s594_s12, 2 }
  0x12   : > { %s217_s24 = scalar_lea.vmem %s577_s0, %s388_s21  ;;  %s223_s28 = scalar_lea.vmem %s578_s1, %s389_s25 }
  0x13   : > { %v236_v0 = vld [vmem:[%s217_s24] sm:$0xf]  ;;  %s227_s4 = scalar_lea.vmem %s579_s2, %s389_s25  ;;  %s233_s9 = scalar_lea.vmem %s580_s3, %s388_s21 }
  0x14   : > { %v238_v1 = vsel %vm237_vm0, %v236_v0, 0.0  ;;  %v267_v3 = vld [vmem:[%s223_s28] sm:$0xf] }
  0x15   : > { %239 = vadd.xlane.f32.xlu0 %v238_v1  ;;  %270 = vperm.xlu1 %440, %v267_v3   ;;  %v274_v4 = vld [vmem:[%s227_s4] sm:$0xf] }
  0x19   : > { %277 = vperm.xlu1 %440, %v274_v4  }
  0x94   : > { %v271_v27 = vpop.permute.xlu1 %270 }
  0x98   : > { %v278_v31 = vpop.permute.xlu1 %277 }
  0xa2   : > { %v240_v5 = vpop.xlane.xlu0 %239 }
  0xa3   : > { %v241_v6 = vrot.slane %v240_v5, 4 }
  0xa5   : > { %v242_v7 = vadd.f32 %v241_v6, %v240_v5 }
  0xa7   : > { %v243_v8 = vrot.slane %v242_v7, 2 }
  0xa9   : > { %v244_v9 = vadd.f32 %v243_v8, %v242_v7 }
  0xab   : > { %v245_v10 = vrot.slane %v244_v9, 1 }
  0xad   : > { %v246_v11 = vadd.f32 %v245_v10, %v244_v9 }
  0xaf   : > { %395 = vpush %v246_v11 }
  0xe0   : > { %s396_s5 = spop %395 }
  0xe1   : > { %v248_v12 = vstv %s396_s5 }
  0xe2   : > { %v249_v13 = vmul.f32 0.00390625, %v248_v12 }
  0xe4   : > { %v250_v14 = vsub.f32 %v236_v0, %v249_v13 }
  0xe6   : > { %v251_v15 = vmul.f32 %v250_v14, %v250_v14 }
  0xe8   : > { %v252_v16 = vsel %vm237_vm0, %v251_v15, 0.0 }
  0xe9   : > { %253 = vadd.xlane.f32.xlu0 %v252_v16 }
 0x176   : > { %v254_v17 = vpop.xlane.xlu0 %253 }
 0x177   : > { %v255_v18 = vrot.slane %v254_v17, 4 }
 0x179   : > { %v256_v19 = vadd.f32 %v255_v18, %v254_v17 }
 0x17b   : > { %v257_v20 = vrot.slane %v256_v19, 2 }
 0x17d   : > { %v258_v21 = vadd.f32 %v257_v20, %v256_v19 }
 0x17f   : > { %v259_v22 = vrot.slane %v258_v21, 1 }
 0x181   : > { %v260_v23 = vadd.f32 %v259_v22, %v258_v21 }
 0x183   : > { %397 = vpush %v260_v23 }
 0x1b4   : > { %s398_s6 = spop %397 }
 0x1b5   : > { %v262_v24 = vstv %s398_s6 }
 0x1b6   : > { %v263_v25 = vmul.f32 0.00390625, %v262_v24 }
 0x1b8   : > { %v264_v26 = vadd.f32 1e-05, %v263_v25 }
 0x1ba   : > { %442 = vrsqrt.f32 %v264_v26 }
 0x1c4   : > { %v443_v28 = vpop.eup %442 }
 0x1c5   : > { %v266_v29 = vmul.f32 %v443_v28, %v250_v14 }
 0x1c7   : > { %v273_v30 = vmul.f32 %v271_v27, %v266_v29 }
 0x1c9   : > { %v280_v32 = vadd.f32 %v278_v31, %v273_v30 }
 0x1cb   : > { %v281_v33 = vmax.f32 %v280_v32, 0.0 }
 0x1cd   : > { %282 = vst.msk [vmem:[%s233_s9] sm:$0xf] %vm237_vm0, %v281_v33 }
 0x1ce PF: > { %s13_s16 = sadd.s32 1, %s482_s16   ;;  %s581_s12 = smov %s474_s14 }
 0x1cf   : > { %p10_p7 = scmp.ge.s32.totalorder %s13_s16, 18   ;;  %s582_s13 = smov %s478_s15 }
 0x1d0   : > { %s583_s14 = smov %s586_s17  ;;  %s584_s15 = smov %s590_s18 }
 0x1d1   :  { %12 = sbr.rel (!%p10_p7) target bundleno = 3 (0x3), region = 68 }

// kernel: dsc_stem.31
= control target key start
LH: loop header
LB: loop body
LE: loop exit
PB: predicated region body
PF: predicated region fallthrough
CT: control target
= control target key end

     0   :  { %vm541_vm0 = vcmask 785408   ;;  %s1295_s0 = inlined_call_operand.vmem [shape: bf16[32,864], index: 0, kind: input, shape index: {}]   ;;  %s1296_s1 = inlined_call_operand.vmem [shape: bf16[864,32], index: 1, kind: input, shape index: {}]   ;;  %s1297_s2 = inlined_call_operand.vmem [shape: f32[1,32], index: 2, kind: input, shape index: {}]   ;;  %s1298_s3 = inlined_call_operand.hbm [shape: f32[32,32], index: 3, kind: output, shape index: {}]  }
   0x1   :  { %v951_v0 = vld [vmem:[%s1296_s1 + $0x40] sm:$0xff]   ;;  %v955_v4 = vld [vmem:[%s1296_s1 + $0x48] sm:$0xff]   ;;  %v959_v8 = vld [vmem:[%s1296_s1 + $0x50] sm:$0xff]  }
   0x2   :  { %v952_v1 = vld [vmem:[%s1296_s1] sm:$0xff]   ;;  %840 = vmatprep.subr.bf16.mxu0 %v951_v0  ;;  %v956_v5 = vld [vmem:[%s1296_s1 + $0x8] sm:$0xff]   ;;  %v960_v9 = vld [vmem:[%s1296_s1 + $0x10] sm:$0xff]  }
   0x3   :  { %v953_v2 = vld [vmem:[%s1296_s1 + $0xc0] sm:$0xff]   ;;  %841 = vmatpush3.bf16.msra.mxu0 %v952_v1  ;;  %v957_v6 = vld [vmem:[%s1296_s1 + $0xc8] sm:$0xff]   ;;  %v961_v10 = vld [vmem:[%s1296_s1 + $0xd0] sm:$0xff]  }
   0x4   :  { %v954_v3 = vld [vmem:[%s1296_s1 + $0x80] sm:$0xff]   ;;  %868 = vmatprep.subr.bf16.mxu1 %v953_v2  ;;  %842 = vmatprep.subr.bf16.mxu0 %v955_v4  ;;  %v958_v7 = vld [vmem:[%s1296_s1 + $0x88] sm:$0xff]   ;;  %v962_v11 = vld [vmem:[%s1296_s1 + $0x90] sm:$0xff]  }
   0x5   :  { %869 = vmatpush3.bf16.msra.mxu1 %v954_v3  ;;  %v963_v12 = vld [vmem:[%s1296_s1 + $0x58] sm:$0xff]   ;;  %v967_v16 = vld [vmem:[%s1296_s1 + $0x60] sm:$0xff]   ;;  %v971_v20 = vld [vmem:[%s1296_s1 + $0x68] sm:$0xff]  }
   0x6   :  { %870 = vmatprep.subr.bf16.mxu1 %v957_v6  ;;  %v964_v13 = vld [vmem:[%s1296_s1 + $0x18] sm:$0xff]   ;;  %v968_v17 = vld [vmem:[%s1296_s1 + $0x20] sm:$0xff]   ;;  %v972_v21 = vld [vmem:[%s1296_s1 + $0x28] sm:$0xff]  }
   0x7   :  { %843 = vmatpush3.bf16.msra.mxu0 %v956_v5  ;;  %v965_v14 = vld [vmem:[%s1296_s1 + $0xd8] sm:$0xff]   ;;  %v969_v18 = vld [vmem:[%s1296_s1 + $0xe0] sm:$0xff]   ;;  %v973_v22 = vld [vmem:[%s1296_s1 + $0xe8] sm:$0xff]  }
   0x8   :  { %844 = vmatprep.subr.bf16.mxu0 %v959_v8  ;;  %v966_v15 = vld [vmem:[%s1296_s1 + $0x98] sm:$0xff]   ;;  %v970_v19 = vld [vmem:[%s1296_s1 + $0xa0] sm:$0xff]   ;;  %v974_v23 = vld [vmem:[%s1296_s1 + $0xa8] sm:$0xff]  }
   0x9   :  { %871 = vmatpush3.bf16.msra.mxu1 %v958_v7  ;;  %v975_v24 = vld [vmem:[%s1296_s1 + $0x70] sm:$0xff]   ;;  %v979_v28 = vld [vmem:[%s1296_s1 + $0x78] sm:$0xff]   ;;  %v984_v32 = vld [vmem:[%s1295_s0 + $0x4] ss:$28 sps:$4 sm:$0xff]  }
   0xa   :  { %872 = vmatprep.subr.bf16.mxu1 %v961_v10  ;;  %v976_v25 = vld [vmem:[%s1296_s1 + $0x30] sm:$0xff]   ;;  %v980_v29 = vld [vmem:[%s1296_s1 + $0x38] sm:$0xff]   ;;  %580 = vmatprep.mubr.bf16.mxu0 %v984_v32  ;;  %v986_v34 = vld [vmem:[%s1296_s1 + $0x140] sm:$0xff]  }
   0xb   :  { %845 = vmatpush3.bf16.msra.mxu0 %v960_v9  ;;  %v977_v26 = vld [vmem:[%s1296_s1 + $0xf0] sm:$0xff]   ;;  %v981_v30 = vld [vmem:[%s1296_s1 + $0xf8] sm:$0xff]   ;;  %v987_v35 = vld [vmem:[%s1295_s0 + $0x8] ss:$28 sps:$4 sm:$0xff]  }
   0xc   :  { %846 = vmatprep.subr.bf16.mxu0 %v963_v12  ;;  %v978_v27 = vld [vmem:[%s1296_s1 + $0xb0] sm:$0xff]   ;;  %v982_v31 = vld [vmem:[%s1295_s0] ss:$28 sps:$4 sm:$0xff]   ;;  %v989_v36 = vld [vmem:[%s1295_s0 + $0xc] ss:$28 sps:$4 sm:$0xff]  }
   0xd   :  { %873 = vmatpush3.bf16.msra.mxu1 %v962_v11  ;;  %v985_v33 = vld [vmem:[%s1296_s1 + $0xb8] sm:$0xff]   ;;  %v990_v37 = vld [vmem:[%s1296_s1 + $0x100] sm:$0xff]   ;;  %629 = vmatprep.mubr.bf16.mxu1 %v989_v36  ;;  %v991_v38 = vld [vmem:[%s1296_s1 + $0x148] sm:$0xff]  }
   0xe   :  { %874 = vmatprep.subr.bf16.mxu1 %v965_v14  ;;  %v992_v39 = vld [vmem:[%s1296_s1 + $0x108] sm:$0xff]   ;;  %v993_v40 = vld [vmem:[%s1296_s1 + $0x150] sm:$0xff]   ;;  %v996_v42 = vld [vmem:[%s1296_s1 + $0x180] sm:$0xff]  }
   0xf   :  { %847 = vmatpush3.bf16.msra.mxu0 %v964_v13  ;;  %v994_v41 = vld [vmem:[%s1296_s1 + $0x110] sm:$0xff]   ;;  %v995_v43 = vld [vmem:[%s1296_s1 + $0x158] sm:$0xff]   ;;  %v999_v45 = vld [vmem:[%s1296_s1 + $0x188] sm:$0xff]  }
  0x10   :  { %848 = vmatprep.subr.bf16.mxu0 %v967_v16  ;;  %v997_v44 = vld [vmem:[%s1296_s1 + $0x118] sm:$0xff]   ;;  %v998_v46 = vld [vmem:[%s1296_s1 + $0x160] sm:$0xff]   ;;  %v1004_v49 = vld [vmem:[%s1296_s1 + $0x190] sm:$0xff]  }
  0x11   :  { %875 = vmatpush3.bf16.msra.mxu1 %v966_v15  ;;  %v1001_v47 = vld [vmem:[%s1295_s0 + $0x3c] ss:$28 sps:$4 sm:$0xff]   ;;  %v1000_v48 = vld [vmem:[%s1296_s1 + $0x120] sm:$0xff]   ;;  %v1003_v51 = vld [vmem:[%s1296_s1 + $0x168] sm:$0xff]  }
  0x12   :  { %876 = vmatprep.subr.bf16.mxu1 %v969_v18  ;;  %v1005_v50 = vld [vmem:[%s1295_s0 + $0x38] ss:$28 sps:$4 sm:$0xff]   ;;  %v1007_v52 = vld [vmem:[%s1295_s0 + $0x44] ss:$28 sps:$4 sm:$0xff]   ;;  %v1006_v54 = vld [vmem:[%s1296_s1 + $0x128] sm:$0xff]  }
  0x13   :  { %849 = vmatpush3.bf16.msra.mxu0 %v968_v17  ;;  %v1009_v53 = vld [vmem:[%s1295_s0 + $0x40] ss:$28 sps:$4 sm:$0xff]   ;;  %v1010_v56 = vld [vmem:[%s1296_s1 + $0x170] sm:$0xff]   ;;  %v1019_v61 = vld [vmem:[%s1296_s1 + $0x1a8] sm:$0xff]  }
  0x14   :  { %850 = vmatprep.subr.bf16.mxu0 %v971_v20  ;;  %v1011_v55 = vld [vmem:[%s1296_s1 + $0x198] sm:$0xff]   ;;  %v1014_v57 = vld [vmem:[%s1296_s1 + $0x1a0] sm:$0xff]   ;;  %v1012_v58 = vld [vmem:[%s1296_s1 + $0x130] sm:$0xff]  }
  0x15   :  { %877 = vmatpush3.bf16.msra.mxu1 %v970_v19  ;;  %v1013_v59 = vld [vmem:[%s1296_s1 + $0x178] sm:$0xff]   ;;  %v1018_v60 = vld [vmem:[%s1295_s0 + $0x14] ss:$28 sps:$4 sm:$0xff]  }
  0x16   :  { %878 = vmatprep.subr.bf16.mxu1 %v973_v22  ;;  %v1020_v62 = vld [vmem:[%s1295_s0 + $0x18] ss:$28 sps:$4 sm:$0xff]   ;;  %v1021_v0 = vld [vmem:[%s1295_s0 + $0x50] ss:$28 sps:$4 sm:$0xff]  }
  0x17   :  { %851 = vmatpush3.bf16.msra.mxu0 %v972_v21  ;;  %v1015_v63 = vld [vmem:[%s1296_s1 + $0x138] sm:$0xff]  }
  0x18   :  { %852 = vmatprep.subr.bf16.mxu0 %v975_v24 }
  0x19   :  { %879 = vmatpush3.bf16.msra.mxu1 %v974_v23 }
  0x1a   :  { %880 = vmatprep.subr.bf16.mxu1 %v977_v26 }
  0x1b   :  { %853 = vmatpush3.bf16.msra.mxu0 %v976_v25 }
  0x1c   :  { %854 = vmatprep.subr.bf16.mxu0 %v979_v28 }
  0x1d   :  { %881 = vmatpush3.bf16.msra.mxu1 %v978_v27 }
  0x1e   :  { %882 = vmatprep.subr.bf16.mxu1 %v981_v30 }
  0x1f   :  { %855 = vmatpush3.bf16.msra.mxu0 %v980_v29 }
  0x20   :  { %896 = vmatprep.subr.bf16.mxu0 %v986_v34 }
  0x21   :  { %883 = vmatpush3.bf16.msra.mxu1 %v985_v33 }
  0x22   :  { %581 = vmatmul.mubr.bf16.vlgmr.msra.gmra.mrb[0].mxu0 %v982_v31  ;;  %932 = vmatprep.subr.bf16.mxu1 %v996_v42 }
  0x23   :  { %897 = vmatpush3.bf16.msra.mxu0 %v990_v37  ;;  %588 = vmatprep.mubr.bf16.mxu0 %v1001_v47 }
  0x24   :  { %630 = vmatmul.mubr.bf16.vlgmr.msra.gmra.mrb[0].mxu1 %v987_v35  ;;  %898 = vmatprep.subr.bf16.mxu0 %v991_v38 }
  0x25   :  { %933 = vmatpush3.bf16.msra.mxu1 %v996_v42  ;;  %637 = vmatprep.mubr.bf16.mxu1 %v1007_v52 }
  0x26   :  { %934 = vmatprep.subr.bf16.mxu1 %v999_v45 }
  0x27   :  { %899 = vmatpush3.bf16.msra.mxu0 %v992_v39 }
  0x28   :  { %900 = vmatprep.subr.bf16.mxu0 %v993_v40 }
  0x29   :  { %935 = vmatpush3.bf16.msra.mxu1 %v999_v45 }
  0x2a   :  { %936 = vmatprep.subr.bf16.mxu1 %v1004_v49  ;;  %589 = vmatmul.mubr.bf16.gmra.mrb[4].mxu0 %v1005_v50 }
  0x2b   :  { %901 = vmatpush3.bf16.msra.mxu0 %v994_v41  ;;  %678 = vmatprep.mubr.bf16.mxu0 %v1018_v60 }
  0x2c   :  { %902 = vmatprep.subr.bf16.mxu0 %v995_v43  ;;  %638 = vmatmul.mubr.bf16.gmra.mrb[4].mxu1 %v1009_v53 }
  0x2d   :  { %937 = vmatpush3.bf16.msra.mxu1 %v1004_v49  ;;  %944 = vmatprep.mubr.msk.bf16.mxu1 %vm541_vm0, %v1020_v62 }
  0x2e   :  { %938 = vmatprep.subr.bf16.mxu1 %v1011_v55 }
  0x2f   :  { %903 = vmatpush3.bf16.msra.mxu0 %v997_v44 }
  0x30   :  { %904 = vmatprep.subr.bf16.mxu0 %v998_v46 }
  0x31   :  { %939 = vmatpush3.bf16.msra.mxu1 %v1011_v55 }
  0x32   :  { %940 = vmatprep.subr.bf16.mxu1 %v1014_v57 }
  0x33   :  { %905 = vmatpush3.bf16.msra.mxu0 %v1000_v48 }
  0x34   :  { %906 = vmatprep.subr.bf16.mxu0 %v1003_v51 }
  0x35   :  { %941 = vmatpush3.bf16.msra.mxu1 %v1014_v57 }
  0x36   :  { %942 = vmatprep.subr.bf16.mxu1 %v1019_v61 }
  0x37   :  { %907 = vmatpush3.bf16.msra.mxu0 %v1006_v54 }
  0x38   :  { %908 = vmatprep.subr.bf16.mxu0 %v1010_v56 }
  0x3b   :  { %909 = vmatpush3.bf16.msra.mxu0 %v1012_v58 }
  0x3c   :  { %910 = vmatprep.subr.bf16.mxu0 %v1013_v59 }
  0x3d   :  { %8 = vsyncpa [#allocation3], 0  ;;  %v1016_v1 = vld [vmem:[%s1295_s0 + $0x10] ss:$28 sps:$4 sm:$0xff]   ;;  %943 = vmatpush3.bf16.msra.mxu1 %v1019_v61  ;;  %v1024_v3 = vld [vmem:[%s1295_s0 + $0x48] ss:$28 sps:$4 sm:$0xff]  }
  0x3e   :  { %v1022_v2 = vld [vmem:[%s1295_s0 + $0x4c] ss:$28 sps:$4 sm:$0xff]   ;;  %v769_v5 = vld [vmem:[%s1297_s2] ss:$0 sm:$0xff]  ;;  %vm748_vm1 = vcmask 261120   ;;  %s1049_s0 = smov [#allocation2]  }
  0x3f   :  { %911 = vmatpush3.bf16.msra.mxu0 %v1015_v63  ;;  %s758_s2 = sshll.u32 %s1049_s0, 4  ;;  %s759_s2 = int_to_ptr.vmem [resolvable:$true] %s758_s2 }
  0x40   :  { %945 = vmatmul.mubr.msk.bf16.vlgmr.msra.gmra.mrb[8].mxu1 %vm541_vm0, %v1021_v0  ;;  %s1025_s14 = scalar_lea.vmem %s759_s2, 512  ;;  %p1030_p1 = scmp.lt.s32.totalorder %s759_s2, %s759_s2 }
  0x41   :  { %p1026_p0 = scmp.ne.s32.totalorder %s759_s2, %s1025_s14  ;;  %p1031_p2 = scmp.lt.s32.totalorder %s1025_s14, %s1025_s14 }
  0x42   :  { %679 = vmatmul.mubr.bf16.vlgmr.msra.gmra.mrb[8].mxu0 %v1016_v1 }
  0x43   :  { %686 = vmatprep.mubr.bf16.mxu0 %v1022_v2  ;;  %p1032_p3 = por %p1031_p2, %p1030_p1 }
  0x45   :  { %p1033_p4 = pnand %p1032_p3, %p1026_p0 }
  0x4a   :  { %687 = vmatmul.mubr.bf16.gmra.mrb[12].mxu0 %v1024_v3 }
  0xf5   :  { %v856_v4 = vpop.f32.mrb[0].mxu0 }
  0xf6   :  { %v857_v6 = vpop.f32.mrb[1].mxu0 }
  0xf7   :  { %v858_v7 = vadd.f32 %v857_v6, %v856_v4  ;;  %v859_v8 = vpop.f32.mrb[2].mxu0  ;;  %v884_v9 = vpop.f32.mrb[0].mxu1 }
  0xf8   :  { %v860_v10 = vpop.f32.mrb[3].mxu0  ;;  %v885_v13 = vpop.f32.mrb[1].mxu1 }
  0xf9   :  { %v583_v11 = vadd.f32 %v858_v7, %v769_v5  ;;  %v861_v12 = vadd.f32 %v860_v10, %v859_v8  ;;  %v886_v14 = vadd.f32 %v885_v13, %v884_v9  ;;  %v887_v15 = vpop.f32.mrb[2].mxu1 }
  0xfa   :  { %v888_v17 = vpop.f32.mrb[3].mxu1 }
  0xfb   :  { %v586_v16 = vadd.f32 %v861_v12, %v769_v5  ;;  %v632_v18 = vadd.f32 %v886_v14, %v583_v11  ;;  %v889_v19 = vadd.f32 %v888_v17, %v887_v15 }
  0xfd   :  { %v635_v20 = vadd.f32 %v889_v19, %v586_v16  ;;  %v862_v21 = vpop.f32.mrb[4].mxu0 }
  0xfe   :  { %v863_v22 = vpop.f32.mrb[5].mxu0 }
  0xff   :  { %v864_v23 = vadd.f32 %v863_v22, %v862_v21  ;;  %v865_v24 = vpop.f32.mrb[6].mxu0  ;;  %v890_v25 = vpop.f32.mrb[4].mxu1 }
 0x100   :  { %v866_v26 = vpop.f32.mrb[7].mxu0  ;;  %v891_v27 = vpop.f32.mrb[5].mxu1 }
 0x101   :  { %v591_v28 = vadd.f32 %v864_v23, %v769_v5  ;;  %v867_v29 = vadd.f32 %v866_v26, %v865_v24  ;;  %v892_v30 = vadd.f32 %v891_v27, %v890_v25  ;;  %v893_v31 = vpop.f32.mrb[6].mxu1 }
 0x102   :  { %v894_v32 = vpop.f32.mrb[7].mxu1 }
 0x103   :  { %v594_v33 = vadd.f32 %v867_v29, %v769_v5  ;;  %v640_v34 = vadd.f32 %v892_v30, %v591_v28  ;;  %v895_v35 = vadd.f32 %v894_v32, %v893_v31 }
 0x105   :  { %v643_v36 = vadd.f32 %v895_v35, %v594_v33 }
 0x113   :  { %v946_v37 = vpop.f32.mrb[8].mxu1 }
 0x114   :  { %v729_v39 = vpop.f32.mrb[9].mxu1 }
 0x115   :  { %v912_v38 = vpop.f32.mrb[8].mxu0  ;;  %v947_v41 = vpop.f32.mrb[10].mxu1 }
 0x116   :  { %v913_v40 = vpop.f32.mrb[9].mxu0  ;;  %v732_v44 = vpop.f32.mrb[11].mxu1 }
 0x117   :  { %v914_v42 = vadd.f32 %v913_v40, %v912_v38  ;;  %v915_v43 = vpop.f32.mrb[10].mxu0 }
 0x118   :  { %v916_v45 = vpop.f32.mrb[11].mxu0 }
 0x119   :  { %v917_v46 = vadd.f32 %v916_v45, %v915_v43  ;;  %v681_v47 = vadd.f32 %v914_v42, %v632_v18 }
 0x11b   :  { %v730_v48 = vadd.f32 %v729_v39, %v681_v47  ;;  %v684_v49 = vadd.f32 %v917_v46, %v635_v20 }
 0x11d   :  { %v744_v50 = vmax.f32 %v730_v48, 0.0  ;;  %v733_v51 = vadd.f32 %v732_v44, %v684_v49  ;;  %v918_v52 = vpop.f32.mrb[12].mxu0 }
 0x11e   :  { %v919_v53 = vpop.f32.mrb[13].mxu0 }
 0x11f   :  { %749 = vst.msk [vmem:[#allocation2] sm:$0xff] %vm748_vm1, %v744_v50  ;;  %v745_v54 = vmax.f32 %v733_v51, 0.0  ;;  %v920_v55 = vadd.f32 %v919_v53, %v918_v52  ;;  %v921_v56 = vpop.f32.mrb[14].mxu0 }
 0x120   :  { %v922_v57 = vpop.f32.mrb[15].mxu0 }
 0x121   :  { %750 = vst.msk [vmem:[#allocation2 + $0x8] sm:$0xff] %vm748_vm1, %v745_v54  ;;  %v689_v58 = vadd.f32 %v920_v55, %v640_v34  ;;  %v923_v59 = vadd.f32 %v922_v57, %v921_v56 }
 0x123   :  { %v738_v60 = vadd.f32 %v946_v37, %v689_v58  ;;  %v692_v61 = vadd.f32 %v923_v59, %v643_v36 }
 0x125   :  { %v746_v62 = vmax.f32 %v738_v60, 0.0  ;;  %v741_v63 = vadd.f32 %v947_v41, %v692_v61 }
 0x127   :  { %751 = vst.msk [vmem:[#allocation2 + $0x10] sm:$0xff] %vm748_vm1, %v746_v62  ;;  %v747_v0 = vmax.f32 %v741_v63, 0.0 }
 0x129   :  { %752 = vst.msk [vmem:[#allocation2 + $0x18] sm:$0xff] %vm748_vm1, %v747_v0 }
 0x12a   :  { %1036 = shalt.err (!%p1033_p4)
}
 0x12b   :  { %s1037_s17 = scalar_lea.hbm %s1298_s3, 512 }
 0x12c   :  { %p1038_p5 = scmp.ne.s32.totalorder %s1298_s3, %s1037_s17  ;;  %p1041_p6 = scmp.lt.u32.totalorder %s1037_s17, %s1298_s3 }
 0x12e   :  { %p1043_p7 = pnand %p1041_p6, %p1038_p5 }
 0x130   :  { %1046 = shalt.err (!%p1043_p7)
}
 0x131   :  { %s1050_s22 = smov 128   ;;  %s1051_s23 = smov 8  }
 0x132   :  { %764 = dma.vmem_to_hbm [thread:$0]  %s759_s2, 512, %s1298_s3, [#allocation3], %s1050_s22, %s1050_s22, %s1051_s23  }
 0x133   :  { %1047 = dma.done.wait [#allocation3], 512  }
 0x134   :  { %1048 = vsyncadd [#allocation3], 4294966784 }
 0x135   :  { %768 = vsyncpa [#allocation3], 1 }

</bundles_post_ra>
